<compile_context>
chip_gen: v5e
topology: v5e:2x2
jax: 0.10.0
libtpu: 0.0.40
codegen_flags: <defaults>
</compile_context>

<pallas_src>
import functools

import numpy as np

import jax
import jax.numpy as jnp
from jax.experimental import pallas as pl
from jax.experimental.pallas import tpu as pltpu


# ----------------------------------------------------------------------------
# Fused Pallas kernel: whole CalibrateNetwork, two images per grid step.
# ----------------------------------------------------------------------------
def _calibrate_kernel(x_ref, mask_ref,
                      in_w_ref, in_b_ref,
                      c1_w_ref, c1_b_ref,
                      c2_w_ref, c2_b_ref,
                      out_w_ref, out_b_ref,
                      out_ref, *, H, W, layers, rows):
    L = H * W
    CENTER = 4  # tap index of (dy, dx) == (0, 0)
    # Lane-roll shift per tap (compile-time Python ints): rolled[p] = fea[p + dy*W + dx].
    shifts = [(-(dy * W + dx)) % L for dy in (-1, 0, 1) for dx in (-1, 0, 1)]

    x = x_ref[0]                                   # (rows, L) f32, spatial on lanes

    def conv3x3(fea, w_ref, bias_full, act):
        # 9 per-tap dots accumulated in f32 -- no (9*Cin, L) im2col buffer.
        acc = bias_full
        for t in range(9):
            if t == CENTER:
                tap = fea
            else:
                tap = pltpu.roll(fea, shift=shifts[t], axis=1)
                tap = tap * mask_ref[t]            # zero-padding at image borders
            acc = acc + jnp.dot(w_ref[t], tap,
                                preferred_element_type=jnp.float32)
        if act == "relu":
            return jnp.maximum(acc, 0.0)
        return jax.nn.sigmoid(acc)                 # out_conv activation

    # Bias broadcasts hoisted: done once per grid step, not once per conv.
    in_b = jnp.broadcast_to(in_b_ref[...], (rows, L))
    c1_b = jnp.broadcast_to(c1_b_ref[...], (rows, L))
    c2_b = jnp.broadcast_to(c2_b_ref[...], (rows, L))
    out_b = jnp.broadcast_to(out_b_ref[...], (rows, L))

    fea = conv3x3(x, in_w_ref, in_b, "relu")
    for _ in range(layers):                        # every block shares self.convs weights
        y = conv3x3(fea, c1_w_ref, c1_b, "relu")
        y = conv3x3(y, c2_w_ref, c2_b, "relu")
        fea = fea + y                              # residual add
    out = conv3x3(fea, out_w_ref, out_b, "sigmoid")

    out_ref[0] = (x - out).astype(out_ref.dtype)   # delta = input - fea


# ----------------------------------------------------------------------------
# Host-side helpers: constant boundary masks + parameter packing
# ----------------------------------------------------------------------------
def _boundary_masks(H, W, rows):
    """Compile-time per-tap validity masks, pre-broadcast to (rows, H*W)."""
    L = H * W
    yy, xx = np.divmod(np.arange(L), W)
    m = np.empty((9, rows, L), np.float32)
    t = 0
    for dy in (-1, 0, 1):
        for dx in (-1, 0, 1):
            ok = ((yy + dy >= 0) & (yy + dy < H) &
                  (xx + dx >= 0) & (xx + dx < W)).astype(np.float32)
            m[t] = np.broadcast_to(ok[None, :], (rows, L))
            t += 1
    return jnp.asarray(m)


def _fold_bn(w, b, bn, eps=1e-5):
    """Inference-mode BN fold: scale into conv weights, shift into bias."""
    gamma, beta, mean, var = bn
    s = gamma / jnp.sqrt(var + eps)
    return w * s[:, None, None, None], (b - mean) * s + beta


def _pack_taps(w, channels):
    """torch-layout (cout, cin, 3, 3) -> (9, 2C, 2C) block-diagonal per-tap weights."""
    C = channels
    cout, cin = w.shape[0], w.shape[1]
    taps = []
    for kh in range(3):
        for kw in range(3):
            blk = jnp.zeros((C, C), jnp.float32).at[:cout, :cin].set(w[:, :, kh, kw])
            bd = (jnp.zeros((2 * C, 2 * C), jnp.float32)
                  .at[:C, :C].set(blk).at[C:, C:].set(blk))   # 2 independent images
            taps.append(bd)
    return jnp.stack(taps)                                     # (9, 2C, 2C)


def _pack_bias(b, channels):
    C = channels
    bb = jnp.zeros((C,), jnp.float32).at[:b.shape[0]].set(b)
    return jnp.concatenate([bb, bb]).reshape(2 * C, 1)         # (2C, 1)


def pack_params(raw, channels):
    in_w, in_b = _fold_bn(raw["in_w"], raw["in_b"], raw["in_bn"])
    c1_w, c1_b = _fold_bn(raw["c1_w"], raw["c1_b"], raw["c1_bn"])
    c2_w, c2_b = _fold_bn(raw["c2_w"], raw["c2_b"], raw["c2_bn"])
    return {
        "in_w": _pack_taps(in_w, channels), "in_b": _pack_bias(in_b, channels),
        "c1_w": _pack_taps(c1_w, channels), "c1_b": _pack_bias(c1_b, channels),
        "c2_w": _pack_taps(c2_w, channels), "c2_b": _pack_bias(c2_b, channels),
        "out_w": _pack_taps(raw["out_w"], channels),
        "out_b": _pack_bias(raw["out_b"], channels),
    }


# ----------------------------------------------------------------------------
# Wrapper
# ----------------------------------------------------------------------------
def calibrate_network_forward(x_nchw, p, layers, channels):
    """x_nchw: (N, 3, H, W) float32 (PyTorch layout). Returns delta (N, 3, H, W)."""
    N, cin, H, W = x_nchw.shape
    assert cin == 3 and channels >= 3
    L = H * W
    rows = 2 * channels                        # two images stacked on sublanes
    n_pad = N + (N % 2)                        # pair up images; pad odd batches
    pairs = n_pad // 2

    # (N,3,H,W) -> (pairs, 2C, H*W): spatial on lanes, 3->C channel rows padded with 0.
    x = x_nchw.reshape(N, 3, L).astype(jnp.float32)
    x = jnp.pad(x, ((0, n_pad - N), (0, channels - 3), (0, 0)))
    x = x.reshape(pairs, rows, L)

    masks = _boundary_masks(H, W, rows)

    def const_spec(a):                         # resident operand (weights / masks)
        nd = a.ndim
        return pl.BlockSpec(a.shape, lambda i, _n=nd: (0,) * _n)

    kernel = functools.partial(_calibrate_kernel, H=H, W=W, layers=layers, rows=rows)

    out = pl.pallas_call(
        kernel,
        out_shape=jax.ShapeDtypeStruct((pairs, rows, L), jnp.float32),
        grid=(pairs,),
        in_specs=[
            pl.BlockSpec((1, rows, L), lambda i: (i, 0, 0)),
            const_spec(masks),
            const_spec(p["in_w"]), const_spec(p["in_b"]),
            const_spec(p["c1_w"]), const_spec(p["c1_b"]),
            const_spec(p["c2_w"]), const_spec(p["c2_b"]),
            const_spec(p["out_w"]), const_spec(p["out_b"]),
        ],
        out_specs=pl.BlockSpec((1, rows, L), lambda i: (i, 0, 0)),
        compiler_params=pltpu.CompilerParams(
            dimension_semantics=("parallel",),
            vmem_limit_bytes=32 * 1024 * 1024),
    )(x, masks,
      p["in_w"], p["in_b"], p["c1_w"], p["c1_b"],
      p["c2_w"], p["c2_b"], p["out_w"], p["out_b"])

    out = out.reshape(n_pad, channels, L)[:N, :3, :]   # strip pad rows / pad batch
    return out.reshape(N, 3, H, W)


# ----------------------------------------------------------------------------
# Parameter construction (PyTorch-equivalent raw params, unfolded)
# ----------------------------------------------------------------------------
def init_params(key, channels):
    C = channels
    ks = jax.random.split(key, 11)

    def conv_w(k, cout, cin):
        return 0.1 * jax.random.normal(k, (cout, cin, 3, 3), jnp.float32)

    def conv_b(k, cout):
        return 0.1 * jax.random.normal(k, (cout,), jnp.float32)

    def bn(k, c):
        k1, k2, k3, k4 = jax.random.split(k, 4)
        return (1.0 + 0.1 * jax.random.normal(k1, (c,), jnp.float32),      # gamma
                0.1 * jax.random.normal(k2, (c,), jnp.float32),            # beta
                0.1 * jax.random.normal(k3, (c,), jnp.float32),            # running mean
                jnp.abs(jax.random.normal(k4, (c,), jnp.float32)) + 0.5)   # running var

    return {
        "in_w": conv_w(ks[0], C, 3), "in_b": conv_b(ks[1], C), "in_bn": bn(ks[2], C),
        "c1_w": conv_w(ks[3], C, C), "c1_b": conv_b(ks[4], C), "c1_bn": bn(ks[5], C),
        "c2_w": conv_w(ks[6], C, C), "c2_b": conv_b(ks[7], C), "c2_bn": bn(ks[8], C),
        "out_w": conv_w(ks[9], 3, C), "out_b": conv_b(ks[10], 3),
    }


# ----------------------------------------------------------------------------
# Pure-JAX reference (unfolded BN, literal module math) for validation
# ----------------------------------------------------------------------------
def _ref_conv(x, w, b):
    y = jax.lax.conv_general_dilated(
        x, w, window_strides=(1, 1), padding="SAME",
        dimension_numbers=("NCHW", "OIHW", "NCHW"),
        precision=jax.lax.Precision.HIGHEST)
    return y + b.reshape(1, -1, 1, 1)


def _ref_bn(y, bn, eps=1e-5):
    gamma, beta, mean, var = (a.reshape(1, -1, 1, 1) for a in bn)
    return gamma * (y - mean) / jnp.sqrt(var + eps) + beta


def reference_forward(x, raw, layers):
    fea = jnp.maximum(_ref_bn(_ref_conv(x, raw["in_w"], raw["in_b"]), raw["in_bn"]), 0.0)
    for _ in range(layers):
        y = jnp.maximum(_ref_bn(_ref_conv(fea, raw["c1_w"], raw["c1_b"]), raw["c1_bn"]), 0.0)
        y = jnp.maximum(_ref_bn(_ref_conv(y, raw["c2_w"], raw["c2_b"]), raw["c2_bn"]), 0.0)
        fea = fea + y
    out = jax.nn.sigmoid(_ref_conv(fea, raw["out_w"], raw["out_b"]))
    return x - out


if __name__ == "__main__":
    layers, channels = 3, 4
    N, H, W = 2, 16, 16

    key = jax.random.PRNGKey(0)
    k_x, k_p = jax.random.split(key)
    x = jax.random.normal(k_x, (N, 3, H, W), jnp.float32)   # NCHW, like PyTorch
    raw = init_params(k_p, channels)
    packed = pack_params(raw, channels)

    delta = jax.block_until_ready(
        calibrate_network_forward(x, packed, layers, channels))
    ref = jax.block_until_ready(reference_forward(x, raw, layers))

    assert delta.shape == (N, 3, H, W) and delta.dtype == jnp.float32
    max_err = float(jnp.max(jnp.abs(delta - ref)))
    assert max_err < 5e-3, max_err
    print("KERNEL_OK")
</pallas_src>

<mosaic_0001>
module attributes {stable_mosaic.version = 11 : i64} {
  func.func @_calibrate_kernel(%arg0: i32, %arg1: memref<1x8x256xf32, #tpu.memory_space<vmem>>, %arg2: memref<9x8x256xf32, #tpu.memory_space<vmem>>, %arg3: memref<9x8x8xf32, #tpu.memory_space<vmem>>, %arg4: memref<8x1xf32, #tpu.memory_space<vmem>>, %arg5: memref<9x8x8xf32, #tpu.memory_space<vmem>>, %arg6: memref<8x1xf32, #tpu.memory_space<vmem>>, %arg7: memref<9x8x8xf32, #tpu.memory_space<vmem>>, %arg8: memref<8x1xf32, #tpu.memory_space<vmem>>, %arg9: memref<9x8x8xf32, #tpu.memory_space<vmem>>, %arg10: memref<8x1xf32, #tpu.memory_space<vmem>>, %arg11: memref<1x8x256xf32, #tpu.memory_space<vmem>>) attributes {dimension_semantics = [#tpu.dimension_semantics<parallel>], iteration_bounds = array<i64: 1>, scalar_prefetch = 0 : i64, scratch_operands = 0 : i64, tpu.core_type = #tpu.core_type<tc>, window_params = [{transform_indices = @transform_0, window_bounds = array<i64: 1, 8, 256>}, {pipeline_mode = #tpu.pipeline_mode<synchronous>, transform_indices = @transform_1, window_bounds = array<i64: 9, 8, 256>}, {pipeline_mode = #tpu.pipeline_mode<synchronous>, transform_indices = @transform_2, window_bounds = array<i64: 9, 8, 8>}, {pipeline_mode = #tpu.pipeline_mode<synchronous>, transform_indices = @transform_3, window_bounds = array<i64: 8, 1>}, {pipeline_mode = #tpu.pipeline_mode<synchronous>, transform_indices = @transform_4, window_bounds = array<i64: 9, 8, 8>}, {pipeline_mode = #tpu.pipeline_mode<synchronous>, transform_indices = @transform_5, window_bounds = array<i64: 8, 1>}, {pipeline_mode = #tpu.pipeline_mode<synchronous>, transform_indices = @transform_6, window_bounds = array<i64: 9, 8, 8>}, {pipeline_mode = #tpu.pipeline_mode<synchronous>, transform_indices = @transform_7, window_bounds = array<i64: 8, 1>}, {pipeline_mode = #tpu.pipeline_mode<synchronous>, transform_indices = @transform_8, window_bounds = array<i64: 9, 8, 8>}, {pipeline_mode = #tpu.pipeline_mode<synchronous>, transform_indices = @transform_9, window_bounds = array<i64: 8, 1>}, {transform_indices = @transform_10, window_bounds = array<i64: 1, 8, 256>}]} {
    %c0 = arith.constant 0 : index
    %c0_0 = arith.constant 0 : index
    %c0_1 = arith.constant 0 : index
    %0 = vector.load %arg1[%c0, %c0_0, %c0_1] : memref<1x8x256xf32, #tpu.memory_space<vmem>>, vector<1x8x256xf32>
    %1 = vector.shape_cast %0 : vector<1x8x256xf32> to vector<8x256xf32>
    %c0_2 = arith.constant 0 : index
    %c0_3 = arith.constant 0 : index
    %2 = vector.load %arg4[%c0_2, %c0_3] : memref<8x1xf32, #tpu.memory_space<vmem>>, vector<8x1xf32>
    %3 = vector.shape_cast %2 : vector<8x1xf32> to vector<8x1xf32>
    %4 = vector.broadcast %3 : vector<8x1xf32> to vector<8x256xf32>
    %c0_4 = arith.constant 0 : index
    %c0_5 = arith.constant 0 : index
    %5 = vector.load %arg6[%c0_4, %c0_5] : memref<8x1xf32, #tpu.memory_space<vmem>>, vector<8x1xf32>
    %6 = vector.shape_cast %5 : vector<8x1xf32> to vector<8x1xf32>
    %7 = vector.broadcast %6 : vector<8x1xf32> to vector<8x256xf32>
    %c0_6 = arith.constant 0 : index
    %c0_7 = arith.constant 0 : index
    %8 = vector.load %arg8[%c0_6, %c0_7] : memref<8x1xf32, #tpu.memory_space<vmem>>, vector<8x1xf32>
    %9 = vector.shape_cast %8 : vector<8x1xf32> to vector<8x1xf32>
    %10 = vector.broadcast %9 : vector<8x1xf32> to vector<8x256xf32>
    %c0_8 = arith.constant 0 : index
    %c0_9 = arith.constant 0 : index
    %11 = vector.load %arg10[%c0_8, %c0_9] : memref<8x1xf32, #tpu.memory_space<vmem>>, vector<8x1xf32>
    %12 = vector.shape_cast %11 : vector<8x1xf32> to vector<8x1xf32>
    %13 = vector.broadcast %12 : vector<8x1xf32> to vector<8x256xf32>
    %c17_i32 = arith.constant 17 : i32
    %14 = tpu.dynamic_rotate %1 by %c17_i32 dim 1 : vector<8x256xf32>, i32 -> vector<8x256xf32>
    %c0_10 = arith.constant 0 : index
    %c0_11 = arith.constant 0 : index
    %c0_12 = arith.constant 0 : index
    %15 = vector.load %arg2[%c0_10, %c0_11, %c0_12] : memref<9x8x256xf32, #tpu.memory_space<vmem>>, vector<1x8x256xf32>
    %16 = vector.shape_cast %15 : vector<1x8x256xf32> to vector<8x256xf32>
    %17 = arith.mulf %14, %16 : vector<8x256xf32>
    %c0_13 = arith.constant 0 : index
    %c0_14 = arith.constant 0 : index
    %c0_15 = arith.constant 0 : index
    %18 = vector.load %arg3[%c0_13, %c0_14, %c0_15] : memref<9x8x8xf32, #tpu.memory_space<vmem>>, vector<1x8x8xf32>
    %19 = vector.shape_cast %18 : vector<1x8x8xf32> to vector<8x8xf32>
    %cst = arith.constant dense<0.000000e+00> : vector<8x256xf32>
    %20 = tpu.matmul %19, %17, %cst {dimension_numbers = #tpu.dot_dimension_numbers<[1], [0], [0], [1], [0, 0, 1, 1], [], []>} : vector<8x8xf32>, vector<8x256xf32>, vector<8x256xf32> -> vector<8x256xf32>
    %21 = arith.addf %4, %20 : vector<8x256xf32>
    %c16_i32 = arith.constant 16 : i32
    %22 = tpu.dynamic_rotate %1 by %c16_i32 dim 1 : vector<8x256xf32>, i32 -> vector<8x256xf32>
    %c1 = arith.constant 1 : index
    %c0_16 = arith.constant 0 : index
    %c0_17 = arith.constant 0 : index
    %23 = vector.load %arg2[%c1, %c0_16, %c0_17] : memref<9x8x256xf32, #tpu.memory_space<vmem>>, vector<1x8x256xf32>
    %24 = vector.shape_cast %23 : vector<1x8x256xf32> to vector<8x256xf32>
    %25 = arith.mulf %22, %24 : vector<8x256xf32>
    %c1_18 = arith.constant 1 : index
    %c0_19 = arith.constant 0 : index
    %c0_20 = arith.constant 0 : index
    %26 = vector.load %arg3[%c1_18, %c0_19, %c0_20] : memref<9x8x8xf32, #tpu.memory_space<vmem>>, vector<1x8x8xf32>
    %27 = vector.shape_cast %26 : vector<1x8x8xf32> to vector<8x8xf32>
    %cst_21 = arith.constant dense<0.000000e+00> : vector<8x256xf32>
    %28 = tpu.matmul %27, %25, %cst_21 {dimension_numbers = #tpu.dot_dimension_numbers<[1], [0], [0], [1], [0, 0, 1, 1], [], []>} : vector<8x8xf32>, vector<8x256xf32>, vector<8x256xf32> -> vector<8x256xf32>
    %29 = arith.addf %21, %28 : vector<8x256xf32>
    %c15_i32 = arith.constant 15 : i32
    %30 = tpu.dynamic_rotate %1 by %c15_i32 dim 1 : vector<8x256xf32>, i32 -> vector<8x256xf32>
    %c2 = arith.constant 2 : index
    %c0_22 = arith.constant 0 : index
    %c0_23 = arith.constant 0 : index
    %31 = vector.load %arg2[%c2, %c0_22, %c0_23] : memref<9x8x256xf32, #tpu.memory_space<vmem>>, vector<1x8x256xf32>
    %32 = vector.shape_cast %31 : vector<1x8x256xf32> to vector<8x256xf32>
    %33 = arith.mulf %30, %32 : vector<8x256xf32>
    %c2_24 = arith.constant 2 : index
    %c0_25 = arith.constant 0 : index
    %c0_26 = arith.constant 0 : index
    %34 = vector.load %arg3[%c2_24, %c0_25, %c0_26] : memref<9x8x8xf32, #tpu.memory_space<vmem>>, vector<1x8x8xf32>
    %35 = vector.shape_cast %34 : vector<1x8x8xf32> to vector<8x8xf32>
    %cst_27 = arith.constant dense<0.000000e+00> : vector<8x256xf32>
    %36 = tpu.matmul %35, %33, %cst_27 {dimension_numbers = #tpu.dot_dimension_numbers<[1], [0], [0], [1], [0, 0, 1, 1], [], []>} : vector<8x8xf32>, vector<8x256xf32>, vector<8x256xf32> -> vector<8x256xf32>
    %37 = arith.addf %29, %36 : vector<8x256xf32>
    %c1_i32 = arith.constant 1 : i32
    %38 = tpu.dynamic_rotate %1 by %c1_i32 dim 1 : vector<8x256xf32>, i32 -> vector<8x256xf32>
    %c3 = arith.constant 3 : index
    %c0_28 = arith.constant 0 : index
    %c0_29 = arith.constant 0 : index
    %39 = vector.load %arg2[%c3, %c0_28, %c0_29] : memref<9x8x256xf32, #tpu.memory_space<vmem>>, vector<1x8x256xf32>
    %40 = vector.shape_cast %39 : vector<1x8x256xf32> to vector<8x256xf32>
    %41 = arith.mulf %38, %40 : vector<8x256xf32>
    %c3_30 = arith.constant 3 : index
    %c0_31 = arith.constant 0 : index
    %c0_32 = arith.constant 0 : index
    %42 = vector.load %arg3[%c3_30, %c0_31, %c0_32] : memref<9x8x8xf32, #tpu.memory_space<vmem>>, vector<1x8x8xf32>
    %43 = vector.shape_cast %42 : vector<1x8x8xf32> to vector<8x8xf32>
    %cst_33 = arith.constant dense<0.000000e+00> : vector<8x256xf32>
    %44 = tpu.matmul %43, %41, %cst_33 {dimension_numbers = #tpu.dot_dimension_numbers<[1], [0], [0], [1], [0, 0, 1, 1], [], []>} : vector<8x8xf32>, vector<8x256xf32>, vector<8x256xf32> -> vector<8x256xf32>
    %45 = arith.addf %37, %44 : vector<8x256xf32>
    %c4 = arith.constant 4 : index
    %c0_34 = arith.constant 0 : index
    %c0_35 = arith.constant 0 : index
    %46 = vector.load %arg3[%c4, %c0_34, %c0_35] : memref<9x8x8xf32, #tpu.memory_space<vmem>>, vector<1x8x8xf32>
    %47 = vector.shape_cast %46 : vector<1x8x8xf32> to vector<8x8xf32>
    %cst_36 = arith.constant dense<0.000000e+00> : vector<8x256xf32>
    %48 = tpu.matmul %47, %1, %cst_36 {dimension_numbers = #tpu.dot_dimension_numbers<[1], [0], [0], [1], [0, 0, 1, 1], [], []>} : vector<8x8xf32>, vector<8x256xf32>, vector<8x256xf32> -> vector<8x256xf32>
    %49 = arith.addf %45, %48 : vector<8x256xf32>
    %c255_i32 = arith.constant 255 : i32
    %50 = tpu.dynamic_rotate %1 by %c255_i32 dim 1 : vector<8x256xf32>, i32 -> vector<8x256xf32>
    %c5 = arith.constant 5 : index
    %c0_37 = arith.constant 0 : index
    %c0_38 = arith.constant 0 : index
    %51 = vector.load %arg2[%c5, %c0_37, %c0_38] : memref<9x8x256xf32, #tpu.memory_space<vmem>>, vector<1x8x256xf32>
    %52 = vector.shape_cast %51 : vector<1x8x256xf32> to vector<8x256xf32>
    %53 = arith.mulf %50, %52 : vector<8x256xf32>
    %c5_39 = arith.constant 5 : index
    %c0_40 = arith.constant 0 : index
    %c0_41 = arith.constant 0 : index
    %54 = vector.load %arg3[%c5_39, %c0_40, %c0_41] : memref<9x8x8xf32, #tpu.memory_space<vmem>>, vector<1x8x8xf32>
    %55 = vector.shape_cast %54 : vector<1x8x8xf32> to vector<8x8xf32>
    %cst_42 = arith.constant dense<0.000000e+00> : vector<8x256xf32>
    %56 = tpu.matmul %55, %53, %cst_42 {dimension_numbers = #tpu.dot_dimension_numbers<[1], [0], [0], [1], [0, 0, 1, 1], [], []>} : vector<8x8xf32>, vector<8x256xf32>, vector<8x256xf32> -> vector<8x256xf32>
    %57 = arith.addf %49, %56 : vector<8x256xf32>
    %c241_i32 = arith.constant 241 : i32
    %58 = tpu.dynamic_rotate %1 by %c241_i32 dim 1 : vector<8x256xf32>, i32 -> vector<8x256xf32>
    %c6 = arith.constant 6 : index
    %c0_43 = arith.constant 0 : index
    %c0_44 = arith.constant 0 : index
    %59 = vector.load %arg2[%c6, %c0_43, %c0_44] : memref<9x8x256xf32, #tpu.memory_space<vmem>>, vector<1x8x256xf32>
    %60 = vector.shape_cast %59 : vector<1x8x256xf32> to vector<8x256xf32>
    %61 = arith.mulf %58, %60 : vector<8x256xf32>
    %c6_45 = arith.constant 6 : index
    %c0_46 = arith.constant 0 : index
    %c0_47 = arith.constant 0 : index
    %62 = vector.load %arg3[%c6_45, %c0_46, %c0_47] : memref<9x8x8xf32, #tpu.memory_space<vmem>>, vector<1x8x8xf32>
    %63 = vector.shape_cast %62 : vector<1x8x8xf32> to vector<8x8xf32>
    %cst_48 = arith.constant dense<0.000000e+00> : vector<8x256xf32>
    %64 = tpu.matmul %63, %61, %cst_48 {dimension_numbers = #tpu.dot_dimension_numbers<[1], [0], [0], [1], [0, 0, 1, 1], [], []>} : vector<8x8xf32>, vector<8x256xf32>, vector<8x256xf32> -> vector<8x256xf32>
    %65 = arith.addf %57, %64 : vector<8x256xf32>
    %c240_i32 = arith.constant 240 : i32
    %66 = tpu.dynamic_rotate %1 by %c240_i32 dim 1 : vector<8x256xf32>, i32 -> vector<8x256xf32>
    %c7 = arith.constant 7 : index
    %c0_49 = arith.constant 0 : index
    %c0_50 = arith.constant 0 : index
    %67 = vector.load %arg2[%c7, %c0_49, %c0_50] : memref<9x8x256xf32, #tpu.memory_space<vmem>>, vector<1x8x256xf32>
    %68 = vector.shape_cast %67 : vector<1x8x256xf32> to vector<8x256xf32>
    %69 = arith.mulf %66, %68 : vector<8x256xf32>
    %c7_51 = arith.constant 7 : index
    %c0_52 = arith.constant 0 : index
    %c0_53 = arith.constant 0 : index
    %70 = vector.load %arg3[%c7_51, %c0_52, %c0_53] : memref<9x8x8xf32, #tpu.memory_space<vmem>>, vector<1x8x8xf32>
    %71 = vector.shape_cast %70 : vector<1x8x8xf32> to vector<8x8xf32>
    %cst_54 = arith.constant dense<0.000000e+00> : vector<8x256xf32>
    %72 = tpu.matmul %71, %69, %cst_54 {dimension_numbers = #tpu.dot_dimension_numbers<[1], [0], [0], [1], [0, 0, 1, 1], [], []>} : vector<8x8xf32>, vector<8x256xf32>, vector<8x256xf32> -> vector<8x256xf32>
    %73 = arith.addf %65, %72 : vector<8x256xf32>
    %c239_i32 = arith.constant 239 : i32
    %74 = tpu.dynamic_rotate %1 by %c239_i32 dim 1 : vector<8x256xf32>, i32 -> vector<8x256xf32>
    %c8 = arith.constant 8 : index
    %c0_55 = arith.constant 0 : index
    %c0_56 = arith.constant 0 : index
    %75 = vector.load %arg2[%c8, %c0_55, %c0_56] : memref<9x8x256xf32, #tpu.memory_space<vmem>>, vector<1x8x256xf32>
    %76 = vector.shape_cast %75 : vector<1x8x256xf32> to vector<8x256xf32>
    %77 = arith.mulf %74, %76 : vector<8x256xf32>
    %c8_57 = arith.constant 8 : index
    %c0_58 = arith.constant 0 : index
    %c0_59 = arith.constant 0 : index
    %78 = vector.load %arg3[%c8_57, %c0_58, %c0_59] : memref<9x8x8xf32, #tpu.memory_space<vmem>>, vector<1x8x8xf32>
    %79 = vector.shape_cast %78 : vector<1x8x8xf32> to vector<8x8xf32>
    %cst_60 = arith.constant dense<0.000000e+00> : vector<8x256xf32>
    %80 = tpu.matmul %79, %77, %cst_60 {dimension_numbers = #tpu.dot_dimension_numbers<[1], [0], [0], [1], [0, 0, 1, 1], [], []>} : vector<8x8xf32>, vector<8x256xf32>, vector<8x256xf32> -> vector<8x256xf32>
    %81 = arith.addf %73, %80 : vector<8x256xf32>
    %cst_61 = arith.constant 0.000000e+00 : f32
    %82 = vector.broadcast %cst_61 : f32 to vector<8x256xf32>
    %83 = arith.maximumf %81, %82 : vector<8x256xf32>
    %c17_i32_62 = arith.constant 17 : i32
    %84 = tpu.dynamic_rotate %83 by %c17_i32_62 dim 1 : vector<8x256xf32>, i32 -> vector<8x256xf32>
    %c0_63 = arith.constant 0 : index
    %c0_64 = arith.constant 0 : index
    %c0_65 = arith.constant 0 : index
    %85 = vector.load %arg2[%c0_63, %c0_64, %c0_65] : memref<9x8x256xf32, #tpu.memory_space<vmem>>, vector<1x8x256xf32>
    %86 = vector.shape_cast %85 : vector<1x8x256xf32> to vector<8x256xf32>
    %87 = arith.mulf %84, %86 : vector<8x256xf32>
    %c0_66 = arith.constant 0 : index
    %c0_67 = arith.constant 0 : index
    %c0_68 = arith.constant 0 : index
    %88 = vector.load %arg5[%c0_66, %c0_67, %c0_68] : memref<9x8x8xf32, #tpu.memory_space<vmem>>, vector<1x8x8xf32>
    %89 = vector.shape_cast %88 : vector<1x8x8xf32> to vector<8x8xf32>
    %cst_69 = arith.constant dense<0.000000e+00> : vector<8x256xf32>
    %90 = tpu.matmul %89, %87, %cst_69 {dimension_numbers = #tpu.dot_dimension_numbers<[1], [0], [0], [1], [0, 0, 1, 1], [], []>} : vector<8x8xf32>, vector<8x256xf32>, vector<8x256xf32> -> vector<8x256xf32>
    %91 = arith.addf %7, %90 : vector<8x256xf32>
    %c16_i32_70 = arith.constant 16 : i32
    %92 = tpu.dynamic_rotate %83 by %c16_i32_70 dim 1 : vector<8x256xf32>, i32 -> vector<8x256xf32>
    %c1_71 = arith.constant 1 : index
    %c0_72 = arith.constant 0 : index
    %c0_73 = arith.constant 0 : index
    %93 = vector.load %arg2[%c1_71, %c0_72, %c0_73] : memref<9x8x256xf32, #tpu.memory_space<vmem>>, vector<1x8x256xf32>
    %94 = vector.shape_cast %93 : vector<1x8x256xf32> to vector<8x256xf32>
    %95 = arith.mulf %92, %94 : vector<8x256xf32>
    %c1_74 = arith.constant 1 : index
    %c0_75 = arith.constant 0 : index
    %c0_76 = arith.constant 0 : index
    %96 = vector.load %arg5[%c1_74, %c0_75, %c0_76] : memref<9x8x8xf32, #tpu.memory_space<vmem>>, vector<1x8x8xf32>
    %97 = vector.shape_cast %96 : vector<1x8x8xf32> to vector<8x8xf32>
    %cst_77 = arith.constant dense<0.000000e+00> : vector<8x256xf32>
    %98 = tpu.matmul %97, %95, %cst_77 {dimension_numbers = #tpu.dot_dimension_numbers<[1], [0], [0], [1], [0, 0, 1, 1], [], []>} : vector<8x8xf32>, vector<8x256xf32>, vector<8x256xf32> -> vector<8x256xf32>
    %99 = arith.addf %91, %98 : vector<8x256xf32>
    %c15_i32_78 = arith.constant 15 : i32
    %100 = tpu.dynamic_rotate %83 by %c15_i32_78 dim 1 : vector<8x256xf32>, i32 -> vector<8x256xf32>
    %c2_79 = arith.constant 2 : index
    %c0_80 = arith.constant 0 : index
    %c0_81 = arith.constant 0 : index
    %101 = vector.load %arg2[%c2_79, %c0_80, %c0_81] : memref<9x8x256xf32, #tpu.memory_space<vmem>>, vector<1x8x256xf32>
    %102 = vector.shape_cast %101 : vector<1x8x256xf32> to vector<8x256xf32>
    %103 = arith.mulf %100, %102 : vector<8x256xf32>
    %c2_82 = arith.constant 2 : index
    %c0_83 = arith.constant 0 : index
    %c0_84 = arith.constant 0 : index
    %104 = vector.load %arg5[%c2_82, %c0_83, %c0_84] : memref<9x8x8xf32, #tpu.memory_space<vmem>>, vector<1x8x8xf32>
    %105 = vector.shape_cast %104 : vector<1x8x8xf32> to vector<8x8xf32>
    %cst_85 = arith.constant dense<0.000000e+00> : vector<8x256xf32>
    %106 = tpu.matmul %105, %103, %cst_85 {dimension_numbers = #tpu.dot_dimension_numbers<[1], [0], [0], [1], [0, 0, 1, 1], [], []>} : vector<8x8xf32>, vector<8x256xf32>, vector<8x256xf32> -> vector<8x256xf32>
    %107 = arith.addf %99, %106 : vector<8x256xf32>
    %c1_i32_86 = arith.constant 1 : i32
    %108 = tpu.dynamic_rotate %83 by %c1_i32_86 dim 1 : vector<8x256xf32>, i32 -> vector<8x256xf32>
    %c3_87 = arith.constant 3 : index
    %c0_88 = arith.constant 0 : index
    %c0_89 = arith.constant 0 : index
    %109 = vector.load %arg2[%c3_87, %c0_88, %c0_89] : memref<9x8x256xf32, #tpu.memory_space<vmem>>, vector<1x8x256xf32>
    %110 = vector.shape_cast %109 : vector<1x8x256xf32> to vector<8x256xf32>
    %111 = arith.mulf %108, %110 : vector<8x256xf32>
    %c3_90 = arith.constant 3 : index
    %c0_91 = arith.constant 0 : index
    %c0_92 = arith.constant 0 : index
    %112 = vector.load %arg5[%c3_90, %c0_91, %c0_92] : memref<9x8x8xf32, #tpu.memory_space<vmem>>, vector<1x8x8xf32>
    %113 = vector.shape_cast %112 : vector<1x8x8xf32> to vector<8x8xf32>
    %cst_93 = arith.constant dense<0.000000e+00> : vector<8x256xf32>
    %114 = tpu.matmul %113, %111, %cst_93 {dimension_numbers = #tpu.dot_dimension_numbers<[1], [0], [0], [1], [0, 0, 1, 1], [], []>} : vector<8x8xf32>, vector<8x256xf32>, vector<8x256xf32> -> vector<8x256xf32>
    %115 = arith.addf %107, %114 : vector<8x256xf32>
    %c4_94 = arith.constant 4 : index
    %c0_95 = arith.constant 0 : index
    %c0_96 = arith.constant 0 : index
    %116 = vector.load %arg5[%c4_94, %c0_95, %c0_96] : memref<9x8x8xf32, #tpu.memory_space<vmem>>, vector<1x8x8xf32>
    %117 = vector.shape_cast %116 : vector<1x8x8xf32> to vector<8x8xf32>
    %cst_97 = arith.constant dense<0.000000e+00> : vector<8x256xf32>
    %118 = tpu.matmul %117, %83, %cst_97 {dimension_numbers = #tpu.dot_dimension_numbers<[1], [0], [0], [1], [0, 0, 1, 1], [], []>} : vector<8x8xf32>, vector<8x256xf32>, vector<8x256xf32> -> vector<8x256xf32>
    %119 = arith.addf %115, %118 : vector<8x256xf32>
    %c255_i32_98 = arith.constant 255 : i32
    %120 = tpu.dynamic_rotate %83 by %c255_i32_98 dim 1 : vector<8x256xf32>, i32 -> vector<8x256xf32>
    %c5_99 = arith.constant 5 : index
    %c0_100 = arith.constant 0 : index
    %c0_101 = arith.constant 0 : index
    %121 = vector.load %arg2[%c5_99, %c0_100, %c0_101] : memref<9x8x256xf32, #tpu.memory_space<vmem>>, vector<1x8x256xf32>
    %122 = vector.shape_cast %121 : vector<1x8x256xf32> to vector<8x256xf32>
    %123 = arith.mulf %120, %122 : vector<8x256xf32>
    %c5_102 = arith.constant 5 : index
    %c0_103 = arith.constant 0 : index
    %c0_104 = arith.constant 0 : index
    %124 = vector.load %arg5[%c5_102, %c0_103, %c0_104] : memref<9x8x8xf32, #tpu.memory_space<vmem>>, vector<1x8x8xf32>
    %125 = vector.shape_cast %124 : vector<1x8x8xf32> to vector<8x8xf32>
    %cst_105 = arith.constant dense<0.000000e+00> : vector<8x256xf32>
    %126 = tpu.matmul %125, %123, %cst_105 {dimension_numbers = #tpu.dot_dimension_numbers<[1], [0], [0], [1], [0, 0, 1, 1], [], []>} : vector<8x8xf32>, vector<8x256xf32>, vector<8x256xf32> -> vector<8x256xf32>
    %127 = arith.addf %119, %126 : vector<8x256xf32>
    %c241_i32_106 = arith.constant 241 : i32
    %128 = tpu.dynamic_rotate %83 by %c241_i32_106 dim 1 : vector<8x256xf32>, i32 -> vector<8x256xf32>
    %c6_107 = arith.constant 6 : index
    %c0_108 = arith.constant 0 : index
    %c0_109 = arith.constant 0 : index
    %129 = vector.load %arg2[%c6_107, %c0_108, %c0_109] : memref<9x8x256xf32, #tpu.memory_space<vmem>>, vector<1x8x256xf32>
    %130 = vector.shape_cast %129 : vector<1x8x256xf32> to vector<8x256xf32>
    %131 = arith.mulf %128, %130 : vector<8x256xf32>
    %c6_110 = arith.constant 6 : index
    %c0_111 = arith.constant 0 : index
    %c0_112 = arith.constant 0 : index
    %132 = vector.load %arg5[%c6_110, %c0_111, %c0_112] : memref<9x8x8xf32, #tpu.memory_space<vmem>>, vector<1x8x8xf32>
    %133 = vector.shape_cast %132 : vector<1x8x8xf32> to vector<8x8xf32>
    %cst_113 = arith.constant dense<0.000000e+00> : vector<8x256xf32>
    %134 = tpu.matmul %133, %131, %cst_113 {dimension_numbers = #tpu.dot_dimension_numbers<[1], [0], [0], [1], [0, 0, 1, 1], [], []>} : vector<8x8xf32>, vector<8x256xf32>, vector<8x256xf32> -> vector<8x256xf32>
    %135 = arith.addf %127, %134 : vector<8x256xf32>
    %c240_i32_114 = arith.constant 240 : i32
    %136 = tpu.dynamic_rotate %83 by %c240_i32_114 dim 1 : vector<8x256xf32>, i32 -> vector<8x256xf32>
    %c7_115 = arith.constant 7 : index
    %c0_116 = arith.constant 0 : index
    %c0_117 = arith.constant 0 : index
    %137 = vector.load %arg2[%c7_115, %c0_116, %c0_117] : memref<9x8x256xf32, #tpu.memory_space<vmem>>, vector<1x8x256xf32>
    %138 = vector.shape_cast %137 : vector<1x8x256xf32> to vector<8x256xf32>
    %139 = arith.mulf %136, %138 : vector<8x256xf32>
    %c7_118 = arith.constant 7 : index
    %c0_119 = arith.constant 0 : index
    %c0_120 = arith.constant 0 : index
    %140 = vector.load %arg5[%c7_118, %c0_119, %c0_120] : memref<9x8x8xf32, #tpu.memory_space<vmem>>, vector<1x8x8xf32>
    %141 = vector.shape_cast %140 : vector<1x8x8xf32> to vector<8x8xf32>
    %cst_121 = arith.constant dense<0.000000e+00> : vector<8x256xf32>
    %142 = tpu.matmul %141, %139, %cst_121 {dimension_numbers = #tpu.dot_dimension_numbers<[1], [0], [0], [1], [0, 0, 1, 1], [], []>} : vector<8x8xf32>, vector<8x256xf32>, vector<8x256xf32> -> vector<8x256xf32>
    %143 = arith.addf %135, %142 : vector<8x256xf32>
    %c239_i32_122 = arith.constant 239 : i32
    %144 = tpu.dynamic_rotate %83 by %c239_i32_122 dim 1 : vector<8x256xf32>, i32 -> vector<8x256xf32>
    %c8_123 = arith.constant 8 : index
    %c0_124 = arith.constant 0 : index
    %c0_125 = arith.constant 0 : index
    %145 = vector.load %arg2[%c8_123, %c0_124, %c0_125] : memref<9x8x256xf32, #tpu.memory_space<vmem>>, vector<1x8x256xf32>
    %146 = vector.shape_cast %145 : vector<1x8x256xf32> to vector<8x256xf32>
    %147 = arith.mulf %144, %146 : vector<8x256xf32>
    %c8_126 = arith.constant 8 : index
    %c0_127 = arith.constant 0 : index
    %c0_128 = arith.constant 0 : index
    %148 = vector.load %arg5[%c8_126, %c0_127, %c0_128] : memref<9x8x8xf32, #tpu.memory_space<vmem>>, vector<1x8x8xf32>
    %149 = vector.shape_cast %148 : vector<1x8x8xf32> to vector<8x8xf32>
    %cst_129 = arith.constant dense<0.000000e+00> : vector<8x256xf32>
    %150 = tpu.matmul %149, %147, %cst_129 {dimension_numbers = #tpu.dot_dimension_numbers<[1], [0], [0], [1], [0, 0, 1, 1], [], []>} : vector<8x8xf32>, vector<8x256xf32>, vector<8x256xf32> -> vector<8x256xf32>
    %151 = arith.addf %143, %150 : vector<8x256xf32>
    %cst_130 = arith.constant 0.000000e+00 : f32
    %152 = vector.broadcast %cst_130 : f32 to vector<8x256xf32>
    %153 = arith.maximumf %151, %152 : vector<8x256xf32>
    %c17_i32_131 = arith.constant 17 : i32
    %154 = tpu.dynamic_rotate %153 by %c17_i32_131 dim 1 : vector<8x256xf32>, i32 -> vector<8x256xf32>
    %c0_132 = arith.constant 0 : index
    %c0_133 = arith.constant 0 : index
    %c0_134 = arith.constant 0 : index
    %155 = vector.load %arg2[%c0_132, %c0_133, %c0_134] : memref<9x8x256xf32, #tpu.memory_space<vmem>>, vector<1x8x256xf32>
    %156 = vector.shape_cast %155 : vector<1x8x256xf32> to vector<8x256xf32>
    %157 = arith.mulf %154, %156 : vector<8x256xf32>
    %c0_135 = arith.constant 0 : index
    %c0_136 = arith.constant 0 : index
    %c0_137 = arith.constant 0 : index
    %158 = vector.load %arg7[%c0_135, %c0_136, %c0_137] : memref<9x8x8xf32, #tpu.memory_space<vmem>>, vector<1x8x8xf32>
    %159 = vector.shape_cast %158 : vector<1x8x8xf32> to vector<8x8xf32>
    %cst_138 = arith.constant dense<0.000000e+00> : vector<8x256xf32>
    %160 = tpu.matmul %159, %157, %cst_138 {dimension_numbers = #tpu.dot_dimension_numbers<[1], [0], [0], [1], [0, 0, 1, 1], [], []>} : vector<8x8xf32>, vector<8x256xf32>, vector<8x256xf32> -> vector<8x256xf32>
    %161 = arith.addf %10, %160 : vector<8x256xf32>
    %c16_i32_139 = arith.constant 16 : i32
    %162 = tpu.dynamic_rotate %153 by %c16_i32_139 dim 1 : vector<8x256xf32>, i32 -> vector<8x256xf32>
    %c1_140 = arith.constant 1 : index
    %c0_141 = arith.constant 0 : index
    %c0_142 = arith.constant 0 : index
    %163 = vector.load %arg2[%c1_140, %c0_141, %c0_142] : memref<9x8x256xf32, #tpu.memory_space<vmem>>, vector<1x8x256xf32>
    %164 = vector.shape_cast %163 : vector<1x8x256xf32> to vector<8x256xf32>
    %165 = arith.mulf %162, %164 : vector<8x256xf32>
    %c1_143 = arith.constant 1 : index
    %c0_144 = arith.constant 0 : index
    %c0_145 = arith.constant 0 : index
    %166 = vector.load %arg7[%c1_143, %c0_144, %c0_145] : memref<9x8x8xf32, #tpu.memory_space<vmem>>, vector<1x8x8xf32>
    %167 = vector.shape_cast %166 : vector<1x8x8xf32> to vector<8x8xf32>
    %cst_146 = arith.constant dense<0.000000e+00> : vector<8x256xf32>
    %168 = tpu.matmul %167, %165, %cst_146 {dimension_numbers = #tpu.dot_dimension_numbers<[1], [0], [0], [1], [0, 0, 1, 1], [], []>} : vector<8x8xf32>, vector<8x256xf32>, vector<8x256xf32> -> vector<8x256xf32>
    %169 = arith.addf %161, %168 : vector<8x256xf32>
    %c15_i32_147 = arith.constant 15 : i32
    %170 = tpu.dynamic_rotate %153 by %c15_i32_147 dim 1 : vector<8x256xf32>, i32 -> vector<8x256xf32>
    %c2_148 = arith.constant 2 : index
    %c0_149 = arith.constant 0 : index
    %c0_150 = arith.constant 0 : index
    %171 = vector.load %arg2[%c2_148, %c0_149, %c0_150] : memref<9x8x256xf32, #tpu.memory_space<vmem>>, vector<1x8x256xf32>
    %172 = vector.shape_cast %171 : vector<1x8x256xf32> to vector<8x256xf32>
    %173 = arith.mulf %170, %172 : vector<8x256xf32>
    %c2_151 = arith.constant 2 : index
    %c0_152 = arith.constant 0 : index
    %c0_153 = arith.constant 0 : index
    %174 = vector.load %arg7[%c2_151, %c0_152, %c0_153] : memref<9x8x8xf32, #tpu.memory_space<vmem>>, vector<1x8x8xf32>
    %175 = vector.shape_cast %174 : vector<1x8x8xf32> to vector<8x8xf32>
    %cst_154 = arith.constant dense<0.000000e+00> : vector<8x256xf32>
    %176 = tpu.matmul %175, %173, %cst_154 {dimension_numbers = #tpu.dot_dimension_numbers<[1], [0], [0], [1], [0, 0, 1, 1], [], []>} : vector<8x8xf32>, vector<8x256xf32>, vector<8x256xf32> -> vector<8x256xf32>
    %177 = arith.addf %169, %176 : vector<8x256xf32>
    %c1_i32_155 = arith.constant 1 : i32
    %178 = tpu.dynamic_rotate %153 by %c1_i32_155 dim 1 : vector<8x256xf32>, i32 -> vector<8x256xf32>
    %c3_156 = arith.constant 3 : index
    %c0_157 = arith.constant 0 : index
    %c0_158 = arith.constant 0 : index
    %179 = vector.load %arg2[%c3_156, %c0_157, %c0_158] : memref<9x8x256xf32, #tpu.memory_space<vmem>>, vector<1x8x256xf32>
    %180 = vector.shape_cast %179 : vector<1x8x256xf32> to vector<8x256xf32>
    %181 = arith.mulf %178, %180 : vector<8x256xf32>
    %c3_159 = arith.constant 3 : index
    %c0_160 = arith.constant 0 : index
    %c0_161 = arith.constant 0 : index
    %182 = vector.load %arg7[%c3_159, %c0_160, %c0_161] : memref<9x8x8xf32, #tpu.memory_space<vmem>>, vector<1x8x8xf32>
    %183 = vector.shape_cast %182 : vector<1x8x8xf32> to vector<8x8xf32>
    %cst_162 = arith.constant dense<0.000000e+00> : vector<8x256xf32>
    %184 = tpu.matmul %183, %181, %cst_162 {dimension_numbers = #tpu.dot_dimension_numbers<[1], [0], [0], [1], [0, 0, 1, 1], [], []>} : vector<8x8xf32>, vector<8x256xf32>, vector<8x256xf32> -> vector<8x256xf32>
    %185 = arith.addf %177, %184 : vector<8x256xf32>
    %c4_163 = arith.constant 4 : index
    %c0_164 = arith.constant 0 : index
    %c0_165 = arith.constant 0 : index
    %186 = vector.load %arg7[%c4_163, %c0_164, %c0_165] : memref<9x8x8xf32, #tpu.memory_space<vmem>>, vector<1x8x8xf32>
    %187 = vector.shape_cast %186 : vector<1x8x8xf32> to vector<8x8xf32>
    %cst_166 = arith.constant dense<0.000000e+00> : vector<8x256xf32>
    %188 = tpu.matmul %187, %153, %cst_166 {dimension_numbers = #tpu.dot_dimension_numbers<[1], [0], [0], [1], [0, 0, 1, 1], [], []>} : vector<8x8xf32>, vector<8x256xf32>, vector<8x256xf32> -> vector<8x256xf32>
    %189 = arith.addf %185, %188 : vector<8x256xf32>
    %c255_i32_167 = arith.constant 255 : i32
    %190 = tpu.dynamic_rotate %153 by %c255_i32_167 dim 1 : vector<8x256xf32>, i32 -> vector<8x256xf32>
    %c5_168 = arith.constant 5 : index
    %c0_169 = arith.constant 0 : index
    %c0_170 = arith.constant 0 : index
    %191 = vector.load %arg2[%c5_168, %c0_169, %c0_170] : memref<9x8x256xf32, #tpu.memory_space<vmem>>, vector<1x8x256xf32>
    %192 = vector.shape_cast %191 : vector<1x8x256xf32> to vector<8x256xf32>
    %193 = arith.mulf %190, %192 : vector<8x256xf32>
    %c5_171 = arith.constant 5 : index
    %c0_172 = arith.constant 0 : index
    %c0_173 = arith.constant 0 : index
    %194 = vector.load %arg7[%c5_171, %c0_172, %c0_173] : memref<9x8x8xf32, #tpu.memory_space<vmem>>, vector<1x8x8xf32>
    %195 = vector.shape_cast %194 : vector<1x8x8xf32> to vector<8x8xf32>
    %cst_174 = arith.constant dense<0.000000e+00> : vector<8x256xf32>
    %196 = tpu.matmul %195, %193, %cst_174 {dimension_numbers = #tpu.dot_dimension_numbers<[1], [0], [0], [1], [0, 0, 1, 1], [], []>} : vector<8x8xf32>, vector<8x256xf32>, vector<8x256xf32> -> vector<8x256xf32>
    %197 = arith.addf %189, %196 : vector<8x256xf32>
    %c241_i32_175 = arith.constant 241 : i32
    %198 = tpu.dynamic_rotate %153 by %c241_i32_175 dim 1 : vector<8x256xf32>, i32 -> vector<8x256xf32>
    %c6_176 = arith.constant 6 : index
    %c0_177 = arith.constant 0 : index
    %c0_178 = arith.constant 0 : index
    %199 = vector.load %arg2[%c6_176, %c0_177, %c0_178] : memref<9x8x256xf32, #tpu.memory_space<vmem>>, vector<1x8x256xf32>
    %200 = vector.shape_cast %199 : vector<1x8x256xf32> to vector<8x256xf32>
    %201 = arith.mulf %198, %200 : vector<8x256xf32>
    %c6_179 = arith.constant 6 : index
    %c0_180 = arith.constant 0 : index
    %c0_181 = arith.constant 0 : index
    %202 = vector.load %arg7[%c6_179, %c0_180, %c0_181] : memref<9x8x8xf32, #tpu.memory_space<vmem>>, vector<1x8x8xf32>
    %203 = vector.shape_cast %202 : vector<1x8x8xf32> to vector<8x8xf32>
    %cst_182 = arith.constant dense<0.000000e+00> : vector<8x256xf32>
    %204 = tpu.matmul %203, %201, %cst_182 {dimension_numbers = #tpu.dot_dimension_numbers<[1], [0], [0], [1], [0, 0, 1, 1], [], []>} : vector<8x8xf32>, vector<8x256xf32>, vector<8x256xf32> -> vector<8x256xf32>
    %205 = arith.addf %197, %204 : vector<8x256xf32>
    %c240_i32_183 = arith.constant 240 : i32
    %206 = tpu.dynamic_rotate %153 by %c240_i32_183 dim 1 : vector<8x256xf32>, i32 -> vector<8x256xf32>
    %c7_184 = arith.constant 7 : index
    %c0_185 = arith.constant 0 : index
    %c0_186 = arith.constant 0 : index
    %207 = vector.load %arg2[%c7_184, %c0_185, %c0_186] : memref<9x8x256xf32, #tpu.memory_space<vmem>>, vector<1x8x256xf32>
    %208 = vector.shape_cast %207 : vector<1x8x256xf32> to vector<8x256xf32>
    %209 = arith.mulf %206, %208 : vector<8x256xf32>
    %c7_187 = arith.constant 7 : index
    %c0_188 = arith.constant 0 : index
    %c0_189 = arith.constant 0 : index
    %210 = vector.load %arg7[%c7_187, %c0_188, %c0_189] : memref<9x8x8xf32, #tpu.memory_space<vmem>>, vector<1x8x8xf32>
    %211 = vector.shape_cast %210 : vector<1x8x8xf32> to vector<8x8xf32>
    %cst_190 = arith.constant dense<0.000000e+00> : vector<8x256xf32>
    %212 = tpu.matmul %211, %209, %cst_190 {dimension_numbers = #tpu.dot_dimension_numbers<[1], [0], [0], [1], [0, 0, 1, 1], [], []>} : vector<8x8xf32>, vector<8x256xf32>, vector<8x256xf32> -> vector<8x256xf32>
    %213 = arith.addf %205, %212 : vector<8x256xf32>
    %c239_i32_191 = arith.constant 239 : i32
    %214 = tpu.dynamic_rotate %153 by %c239_i32_191 dim 1 : vector<8x256xf32>, i32 -> vector<8x256xf32>
    %c8_192 = arith.constant 8 : index
    %c0_193 = arith.constant 0 : index
    %c0_194 = arith.constant 0 : index
    %215 = vector.load %arg2[%c8_192, %c0_193, %c0_194] : memref<9x8x256xf32, #tpu.memory_space<vmem>>, vector<1x8x256xf32>
    %216 = vector.shape_cast %215 : vector<1x8x256xf32> to vector<8x256xf32>
    %217 = arith.mulf %214, %216 : vector<8x256xf32>
    %c8_195 = arith.constant 8 : index
    %c0_196 = arith.constant 0 : index
    %c0_197 = arith.constant 0 : index
    %218 = vector.load %arg7[%c8_195, %c0_196, %c0_197] : memref<9x8x8xf32, #tpu.memory_space<vmem>>, vector<1x8x8xf32>
    %219 = vector.shape_cast %218 : vector<1x8x8xf32> to vector<8x8xf32>
    %cst_198 = arith.constant dense<0.000000e+00> : vector<8x256xf32>
    %220 = tpu.matmul %219, %217, %cst_198 {dimension_numbers = #tpu.dot_dimension_numbers<[1], [0], [0], [1], [0, 0, 1, 1], [], []>} : vector<8x8xf32>, vector<8x256xf32>, vector<8x256xf32> -> vector<8x256xf32>
    %221 = arith.addf %213, %220 : vector<8x256xf32>
    %cst_199 = arith.constant 0.000000e+00 : f32
    %222 = vector.broadcast %cst_199 : f32 to vector<8x256xf32>
    %223 = arith.maximumf %221, %222 : vector<8x256xf32>
    %224 = arith.addf %83, %223 : vector<8x256xf32>
    %c17_i32_200 = arith.constant 17 : i32
    %225 = tpu.dynamic_rotate %224 by %c17_i32_200 dim 1 : vector<8x256xf32>, i32 -> vector<8x256xf32>
    %c0_201 = arith.constant 0 : index
    %c0_202 = arith.constant 0 : index
    %c0_203 = arith.constant 0 : index
    %226 = vector.load %arg2[%c0_201, %c0_202, %c0_203] : memref<9x8x256xf32, #tpu.memory_space<vmem>>, vector<1x8x256xf32>
    %227 = vector.shape_cast %226 : vector<1x8x256xf32> to vector<8x256xf32>
    %228 = arith.mulf %225, %227 : vector<8x256xf32>
    %c0_204 = arith.constant 0 : index
    %c0_205 = arith.constant 0 : index
    %c0_206 = arith.constant 0 : index
    %229 = vector.load %arg5[%c0_204, %c0_205, %c0_206] : memref<9x8x8xf32, #tpu.memory_space<vmem>>, vector<1x8x8xf32>
    %230 = vector.shape_cast %229 : vector<1x8x8xf32> to vector<8x8xf32>
    %cst_207 = arith.constant dense<0.000000e+00> : vector<8x256xf32>
    %231 = tpu.matmul %230, %228, %cst_207 {dimension_numbers = #tpu.dot_dimension_numbers<[1], [0], [0], [1], [0, 0, 1, 1], [], []>} : vector<8x8xf32>, vector<8x256xf32>, vector<8x256xf32> -> vector<8x256xf32>
    %232 = arith.addf %7, %231 : vector<8x256xf32>
    %c16_i32_208 = arith.constant 16 : i32
    %233 = tpu.dynamic_rotate %224 by %c16_i32_208 dim 1 : vector<8x256xf32>, i32 -> vector<8x256xf32>
    %c1_209 = arith.constant 1 : index
    %c0_210 = arith.constant 0 : index
    %c0_211 = arith.constant 0 : index
    %234 = vector.load %arg2[%c1_209, %c0_210, %c0_211] : memref<9x8x256xf32, #tpu.memory_space<vmem>>, vector<1x8x256xf32>
    %235 = vector.shape_cast %234 : vector<1x8x256xf32> to vector<8x256xf32>
    %236 = arith.mulf %233, %235 : vector<8x256xf32>
    %c1_212 = arith.constant 1 : index
    %c0_213 = arith.constant 0 : index
    %c0_214 = arith.constant 0 : index
    %237 = vector.load %arg5[%c1_212, %c0_213, %c0_214] : memref<9x8x8xf32, #tpu.memory_space<vmem>>, vector<1x8x8xf32>
    %238 = vector.shape_cast %237 : vector<1x8x8xf32> to vector<8x8xf32>
    %cst_215 = arith.constant dense<0.000000e+00> : vector<8x256xf32>
    %239 = tpu.matmul %238, %236, %cst_215 {dimension_numbers = #tpu.dot_dimension_numbers<[1], [0], [0], [1], [0, 0, 1, 1], [], []>} : vector<8x8xf32>, vector<8x256xf32>, vector<8x256xf32> -> vector<8x256xf32>
    %240 = arith.addf %232, %239 : vector<8x256xf32>
    %c15_i32_216 = arith.constant 15 : i32
    %241 = tpu.dynamic_rotate %224 by %c15_i32_216 dim 1 : vector<8x256xf32>, i32 -> vector<8x256xf32>
    %c2_217 = arith.constant 2 : index
    %c0_218 = arith.constant 0 : index
    %c0_219 = arith.constant 0 : index
    %242 = vector.load %arg2[%c2_217, %c0_218, %c0_219] : memref<9x8x256xf32, #tpu.memory_space<vmem>>, vector<1x8x256xf32>
    %243 = vector.shape_cast %242 : vector<1x8x256xf32> to vector<8x256xf32>
    %244 = arith.mulf %241, %243 : vector<8x256xf32>
    %c2_220 = arith.constant 2 : index
    %c0_221 = arith.constant 0 : index
    %c0_222 = arith.constant 0 : index
    %245 = vector.load %arg5[%c2_220, %c0_221, %c0_222] : memref<9x8x8xf32, #tpu.memory_space<vmem>>, vector<1x8x8xf32>
    %246 = vector.shape_cast %245 : vector<1x8x8xf32> to vector<8x8xf32>
    %cst_223 = arith.constant dense<0.000000e+00> : vector<8x256xf32>
    %247 = tpu.matmul %246, %244, %cst_223 {dimension_numbers = #tpu.dot_dimension_numbers<[1], [0], [0], [1], [0, 0, 1, 1], [], []>} : vector<8x8xf32>, vector<8x256xf32>, vector<8x256xf32> -> vector<8x256xf32>
    %248 = arith.addf %240, %247 : vector<8x256xf32>
    %c1_i32_224 = arith.constant 1 : i32
    %249 = tpu.dynamic_rotate %224 by %c1_i32_224 dim 1 : vector<8x256xf32>, i32 -> vector<8x256xf32>
    %c3_225 = arith.constant 3 : index
    %c0_226 = arith.constant 0 : index
    %c0_227 = arith.constant 0 : index
    %250 = vector.load %arg2[%c3_225, %c0_226, %c0_227] : memref<9x8x256xf32, #tpu.memory_space<vmem>>, vector<1x8x256xf32>
    %251 = vector.shape_cast %250 : vector<1x8x256xf32> to vector<8x256xf32>
    %252 = arith.mulf %249, %251 : vector<8x256xf32>
    %c3_228 = arith.constant 3 : index
    %c0_229 = arith.constant 0 : index
    %c0_230 = arith.constant 0 : index
    %253 = vector.load %arg5[%c3_228, %c0_229, %c0_230] : memref<9x8x8xf32, #tpu.memory_space<vmem>>, vector<1x8x8xf32>
    %254 = vector.shape_cast %253 : vector<1x8x8xf32> to vector<8x8xf32>
    %cst_231 = arith.constant dense<0.000000e+00> : vector<8x256xf32>
    %255 = tpu.matmul %254, %252, %cst_231 {dimension_numbers = #tpu.dot_dimension_numbers<[1], [0], [0], [1], [0, 0, 1, 1], [], []>} : vector<8x8xf32>, vector<8x256xf32>, vector<8x256xf32> -> vector<8x256xf32>
    %256 = arith.addf %248, %255 : vector<8x256xf32>
    %c4_232 = arith.constant 4 : index
    %c0_233 = arith.constant 0 : index
    %c0_234 = arith.constant 0 : index
    %257 = vector.load %arg5[%c4_232, %c0_233, %c0_234] : memref<9x8x8xf32, #tpu.memory_space<vmem>>, vector<1x8x8xf32>
    %258 = vector.shape_cast %257 : vector<1x8x8xf32> to vector<8x8xf32>
    %cst_235 = arith.constant dense<0.000000e+00> : vector<8x256xf32>
    %259 = tpu.matmul %258, %224, %cst_235 {dimension_numbers = #tpu.dot_dimension_numbers<[1], [0], [0], [1], [0, 0, 1, 1], [], []>} : vector<8x8xf32>, vector<8x256xf32>, vector<8x256xf32> -> vector<8x256xf32>
    %260 = arith.addf %256, %259 : vector<8x256xf32>
    %c255_i32_236 = arith.constant 255 : i32
    %261 = tpu.dynamic_rotate %224 by %c255_i32_236 dim 1 : vector<8x256xf32>, i32 -> vector<8x256xf32>
    %c5_237 = arith.constant 5 : index
    %c0_238 = arith.constant 0 : index
    %c0_239 = arith.constant 0 : index
    %262 = vector.load %arg2[%c5_237, %c0_238, %c0_239] : memref<9x8x256xf32, #tpu.memory_space<vmem>>, vector<1x8x256xf32>
    %263 = vector.shape_cast %262 : vector<1x8x256xf32> to vector<8x256xf32>
    %264 = arith.mulf %261, %263 : vector<8x256xf32>
    %c5_240 = arith.constant 5 : index
    %c0_241 = arith.constant 0 : index
    %c0_242 = arith.constant 0 : index
    %265 = vector.load %arg5[%c5_240, %c0_241, %c0_242] : memref<9x8x8xf32, #tpu.memory_space<vmem>>, vector<1x8x8xf32>
    %266 = vector.shape_cast %265 : vector<1x8x8xf32> to vector<8x8xf32>
    %cst_243 = arith.constant dense<0.000000e+00> : vector<8x256xf32>
    %267 = tpu.matmul %266, %264, %cst_243 {dimension_numbers = #tpu.dot_dimension_numbers<[1], [0], [0], [1], [0, 0, 1, 1], [], []>} : vector<8x8xf32>, vector<8x256xf32>, vector<8x256xf32> -> vector<8x256xf32>
    %268 = arith.addf %260, %267 : vector<8x256xf32>
    %c241_i32_244 = arith.constant 241 : i32
    %269 = tpu.dynamic_rotate %224 by %c241_i32_244 dim 1 : vector<8x256xf32>, i32 -> vector<8x256xf32>
    %c6_245 = arith.constant 6 : index
    %c0_246 = arith.constant 0 : index
    %c0_247 = arith.constant 0 : index
    %270 = vector.load %arg2[%c6_245, %c0_246, %c0_247] : memref<9x8x256xf32, #tpu.memory_space<vmem>>, vector<1x8x256xf32>
    %271 = vector.shape_cast %270 : vector<1x8x256xf32> to vector<8x256xf32>
    %272 = arith.mulf %269, %271 : vector<8x256xf32>
    %c6_248 = arith.constant 6 : index
    %c0_249 = arith.constant 0 : index
    %c0_250 = arith.constant 0 : index
    %273 = vector.load %arg5[%c6_248, %c0_249, %c0_250] : memref<9x8x8xf32, #tpu.memory_space<vmem>>, vector<1x8x8xf32>
    %274 = vector.shape_cast %273 : vector<1x8x8xf32> to vector<8x8xf32>
    %cst_251 = arith.constant dense<0.000000e+00> : vector<8x256xf32>
    %275 = tpu.matmul %274, %272, %cst_251 {dimension_numbers = #tpu.dot_dimension_numbers<[1], [0], [0], [1], [0, 0, 1, 1], [], []>} : vector<8x8xf32>, vector<8x256xf32>, vector<8x256xf32> -> vector<8x256xf32>
    %276 = arith.addf %268, %275 : vector<8x256xf32>
    %c240_i32_252 = arith.constant 240 : i32
    %277 = tpu.dynamic_rotate %224 by %c240_i32_252 dim 1 : vector<8x256xf32>, i32 -> vector<8x256xf32>
    %c7_253 = arith.constant 7 : index
    %c0_254 = arith.constant 0 : index
    %c0_255 = arith.constant 0 : index
    %278 = vector.load %arg2[%c7_253, %c0_254, %c0_255] : memref<9x8x256xf32, #tpu.memory_space<vmem>>, vector<1x8x256xf32>
    %279 = vector.shape_cast %278 : vector<1x8x256xf32> to vector<8x256xf32>
    %280 = arith.mulf %277, %279 : vector<8x256xf32>
    %c7_256 = arith.constant 7 : index
    %c0_257 = arith.constant 0 : index
    %c0_258 = arith.constant 0 : index
    %281 = vector.load %arg5[%c7_256, %c0_257, %c0_258] : memref<9x8x8xf32, #tpu.memory_space<vmem>>, vector<1x8x8xf32>
    %282 = vector.shape_cast %281 : vector<1x8x8xf32> to vector<8x8xf32>
    %cst_259 = arith.constant dense<0.000000e+00> : vector<8x256xf32>
    %283 = tpu.matmul %282, %280, %cst_259 {dimension_numbers = #tpu.dot_dimension_numbers<[1], [0], [0], [1], [0, 0, 1, 1], [], []>} : vector<8x8xf32>, vector<8x256xf32>, vector<8x256xf32> -> vector<8x256xf32>
    %284 = arith.addf %276, %283 : vector<8x256xf32>
    %c239_i32_260 = arith.constant 239 : i32
    %285 = tpu.dynamic_rotate %224 by %c239_i32_260 dim 1 : vector<8x256xf32>, i32 -> vector<8x256xf32>
    %c8_261 = arith.constant 8 : index
    %c0_262 = arith.constant 0 : index
    %c0_263 = arith.constant 0 : index
    %286 = vector.load %arg2[%c8_261, %c0_262, %c0_263] : memref<9x8x256xf32, #tpu.memory_space<vmem>>, vector<1x8x256xf32>
    %287 = vector.shape_cast %286 : vector<1x8x256xf32> to vector<8x256xf32>
    %288 = arith.mulf %285, %287 : vector<8x256xf32>
    %c8_264 = arith.constant 8 : index
    %c0_265 = arith.constant 0 : index
    %c0_266 = arith.constant 0 : index
    %289 = vector.load %arg5[%c8_264, %c0_265, %c0_266] : memref<9x8x8xf32, #tpu.memory_space<vmem>>, vector<1x8x8xf32>
    %290 = vector.shape_cast %289 : vector<1x8x8xf32> to vector<8x8xf32>
    %cst_267 = arith.constant dense<0.000000e+00> : vector<8x256xf32>
    %291 = tpu.matmul %290, %288, %cst_267 {dimension_numbers = #tpu.dot_dimension_numbers<[1], [0], [0], [1], [0, 0, 1, 1], [], []>} : vector<8x8xf32>, vector<8x256xf32>, vector<8x256xf32> -> vector<8x256xf32>
    %292 = arith.addf %284, %291 : vector<8x256xf32>
    %cst_268 = arith.constant 0.000000e+00 : f32
    %293 = vector.broadcast %cst_268 : f32 to vector<8x256xf32>
    %294 = arith.maximumf %292, %293 : vector<8x256xf32>
    %c17_i32_269 = arith.constant 17 : i32
    %295 = tpu.dynamic_rotate %294 by %c17_i32_269 dim 1 : vector<8x256xf32>, i32 -> vector<8x256xf32>
    %c0_270 = arith.constant 0 : index
    %c0_271 = arith.constant 0 : index
    %c0_272 = arith.constant 0 : index
    %296 = vector.load %arg2[%c0_270, %c0_271, %c0_272] : memref<9x8x256xf32, #tpu.memory_space<vmem>>, vector<1x8x256xf32>
    %297 = vector.shape_cast %296 : vector<1x8x256xf32> to vector<8x256xf32>
    %298 = arith.mulf %295, %297 : vector<8x256xf32>
    %c0_273 = arith.constant 0 : index
    %c0_274 = arith.constant 0 : index
    %c0_275 = arith.constant 0 : index
    %299 = vector.load %arg7[%c0_273, %c0_274, %c0_275] : memref<9x8x8xf32, #tpu.memory_space<vmem>>, vector<1x8x8xf32>
    %300 = vector.shape_cast %299 : vector<1x8x8xf32> to vector<8x8xf32>
    %cst_276 = arith.constant dense<0.000000e+00> : vector<8x256xf32>
    %301 = tpu.matmul %300, %298, %cst_276 {dimension_numbers = #tpu.dot_dimension_numbers<[1], [0], [0], [1], [0, 0, 1, 1], [], []>} : vector<8x8xf32>, vector<8x256xf32>, vector<8x256xf32> -> vector<8x256xf32>
    %302 = arith.addf %10, %301 : vector<8x256xf32>
    %c16_i32_277 = arith.constant 16 : i32
    %303 = tpu.dynamic_rotate %294 by %c16_i32_277 dim 1 : vector<8x256xf32>, i32 -> vector<8x256xf32>
    %c1_278 = arith.constant 1 : index
    %c0_279 = arith.constant 0 : index
    %c0_280 = arith.constant 0 : index
    %304 = vector.load %arg2[%c1_278, %c0_279, %c0_280] : memref<9x8x256xf32, #tpu.memory_space<vmem>>, vector<1x8x256xf32>
    %305 = vector.shape_cast %304 : vector<1x8x256xf32> to vector<8x256xf32>
    %306 = arith.mulf %303, %305 : vector<8x256xf32>
    %c1_281 = arith.constant 1 : index
    %c0_282 = arith.constant 0 : index
    %c0_283 = arith.constant 0 : index
    %307 = vector.load %arg7[%c1_281, %c0_282, %c0_283] : memref<9x8x8xf32, #tpu.memory_space<vmem>>, vector<1x8x8xf32>
    %308 = vector.shape_cast %307 : vector<1x8x8xf32> to vector<8x8xf32>
    %cst_284 = arith.constant dense<0.000000e+00> : vector<8x256xf32>
    %309 = tpu.matmul %308, %306, %cst_284 {dimension_numbers = #tpu.dot_dimension_numbers<[1], [0], [0], [1], [0, 0, 1, 1], [], []>} : vector<8x8xf32>, vector<8x256xf32>, vector<8x256xf32> -> vector<8x256xf32>
    %310 = arith.addf %302, %309 : vector<8x256xf32>
    %c15_i32_285 = arith.constant 15 : i32
    %311 = tpu.dynamic_rotate %294 by %c15_i32_285 dim 1 : vector<8x256xf32>, i32 -> vector<8x256xf32>
    %c2_286 = arith.constant 2 : index
    %c0_287 = arith.constant 0 : index
    %c0_288 = arith.constant 0 : index
    %312 = vector.load %arg2[%c2_286, %c0_287, %c0_288] : memref<9x8x256xf32, #tpu.memory_space<vmem>>, vector<1x8x256xf32>
    %313 = vector.shape_cast %312 : vector<1x8x256xf32> to vector<8x256xf32>
    %314 = arith.mulf %311, %313 : vector<8x256xf32>
    %c2_289 = arith.constant 2 : index
    %c0_290 = arith.constant 0 : index
    %c0_291 = arith.constant 0 : index
    %315 = vector.load %arg7[%c2_289, %c0_290, %c0_291] : memref<9x8x8xf32, #tpu.memory_space<vmem>>, vector<1x8x8xf32>
    %316 = vector.shape_cast %315 : vector<1x8x8xf32> to vector<8x8xf32>
    %cst_292 = arith.constant dense<0.000000e+00> : vector<8x256xf32>
    %317 = tpu.matmul %316, %314, %cst_292 {dimension_numbers = #tpu.dot_dimension_numbers<[1], [0], [0], [1], [0, 0, 1, 1], [], []>} : vector<8x8xf32>, vector<8x256xf32>, vector<8x256xf32> -> vector<8x256xf32>
    %318 = arith.addf %310, %317 : vector<8x256xf32>
    %c1_i32_293 = arith.constant 1 : i32
    %319 = tpu.dynamic_rotate %294 by %c1_i32_293 dim 1 : vector<8x256xf32>, i32 -> vector<8x256xf32>
    %c3_294 = arith.constant 3 : index
    %c0_295 = arith.constant 0 : index
    %c0_296 = arith.constant 0 : index
    %320 = vector.load %arg2[%c3_294, %c0_295, %c0_296] : memref<9x8x256xf32, #tpu.memory_space<vmem>>, vector<1x8x256xf32>
    %321 = vector.shape_cast %320 : vector<1x8x256xf32> to vector<8x256xf32>
    %322 = arith.mulf %319, %321 : vector<8x256xf32>
    %c3_297 = arith.constant 3 : index
    %c0_298 = arith.constant 0 : index
    %c0_299 = arith.constant 0 : index
    %323 = vector.load %arg7[%c3_297, %c0_298, %c0_299] : memref<9x8x8xf32, #tpu.memory_space<vmem>>, vector<1x8x8xf32>
    %324 = vector.shape_cast %323 : vector<1x8x8xf32> to vector<8x8xf32>
    %cst_300 = arith.constant dense<0.000000e+00> : vector<8x256xf32>
    %325 = tpu.matmul %324, %322, %cst_300 {dimension_numbers = #tpu.dot_dimension_numbers<[1], [0], [0], [1], [0, 0, 1, 1], [], []>} : vector<8x8xf32>, vector<8x256xf32>, vector<8x256xf32> -> vector<8x256xf32>
    %326 = arith.addf %318, %325 : vector<8x256xf32>
    %c4_301 = arith.constant 4 : index
    %c0_302 = arith.constant 0 : index
    %c0_303 = arith.constant 0 : index
    %327 = vector.load %arg7[%c4_301, %c0_302, %c0_303] : memref<9x8x8xf32, #tpu.memory_space<vmem>>, vector<1x8x8xf32>
    %328 = vector.shape_cast %327 : vector<1x8x8xf32> to vector<8x8xf32>
    %cst_304 = arith.constant dense<0.000000e+00> : vector<8x256xf32>
    %329 = tpu.matmul %328, %294, %cst_304 {dimension_numbers = #tpu.dot_dimension_numbers<[1], [0], [0], [1], [0, 0, 1, 1], [], []>} : vector<8x8xf32>, vector<8x256xf32>, vector<8x256xf32> -> vector<8x256xf32>
    %330 = arith.addf %326, %329 : vector<8x256xf32>
    %c255_i32_305 = arith.constant 255 : i32
    %331 = tpu.dynamic_rotate %294 by %c255_i32_305 dim 1 : vector<8x256xf32>, i32 -> vector<8x256xf32>
    %c5_306 = arith.constant 5 : index
    %c0_307 = arith.constant 0 : index
    %c0_308 = arith.constant 0 : index
    %332 = vector.load %arg2[%c5_306, %c0_307, %c0_308] : memref<9x8x256xf32, #tpu.memory_space<vmem>>, vector<1x8x256xf32>
    %333 = vector.shape_cast %332 : vector<1x8x256xf32> to vector<8x256xf32>
    %334 = arith.mulf %331, %333 : vector<8x256xf32>
    %c5_309 = arith.constant 5 : index
    %c0_310 = arith.constant 0 : index
    %c0_311 = arith.constant 0 : index
    %335 = vector.load %arg7[%c5_309, %c0_310, %c0_311] : memref<9x8x8xf32, #tpu.memory_space<vmem>>, vector<1x8x8xf32>
    %336 = vector.shape_cast %335 : vector<1x8x8xf32> to vector<8x8xf32>
    %cst_312 = arith.constant dense<0.000000e+00> : vector<8x256xf32>
    %337 = tpu.matmul %336, %334, %cst_312 {dimension_numbers = #tpu.dot_dimension_numbers<[1], [0], [0], [1], [0, 0, 1, 1], [], []>} : vector<8x8xf32>, vector<8x256xf32>, vector<8x256xf32> -> vector<8x256xf32>
    %338 = arith.addf %330, %337 : vector<8x256xf32>
    %c241_i32_313 = arith.constant 241 : i32
    %339 = tpu.dynamic_rotate %294 by %c241_i32_313 dim 1 : vector<8x256xf32>, i32 -> vector<8x256xf32>
    %c6_314 = arith.constant 6 : index
    %c0_315 = arith.constant 0 : index
    %c0_316 = arith.constant 0 : index
    %340 = vector.load %arg2[%c6_314, %c0_315, %c0_316] : memref<9x8x256xf32, #tpu.memory_space<vmem>>, vector<1x8x256xf32>
    %341 = vector.shape_cast %340 : vector<1x8x256xf32> to vector<8x256xf32>
    %342 = arith.mulf %339, %341 : vector<8x256xf32>
    %c6_317 = arith.constant 6 : index
    %c0_318 = arith.constant 0 : index
    %c0_319 = arith.constant 0 : index
    %343 = vector.load %arg7[%c6_317, %c0_318, %c0_319] : memref<9x8x8xf32, #tpu.memory_space<vmem>>, vector<1x8x8xf32>
    %344 = vector.shape_cast %343 : vector<1x8x8xf32> to vector<8x8xf32>
    %cst_320 = arith.constant dense<0.000000e+00> : vector<8x256xf32>
    %345 = tpu.matmul %344, %342, %cst_320 {dimension_numbers = #tpu.dot_dimension_numbers<[1], [0], [0], [1], [0, 0, 1, 1], [], []>} : vector<8x8xf32>, vector<8x256xf32>, vector<8x256xf32> -> vector<8x256xf32>
    %346 = arith.addf %338, %345 : vector<8x256xf32>
    %c240_i32_321 = arith.constant 240 : i32
    %347 = tpu.dynamic_rotate %294 by %c240_i32_321 dim 1 : vector<8x256xf32>, i32 -> vector<8x256xf32>
    %c7_322 = arith.constant 7 : index
    %c0_323 = arith.constant 0 : index
    %c0_324 = arith.constant 0 : index
    %348 = vector.load %arg2[%c7_322, %c0_323, %c0_324] : memref<9x8x256xf32, #tpu.memory_space<vmem>>, vector<1x8x256xf32>
    %349 = vector.shape_cast %348 : vector<1x8x256xf32> to vector<8x256xf32>
    %350 = arith.mulf %347, %349 : vector<8x256xf32>
    %c7_325 = arith.constant 7 : index
    %c0_326 = arith.constant 0 : index
    %c0_327 = arith.constant 0 : index
    %351 = vector.load %arg7[%c7_325, %c0_326, %c0_327] : memref<9x8x8xf32, #tpu.memory_space<vmem>>, vector<1x8x8xf32>
    %352 = vector.shape_cast %351 : vector<1x8x8xf32> to vector<8x8xf32>
    %cst_328 = arith.constant dense<0.000000e+00> : vector<8x256xf32>
    %353 = tpu.matmul %352, %350, %cst_328 {dimension_numbers = #tpu.dot_dimension_numbers<[1], [0], [0], [1], [0, 0, 1, 1], [], []>} : vector<8x8xf32>, vector<8x256xf32>, vector<8x256xf32> -> vector<8x256xf32>
    %354 = arith.addf %346, %353 : vector<8x256xf32>
    %c239_i32_329 = arith.constant 239 : i32
    %355 = tpu.dynamic_rotate %294 by %c239_i32_329 dim 1 : vector<8x256xf32>, i32 -> vector<8x256xf32>
    %c8_330 = arith.constant 8 : index
    %c0_331 = arith.constant 0 : index
    %c0_332 = arith.constant 0 : index
    %356 = vector.load %arg2[%c8_330, %c0_331, %c0_332] : memref<9x8x256xf32, #tpu.memory_space<vmem>>, vector<1x8x256xf32>
    %357 = vector.shape_cast %356 : vector<1x8x256xf32> to vector<8x256xf32>
    %358 = arith.mulf %355, %357 : vector<8x256xf32>
    %c8_333 = arith.constant 8 : index
    %c0_334 = arith.constant 0 : index
    %c0_335 = arith.constant 0 : index
    %359 = vector.load %arg7[%c8_333, %c0_334, %c0_335] : memref<9x8x8xf32, #tpu.memory_space<vmem>>, vector<1x8x8xf32>
    %360 = vector.shape_cast %359 : vector<1x8x8xf32> to vector<8x8xf32>
    %cst_336 = arith.constant dense<0.000000e+00> : vector<8x256xf32>
    %361 = tpu.matmul %360, %358, %cst_336 {dimension_numbers = #tpu.dot_dimension_numbers<[1], [0], [0], [1], [0, 0, 1, 1], [], []>} : vector<8x8xf32>, vector<8x256xf32>, vector<8x256xf32> -> vector<8x256xf32>
    %362 = arith.addf %354, %361 : vector<8x256xf32>
    %cst_337 = arith.constant 0.000000e+00 : f32
    %363 = vector.broadcast %cst_337 : f32 to vector<8x256xf32>
    %364 = arith.maximumf %362, %363 : vector<8x256xf32>
    %365 = arith.addf %224, %364 : vector<8x256xf32>
    %c17_i32_338 = arith.constant 17 : i32
    %366 = tpu.dynamic_rotate %365 by %c17_i32_338 dim 1 : vector<8x256xf32>, i32 -> vector<8x256xf32>
    %c0_339 = arith.constant 0 : index
    %c0_340 = arith.constant 0 : index
    %c0_341 = arith.constant 0 : index
    %367 = vector.load %arg2[%c0_339, %c0_340, %c0_341] : memref<9x8x256xf32, #tpu.memory_space<vmem>>, vector<1x8x256xf32>
    %368 = vector.shape_cast %367 : vector<1x8x256xf32> to vector<8x256xf32>
    %369 = arith.mulf %366, %368 : vector<8x256xf32>
    %c0_342 = arith.constant 0 : index
    %c0_343 = arith.constant 0 : index
    %c0_344 = arith.constant 0 : index
    %370 = vector.load %arg5[%c0_342, %c0_343, %c0_344] : memref<9x8x8xf32, #tpu.memory_space<vmem>>, vector<1x8x8xf32>
    %371 = vector.shape_cast %370 : vector<1x8x8xf32> to vector<8x8xf32>
    %cst_345 = arith.constant dense<0.000000e+00> : vector<8x256xf32>
    %372 = tpu.matmul %371, %369, %cst_345 {dimension_numbers = #tpu.dot_dimension_numbers<[1], [0], [0], [1], [0, 0, 1, 1], [], []>} : vector<8x8xf32>, vector<8x256xf32>, vector<8x256xf32> -> vector<8x256xf32>
    %373 = arith.addf %7, %372 : vector<8x256xf32>
    %c16_i32_346 = arith.constant 16 : i32
    %374 = tpu.dynamic_rotate %365 by %c16_i32_346 dim 1 : vector<8x256xf32>, i32 -> vector<8x256xf32>
    %c1_347 = arith.constant 1 : index
    %c0_348 = arith.constant 0 : index
    %c0_349 = arith.constant 0 : index
    %375 = vector.load %arg2[%c1_347, %c0_348, %c0_349] : memref<9x8x256xf32, #tpu.memory_space<vmem>>, vector<1x8x256xf32>
    %376 = vector.shape_cast %375 : vector<1x8x256xf32> to vector<8x256xf32>
    %377 = arith.mulf %374, %376 : vector<8x256xf32>
    %c1_350 = arith.constant 1 : index
    %c0_351 = arith.constant 0 : index
    %c0_352 = arith.constant 0 : index
    %378 = vector.load %arg5[%c1_350, %c0_351, %c0_352] : memref<9x8x8xf32, #tpu.memory_space<vmem>>, vector<1x8x8xf32>
    %379 = vector.shape_cast %378 : vector<1x8x8xf32> to vector<8x8xf32>
    %cst_353 = arith.constant dense<0.000000e+00> : vector<8x256xf32>
    %380 = tpu.matmul %379, %377, %cst_353 {dimension_numbers = #tpu.dot_dimension_numbers<[1], [0], [0], [1], [0, 0, 1, 1], [], []>} : vector<8x8xf32>, vector<8x256xf32>, vector<8x256xf32> -> vector<8x256xf32>
    %381 = arith.addf %373, %380 : vector<8x256xf32>
    %c15_i32_354 = arith.constant 15 : i32
    %382 = tpu.dynamic_rotate %365 by %c15_i32_354 dim 1 : vector<8x256xf32>, i32 -> vector<8x256xf32>
    %c2_355 = arith.constant 2 : index
    %c0_356 = arith.constant 0 : index
    %c0_357 = arith.constant 0 : index
    %383 = vector.load %arg2[%c2_355, %c0_356, %c0_357] : memref<9x8x256xf32, #tpu.memory_space<vmem>>, vector<1x8x256xf32>
    %384 = vector.shape_cast %383 : vector<1x8x256xf32> to vector<8x256xf32>
    %385 = arith.mulf %382, %384 : vector<8x256xf32>
    %c2_358 = arith.constant 2 : index
    %c0_359 = arith.constant 0 : index
    %c0_360 = arith.constant 0 : index
    %386 = vector.load %arg5[%c2_358, %c0_359, %c0_360] : memref<9x8x8xf32, #tpu.memory_space<vmem>>, vector<1x8x8xf32>
    %387 = vector.shape_cast %386 : vector<1x8x8xf32> to vector<8x8xf32>
    %cst_361 = arith.constant dense<0.000000e+00> : vector<8x256xf32>
    %388 = tpu.matmul %387, %385, %cst_361 {dimension_numbers = #tpu.dot_dimension_numbers<[1], [0], [0], [1], [0, 0, 1, 1], [], []>} : vector<8x8xf32>, vector<8x256xf32>, vector<8x256xf32> -> vector<8x256xf32>
    %389 = arith.addf %381, %388 : vector<8x256xf32>
    %c1_i32_362 = arith.constant 1 : i32
    %390 = tpu.dynamic_rotate %365 by %c1_i32_362 dim 1 : vector<8x256xf32>, i32 -> vector<8x256xf32>
    %c3_363 = arith.constant 3 : index
    %c0_364 = arith.constant 0 : index
    %c0_365 = arith.constant 0 : index
    %391 = vector.load %arg2[%c3_363, %c0_364, %c0_365] : memref<9x8x256xf32, #tpu.memory_space<vmem>>, vector<1x8x256xf32>
    %392 = vector.shape_cast %391 : vector<1x8x256xf32> to vector<8x256xf32>
    %393 = arith.mulf %390, %392 : vector<8x256xf32>
    %c3_366 = arith.constant 3 : index
    %c0_367 = arith.constant 0 : index
    %c0_368 = arith.constant 0 : index
    %394 = vector.load %arg5[%c3_366, %c0_367, %c0_368] : memref<9x8x8xf32, #tpu.memory_space<vmem>>, vector<1x8x8xf32>
    %395 = vector.shape_cast %394 : vector<1x8x8xf32> to vector<8x8xf32>
    %cst_369 = arith.constant dense<0.000000e+00> : vector<8x256xf32>
    %396 = tpu.matmul %395, %393, %cst_369 {dimension_numbers = #tpu.dot_dimension_numbers<[1], [0], [0], [1], [0, 0, 1, 1], [], []>} : vector<8x8xf32>, vector<8x256xf32>, vector<8x256xf32> -> vector<8x256xf32>
    %397 = arith.addf %389, %396 : vector<8x256xf32>
    %c4_370 = arith.constant 4 : index
    %c0_371 = arith.constant 0 : index
    %c0_372 = arith.constant 0 : index
    %398 = vector.load %arg5[%c4_370, %c0_371, %c0_372] : memref<9x8x8xf32, #tpu.memory_space<vmem>>, vector<1x8x8xf32>
    %399 = vector.shape_cast %398 : vector<1x8x8xf32> to vector<8x8xf32>
    %cst_373 = arith.constant dense<0.000000e+00> : vector<8x256xf32>
    %400 = tpu.matmul %399, %365, %cst_373 {dimension_numbers = #tpu.dot_dimension_numbers<[1], [0], [0], [1], [0, 0, 1, 1], [], []>} : vector<8x8xf32>, vector<8x256xf32>, vector<8x256xf32> -> vector<8x256xf32>
    %401 = arith.addf %397, %400 : vector<8x256xf32>
    %c255_i32_374 = arith.constant 255 : i32
    %402 = tpu.dynamic_rotate %365 by %c255_i32_374 dim 1 : vector<8x256xf32>, i32 -> vector<8x256xf32>
    %c5_375 = arith.constant 5 : index
    %c0_376 = arith.constant 0 : index
    %c0_377 = arith.constant 0 : index
    %403 = vector.load %arg2[%c5_375, %c0_376, %c0_377] : memref<9x8x256xf32, #tpu.memory_space<vmem>>, vector<1x8x256xf32>
    %404 = vector.shape_cast %403 : vector<1x8x256xf32> to vector<8x256xf32>
    %405 = arith.mulf %402, %404 : vector<8x256xf32>
    %c5_378 = arith.constant 5 : index
    %c0_379 = arith.constant 0 : index
    %c0_380 = arith.constant 0 : index
    %406 = vector.load %arg5[%c5_378, %c0_379, %c0_380] : memref<9x8x8xf32, #tpu.memory_space<vmem>>, vector<1x8x8xf32>
    %407 = vector.shape_cast %406 : vector<1x8x8xf32> to vector<8x8xf32>
    %cst_381 = arith.constant dense<0.000000e+00> : vector<8x256xf32>
    %408 = tpu.matmul %407, %405, %cst_381 {dimension_numbers = #tpu.dot_dimension_numbers<[1], [0], [0], [1], [0, 0, 1, 1], [], []>} : vector<8x8xf32>, vector<8x256xf32>, vector<8x256xf32> -> vector<8x256xf32>
    %409 = arith.addf %401, %408 : vector<8x256xf32>
    %c241_i32_382 = arith.constant 241 : i32
    %410 = tpu.dynamic_rotate %365 by %c241_i32_382 dim 1 : vector<8x256xf32>, i32 -> vector<8x256xf32>
    %c6_383 = arith.constant 6 : index
    %c0_384 = arith.constant 0 : index
    %c0_385 = arith.constant 0 : index
    %411 = vector.load %arg2[%c6_383, %c0_384, %c0_385] : memref<9x8x256xf32, #tpu.memory_space<vmem>>, vector<1x8x256xf32>
    %412 = vector.shape_cast %411 : vector<1x8x256xf32> to vector<8x256xf32>
    %413 = arith.mulf %410, %412 : vector<8x256xf32>
    %c6_386 = arith.constant 6 : index
    %c0_387 = arith.constant 0 : index
    %c0_388 = arith.constant 0 : index
    %414 = vector.load %arg5[%c6_386, %c0_387, %c0_388] : memref<9x8x8xf32, #tpu.memory_space<vmem>>, vector<1x8x8xf32>
    %415 = vector.shape_cast %414 : vector<1x8x8xf32> to vector<8x8xf32>
    %cst_389 = arith.constant dense<0.000000e+00> : vector<8x256xf32>
    %416 = tpu.matmul %415, %413, %cst_389 {dimension_numbers = #tpu.dot_dimension_numbers<[1], [0], [0], [1], [0, 0, 1, 1], [], []>} : vector<8x8xf32>, vector<8x256xf32>, vector<8x256xf32> -> vector<8x256xf32>
    %417 = arith.addf %409, %416 : vector<8x256xf32>
    %c240_i32_390 = arith.constant 240 : i32
    %418 = tpu.dynamic_rotate %365 by %c240_i32_390 dim 1 : vector<8x256xf32>, i32 -> vector<8x256xf32>
    %c7_391 = arith.constant 7 : index
    %c0_392 = arith.constant 0 : index
    %c0_393 = arith.constant 0 : index
    %419 = vector.load %arg2[%c7_391, %c0_392, %c0_393] : memref<9x8x256xf32, #tpu.memory_space<vmem>>, vector<1x8x256xf32>
    %420 = vector.shape_cast %419 : vector<1x8x256xf32> to vector<8x256xf32>
    %421 = arith.mulf %418, %420 : vector<8x256xf32>
    %c7_394 = arith.constant 7 : index
    %c0_395 = arith.constant 0 : index
    %c0_396 = arith.constant 0 : index
    %422 = vector.load %arg5[%c7_394, %c0_395, %c0_396] : memref<9x8x8xf32, #tpu.memory_space<vmem>>, vector<1x8x8xf32>
    %423 = vector.shape_cast %422 : vector<1x8x8xf32> to vector<8x8xf32>
    %cst_397 = arith.constant dense<0.000000e+00> : vector<8x256xf32>
    %424 = tpu.matmul %423, %421, %cst_397 {dimension_numbers = #tpu.dot_dimension_numbers<[1], [0], [0], [1], [0, 0, 1, 1], [], []>} : vector<8x8xf32>, vector<8x256xf32>, vector<8x256xf32> -> vector<8x256xf32>
    %425 = arith.addf %417, %424 : vector<8x256xf32>
    %c239_i32_398 = arith.constant 239 : i32
    %426 = tpu.dynamic_rotate %365 by %c239_i32_398 dim 1 : vector<8x256xf32>, i32 -> vector<8x256xf32>
    %c8_399 = arith.constant 8 : index
    %c0_400 = arith.constant 0 : index
    %c0_401 = arith.constant 0 : index
    %427 = vector.load %arg2[%c8_399, %c0_400, %c0_401] : memref<9x8x256xf32, #tpu.memory_space<vmem>>, vector<1x8x256xf32>
    %428 = vector.shape_cast %427 : vector<1x8x256xf32> to vector<8x256xf32>
    %429 = arith.mulf %426, %428 : vector<8x256xf32>
    %c8_402 = arith.constant 8 : index
    %c0_403 = arith.constant 0 : index
    %c0_404 = arith.constant 0 : index
    %430 = vector.load %arg5[%c8_402, %c0_403, %c0_404] : memref<9x8x8xf32, #tpu.memory_space<vmem>>, vector<1x8x8xf32>
    %431 = vector.shape_cast %430 : vector<1x8x8xf32> to vector<8x8xf32>
    %cst_405 = arith.constant dense<0.000000e+00> : vector<8x256xf32>
    %432 = tpu.matmul %431, %429, %cst_405 {dimension_numbers = #tpu.dot_dimension_numbers<[1], [0], [0], [1], [0, 0, 1, 1], [], []>} : vector<8x8xf32>, vector<8x256xf32>, vector<8x256xf32> -> vector<8x256xf32>
    %433 = arith.addf %425, %432 : vector<8x256xf32>
    %cst_406 = arith.constant 0.000000e+00 : f32
    %434 = vector.broadcast %cst_406 : f32 to vector<8x256xf32>
    %435 = arith.maximumf %433, %434 : vector<8x256xf32>
    %c17_i32_407 = arith.constant 17 : i32
    %436 = tpu.dynamic_rotate %435 by %c17_i32_407 dim 1 : vector<8x256xf32>, i32 -> vector<8x256xf32>
    %c0_408 = arith.constant 0 : index
    %c0_409 = arith.constant 0 : index
    %c0_410 = arith.constant 0 : index
    %437 = vector.load %arg2[%c0_408, %c0_409, %c0_410] : memref<9x8x256xf32, #tpu.memory_space<vmem>>, vector<1x8x256xf32>
    %438 = vector.shape_cast %437 : vector<1x8x256xf32> to vector<8x256xf32>
    %439 = arith.mulf %436, %438 : vector<8x256xf32>
    %c0_411 = arith.constant 0 : index
    %c0_412 = arith.constant 0 : index
    %c0_413 = arith.constant 0 : index
    %440 = vector.load %arg7[%c0_411, %c0_412, %c0_413] : memref<9x8x8xf32, #tpu.memory_space<vmem>>, vector<1x8x8xf32>
    %441 = vector.shape_cast %440 : vector<1x8x8xf32> to vector<8x8xf32>
    %cst_414 = arith.constant dense<0.000000e+00> : vector<8x256xf32>
    %442 = tpu.matmul %441, %439, %cst_414 {dimension_numbers = #tpu.dot_dimension_numbers<[1], [0], [0], [1], [0, 0, 1, 1], [], []>} : vector<8x8xf32>, vector<8x256xf32>, vector<8x256xf32> -> vector<8x256xf32>
    %443 = arith.addf %10, %442 : vector<8x256xf32>
    %c16_i32_415 = arith.constant 16 : i32
    %444 = tpu.dynamic_rotate %435 by %c16_i32_415 dim 1 : vector<8x256xf32>, i32 -> vector<8x256xf32>
    %c1_416 = arith.constant 1 : index
    %c0_417 = arith.constant 0 : index
    %c0_418 = arith.constant 0 : index
    %445 = vector.load %arg2[%c1_416, %c0_417, %c0_418] : memref<9x8x256xf32, #tpu.memory_space<vmem>>, vector<1x8x256xf32>
    %446 = vector.shape_cast %445 : vector<1x8x256xf32> to vector<8x256xf32>
    %447 = arith.mulf %444, %446 : vector<8x256xf32>
    %c1_419 = arith.constant 1 : index
    %c0_420 = arith.constant 0 : index
    %c0_421 = arith.constant 0 : index
    %448 = vector.load %arg7[%c1_419, %c0_420, %c0_421] : memref<9x8x8xf32, #tpu.memory_space<vmem>>, vector<1x8x8xf32>
    %449 = vector.shape_cast %448 : vector<1x8x8xf32> to vector<8x8xf32>
    %cst_422 = arith.constant dense<0.000000e+00> : vector<8x256xf32>
    %450 = tpu.matmul %449, %447, %cst_422 {dimension_numbers = #tpu.dot_dimension_numbers<[1], [0], [0], [1], [0, 0, 1, 1], [], []>} : vector<8x8xf32>, vector<8x256xf32>, vector<8x256xf32> -> vector<8x256xf32>
    %451 = arith.addf %443, %450 : vector<8x256xf32>
    %c15_i32_423 = arith.constant 15 : i32
    %452 = tpu.dynamic_rotate %435 by %c15_i32_423 dim 1 : vector<8x256xf32>, i32 -> vector<8x256xf32>
    %c2_424 = arith.constant 2 : index
    %c0_425 = arith.constant 0 : index
    %c0_426 = arith.constant 0 : index
    %453 = vector.load %arg2[%c2_424, %c0_425, %c0_426] : memref<9x8x256xf32, #tpu.memory_space<vmem>>, vector<1x8x256xf32>
    %454 = vector.shape_cast %453 : vector<1x8x256xf32> to vector<8x256xf32>
    %455 = arith.mulf %452, %454 : vector<8x256xf32>
    %c2_427 = arith.constant 2 : index
    %c0_428 = arith.constant 0 : index
    %c0_429 = arith.constant 0 : index
    %456 = vector.load %arg7[%c2_427, %c0_428, %c0_429] : memref<9x8x8xf32, #tpu.memory_space<vmem>>, vector<1x8x8xf32>
    %457 = vector.shape_cast %456 : vector<1x8x8xf32> to vector<8x8xf32>
    %cst_430 = arith.constant dense<0.000000e+00> : vector<8x256xf32>
    %458 = tpu.matmul %457, %455, %cst_430 {dimension_numbers = #tpu.dot_dimension_numbers<[1], [0], [0], [1], [0, 0, 1, 1], [], []>} : vector<8x8xf32>, vector<8x256xf32>, vector<8x256xf32> -> vector<8x256xf32>
    %459 = arith.addf %451, %458 : vector<8x256xf32>
    %c1_i32_431 = arith.constant 1 : i32
    %460 = tpu.dynamic_rotate %435 by %c1_i32_431 dim 1 : vector<8x256xf32>, i32 -> vector<8x256xf32>
    %c3_432 = arith.constant 3 : index
    %c0_433 = arith.constant 0 : index
    %c0_434 = arith.constant 0 : index
    %461 = vector.load %arg2[%c3_432, %c0_433, %c0_434] : memref<9x8x256xf32, #tpu.memory_space<vmem>>, vector<1x8x256xf32>
    %462 = vector.shape_cast %461 : vector<1x8x256xf32> to vector<8x256xf32>
    %463 = arith.mulf %460, %462 : vector<8x256xf32>
    %c3_435 = arith.constant 3 : index
    %c0_436 = arith.constant 0 : index
    %c0_437 = arith.constant 0 : index
    %464 = vector.load %arg7[%c3_435, %c0_436, %c0_437] : memref<9x8x8xf32, #tpu.memory_space<vmem>>, vector<1x8x8xf32>
    %465 = vector.shape_cast %464 : vector<1x8x8xf32> to vector<8x8xf32>
    %cst_438 = arith.constant dense<0.000000e+00> : vector<8x256xf32>
    %466 = tpu.matmul %465, %463, %cst_438 {dimension_numbers = #tpu.dot_dimension_numbers<[1], [0], [0], [1], [0, 0, 1, 1], [], []>} : vector<8x8xf32>, vector<8x256xf32>, vector<8x256xf32> -> vector<8x256xf32>
    %467 = arith.addf %459, %466 : vector<8x256xf32>
    %c4_439 = arith.constant 4 : index
    %c0_440 = arith.constant 0 : index
    %c0_441 = arith.constant 0 : index
    %468 = vector.load %arg7[%c4_439, %c0_440, %c0_441] : memref<9x8x8xf32, #tpu.memory_space<vmem>>, vector<1x8x8xf32>
    %469 = vector.shape_cast %468 : vector<1x8x8xf32> to vector<8x8xf32>
    %cst_442 = arith.constant dense<0.000000e+00> : vector<8x256xf32>
    %470 = tpu.matmul %469, %435, %cst_442 {dimension_numbers = #tpu.dot_dimension_numbers<[1], [0], [0], [1], [0, 0, 1, 1], [], []>} : vector<8x8xf32>, vector<8x256xf32>, vector<8x256xf32> -> vector<8x256xf32>
    %471 = arith.addf %467, %470 : vector<8x256xf32>
    %c255_i32_443 = arith.constant 255 : i32
    %472 = tpu.dynamic_rotate %435 by %c255_i32_443 dim 1 : vector<8x256xf32>, i32 -> vector<8x256xf32>
    %c5_444 = arith.constant 5 : index
    %c0_445 = arith.constant 0 : index
    %c0_446 = arith.constant 0 : index
    %473 = vector.load %arg2[%c5_444, %c0_445, %c0_446] : memref<9x8x256xf32, #tpu.memory_space<vmem>>, vector<1x8x256xf32>
    %474 = vector.shape_cast %473 : vector<1x8x256xf32> to vector<8x256xf32>
    %475 = arith.mulf %472, %474 : vector<8x256xf32>
    %c5_447 = arith.constant 5 : index
    %c0_448 = arith.constant 0 : index
    %c0_449 = arith.constant 0 : index
    %476 = vector.load %arg7[%c5_447, %c0_448, %c0_449] : memref<9x8x8xf32, #tpu.memory_space<vmem>>, vector<1x8x8xf32>
    %477 = vector.shape_cast %476 : vector<1x8x8xf32> to vector<8x8xf32>
    %cst_450 = arith.constant dense<0.000000e+00> : vector<8x256xf32>
    %478 = tpu.matmul %477, %475, %cst_450 {dimension_numbers = #tpu.dot_dimension_numbers<[1], [0], [0], [1], [0, 0, 1, 1], [], []>} : vector<8x8xf32>, vector<8x256xf32>, vector<8x256xf32> -> vector<8x256xf32>
    %479 = arith.addf %471, %478 : vector<8x256xf32>
    %c241_i32_451 = arith.constant 241 : i32
    %480 = tpu.dynamic_rotate %435 by %c241_i32_451 dim 1 : vector<8x256xf32>, i32 -> vector<8x256xf32>
    %c6_452 = arith.constant 6 : index
    %c0_453 = arith.constant 0 : index
    %c0_454 = arith.constant 0 : index
    %481 = vector.load %arg2[%c6_452, %c0_453, %c0_454] : memref<9x8x256xf32, #tpu.memory_space<vmem>>, vector<1x8x256xf32>
    %482 = vector.shape_cast %481 : vector<1x8x256xf32> to vector<8x256xf32>
    %483 = arith.mulf %480, %482 : vector<8x256xf32>
    %c6_455 = arith.constant 6 : index
    %c0_456 = arith.constant 0 : index
    %c0_457 = arith.constant 0 : index
    %484 = vector.load %arg7[%c6_455, %c0_456, %c0_457] : memref<9x8x8xf32, #tpu.memory_space<vmem>>, vector<1x8x8xf32>
    %485 = vector.shape_cast %484 : vector<1x8x8xf32> to vector<8x8xf32>
    %cst_458 = arith.constant dense<0.000000e+00> : vector<8x256xf32>
    %486 = tpu.matmul %485, %483, %cst_458 {dimension_numbers = #tpu.dot_dimension_numbers<[1], [0], [0], [1], [0, 0, 1, 1], [], []>} : vector<8x8xf32>, vector<8x256xf32>, vector<8x256xf32> -> vector<8x256xf32>
    %487 = arith.addf %479, %486 : vector<8x256xf32>
    %c240_i32_459 = arith.constant 240 : i32
    %488 = tpu.dynamic_rotate %435 by %c240_i32_459 dim 1 : vector<8x256xf32>, i32 -> vector<8x256xf32>
    %c7_460 = arith.constant 7 : index
    %c0_461 = arith.constant 0 : index
    %c0_462 = arith.constant 0 : index
    %489 = vector.load %arg2[%c7_460, %c0_461, %c0_462] : memref<9x8x256xf32, #tpu.memory_space<vmem>>, vector<1x8x256xf32>
    %490 = vector.shape_cast %489 : vector<1x8x256xf32> to vector<8x256xf32>
    %491 = arith.mulf %488, %490 : vector<8x256xf32>
    %c7_463 = arith.constant 7 : index
    %c0_464 = arith.constant 0 : index
    %c0_465 = arith.constant 0 : index
    %492 = vector.load %arg7[%c7_463, %c0_464, %c0_465] : memref<9x8x8xf32, #tpu.memory_space<vmem>>, vector<1x8x8xf32>
    %493 = vector.shape_cast %492 : vector<1x8x8xf32> to vector<8x8xf32>
    %cst_466 = arith.constant dense<0.000000e+00> : vector<8x256xf32>
    %494 = tpu.matmul %493, %491, %cst_466 {dimension_numbers = #tpu.dot_dimension_numbers<[1], [0], [0], [1], [0, 0, 1, 1], [], []>} : vector<8x8xf32>, vector<8x256xf32>, vector<8x256xf32> -> vector<8x256xf32>
    %495 = arith.addf %487, %494 : vector<8x256xf32>
    %c239_i32_467 = arith.constant 239 : i32
    %496 = tpu.dynamic_rotate %435 by %c239_i32_467 dim 1 : vector<8x256xf32>, i32 -> vector<8x256xf32>
    %c8_468 = arith.constant 8 : index
    %c0_469 = arith.constant 0 : index
    %c0_470 = arith.constant 0 : index
    %497 = vector.load %arg2[%c8_468, %c0_469, %c0_470] : memref<9x8x256xf32, #tpu.memory_space<vmem>>, vector<1x8x256xf32>
    %498 = vector.shape_cast %497 : vector<1x8x256xf32> to vector<8x256xf32>
    %499 = arith.mulf %496, %498 : vector<8x256xf32>
    %c8_471 = arith.constant 8 : index
    %c0_472 = arith.constant 0 : index
    %c0_473 = arith.constant 0 : index
    %500 = vector.load %arg7[%c8_471, %c0_472, %c0_473] : memref<9x8x8xf32, #tpu.memory_space<vmem>>, vector<1x8x8xf32>
    %501 = vector.shape_cast %500 : vector<1x8x8xf32> to vector<8x8xf32>
    %cst_474 = arith.constant dense<0.000000e+00> : vector<8x256xf32>
    %502 = tpu.matmul %501, %499, %cst_474 {dimension_numbers = #tpu.dot_dimension_numbers<[1], [0], [0], [1], [0, 0, 1, 1], [], []>} : vector<8x8xf32>, vector<8x256xf32>, vector<8x256xf32> -> vector<8x256xf32>
    %503 = arith.addf %495, %502 : vector<8x256xf32>
    %cst_475 = arith.constant 0.000000e+00 : f32
    %504 = vector.broadcast %cst_475 : f32 to vector<8x256xf32>
    %505 = arith.maximumf %503, %504 : vector<8x256xf32>
    %506 = arith.addf %365, %505 : vector<8x256xf32>
    %c17_i32_476 = arith.constant 17 : i32
    %507 = tpu.dynamic_rotate %506 by %c17_i32_476 dim 1 : vector<8x256xf32>, i32 -> vector<8x256xf32>
    %c0_477 = arith.constant 0 : index
    %c0_478 = arith.constant 0 : index
    %c0_479 = arith.constant 0 : index
    %508 = vector.load %arg2[%c0_477, %c0_478, %c0_479] : memref<9x8x256xf32, #tpu.memory_space<vmem>>, vector<1x8x256xf32>
    %509 = vector.shape_cast %508 : vector<1x8x256xf32> to vector<8x256xf32>
    %510 = arith.mulf %507, %509 : vector<8x256xf32>
    %c0_480 = arith.constant 0 : index
    %c0_481 = arith.constant 0 : index
    %c0_482 = arith.constant 0 : index
    %511 = vector.load %arg9[%c0_480, %c0_481, %c0_482] : memref<9x8x8xf32, #tpu.memory_space<vmem>>, vector<1x8x8xf32>
    %512 = vector.shape_cast %511 : vector<1x8x8xf32> to vector<8x8xf32>
    %cst_483 = arith.constant dense<0.000000e+00> : vector<8x256xf32>
    %513 = tpu.matmul %512, %510, %cst_483 {dimension_numbers = #tpu.dot_dimension_numbers<[1], [0], [0], [1], [0, 0, 1, 1], [], []>} : vector<8x8xf32>, vector<8x256xf32>, vector<8x256xf32> -> vector<8x256xf32>
    %514 = arith.addf %13, %513 : vector<8x256xf32>
    %c16_i32_484 = arith.constant 16 : i32
    %515 = tpu.dynamic_rotate %506 by %c16_i32_484 dim 1 : vector<8x256xf32>, i32 -> vector<8x256xf32>
    %c1_485 = arith.constant 1 : index
    %c0_486 = arith.constant 0 : index
    %c0_487 = arith.constant 0 : index
    %516 = vector.load %arg2[%c1_485, %c0_486, %c0_487] : memref<9x8x256xf32, #tpu.memory_space<vmem>>, vector<1x8x256xf32>
    %517 = vector.shape_cast %516 : vector<1x8x256xf32> to vector<8x256xf32>
    %518 = arith.mulf %515, %517 : vector<8x256xf32>
    %c1_488 = arith.constant 1 : index
    %c0_489 = arith.constant 0 : index
    %c0_490 = arith.constant 0 : index
    %519 = vector.load %arg9[%c1_488, %c0_489, %c0_490] : memref<9x8x8xf32, #tpu.memory_space<vmem>>, vector<1x8x8xf32>
    %520 = vector.shape_cast %519 : vector<1x8x8xf32> to vector<8x8xf32>
    %cst_491 = arith.constant dense<0.000000e+00> : vector<8x256xf32>
    %521 = tpu.matmul %520, %518, %cst_491 {dimension_numbers = #tpu.dot_dimension_numbers<[1], [0], [0], [1], [0, 0, 1, 1], [], []>} : vector<8x8xf32>, vector<8x256xf32>, vector<8x256xf32> -> vector<8x256xf32>
    %522 = arith.addf %514, %521 : vector<8x256xf32>
    %c15_i32_492 = arith.constant 15 : i32
    %523 = tpu.dynamic_rotate %506 by %c15_i32_492 dim 1 : vector<8x256xf32>, i32 -> vector<8x256xf32>
    %c2_493 = arith.constant 2 : index
    %c0_494 = arith.constant 0 : index
    %c0_495 = arith.constant 0 : index
    %524 = vector.load %arg2[%c2_493, %c0_494, %c0_495] : memref<9x8x256xf32, #tpu.memory_space<vmem>>, vector<1x8x256xf32>
    %525 = vector.shape_cast %524 : vector<1x8x256xf32> to vector<8x256xf32>
    %526 = arith.mulf %523, %525 : vector<8x256xf32>
    %c2_496 = arith.constant 2 : index
    %c0_497 = arith.constant 0 : index
    %c0_498 = arith.constant 0 : index
    %527 = vector.load %arg9[%c2_496, %c0_497, %c0_498] : memref<9x8x8xf32, #tpu.memory_space<vmem>>, vector<1x8x8xf32>
    %528 = vector.shape_cast %527 : vector<1x8x8xf32> to vector<8x8xf32>
    %cst_499 = arith.constant dense<0.000000e+00> : vector<8x256xf32>
    %529 = tpu.matmul %528, %526, %cst_499 {dimension_numbers = #tpu.dot_dimension_numbers<[1], [0], [0], [1], [0, 0, 1, 1], [], []>} : vector<8x8xf32>, vector<8x256xf32>, vector<8x256xf32> -> vector<8x256xf32>
    %530 = arith.addf %522, %529 : vector<8x256xf32>
    %c1_i32_500 = arith.constant 1 : i32
    %531 = tpu.dynamic_rotate %506 by %c1_i32_500 dim 1 : vector<8x256xf32>, i32 -> vector<8x256xf32>
    %c3_501 = arith.constant 3 : index
    %c0_502 = arith.constant 0 : index
    %c0_503 = arith.constant 0 : index
    %532 = vector.load %arg2[%c3_501, %c0_502, %c0_503] : memref<9x8x256xf32, #tpu.memory_space<vmem>>, vector<1x8x256xf32>
    %533 = vector.shape_cast %532 : vector<1x8x256xf32> to vector<8x256xf32>
    %534 = arith.mulf %531, %533 : vector<8x256xf32>
    %c3_504 = arith.constant 3 : index
    %c0_505 = arith.constant 0 : index
    %c0_506 = arith.constant 0 : index
    %535 = vector.load %arg9[%c3_504, %c0_505, %c0_506] : memref<9x8x8xf32, #tpu.memory_space<vmem>>, vector<1x8x8xf32>
    %536 = vector.shape_cast %535 : vector<1x8x8xf32> to vector<8x8xf32>
    %cst_507 = arith.constant dense<0.000000e+00> : vector<8x256xf32>
    %537 = tpu.matmul %536, %534, %cst_507 {dimension_numbers = #tpu.dot_dimension_numbers<[1], [0], [0], [1], [0, 0, 1, 1], [], []>} : vector<8x8xf32>, vector<8x256xf32>, vector<8x256xf32> -> vector<8x256xf32>
    %538 = arith.addf %530, %537 : vector<8x256xf32>
    %c4_508 = arith.constant 4 : index
    %c0_509 = arith.constant 0 : index
    %c0_510 = arith.constant 0 : index
    %539 = vector.load %arg9[%c4_508, %c0_509, %c0_510] : memref<9x8x8xf32, #tpu.memory_space<vmem>>, vector<1x8x8xf32>
    %540 = vector.shape_cast %539 : vector<1x8x8xf32> to vector<8x8xf32>
    %cst_511 = arith.constant dense<0.000000e+00> : vector<8x256xf32>
    %541 = tpu.matmul %540, %506, %cst_511 {dimension_numbers = #tpu.dot_dimension_numbers<[1], [0], [0], [1], [0, 0, 1, 1], [], []>} : vector<8x8xf32>, vector<8x256xf32>, vector<8x256xf32> -> vector<8x256xf32>
    %542 = arith.addf %538, %541 : vector<8x256xf32>
    %c255_i32_512 = arith.constant 255 : i32
    %543 = tpu.dynamic_rotate %506 by %c255_i32_512 dim 1 : vector<8x256xf32>, i32 -> vector<8x256xf32>
    %c5_513 = arith.constant 5 : index
    %c0_514 = arith.constant 0 : index
    %c0_515 = arith.constant 0 : index
    %544 = vector.load %arg2[%c5_513, %c0_514, %c0_515] : memref<9x8x256xf32, #tpu.memory_space<vmem>>, vector<1x8x256xf32>
    %545 = vector.shape_cast %544 : vector<1x8x256xf32> to vector<8x256xf32>
    %546 = arith.mulf %543, %545 : vector<8x256xf32>
    %c5_516 = arith.constant 5 : index
    %c0_517 = arith.constant 0 : index
    %c0_518 = arith.constant 0 : index
    %547 = vector.load %arg9[%c5_516, %c0_517, %c0_518] : memref<9x8x8xf32, #tpu.memory_space<vmem>>, vector<1x8x8xf32>
    %548 = vector.shape_cast %547 : vector<1x8x8xf32> to vector<8x8xf32>
    %cst_519 = arith.constant dense<0.000000e+00> : vector<8x256xf32>
    %549 = tpu.matmul %548, %546, %cst_519 {dimension_numbers = #tpu.dot_dimension_numbers<[1], [0], [0], [1], [0, 0, 1, 1], [], []>} : vector<8x8xf32>, vector<8x256xf32>, vector<8x256xf32> -> vector<8x256xf32>
    %550 = arith.addf %542, %549 : vector<8x256xf32>
    %c241_i32_520 = arith.constant 241 : i32
    %551 = tpu.dynamic_rotate %506 by %c241_i32_520 dim 1 : vector<8x256xf32>, i32 -> vector<8x256xf32>
    %c6_521 = arith.constant 6 : index
    %c0_522 = arith.constant 0 : index
    %c0_523 = arith.constant 0 : index
    %552 = vector.load %arg2[%c6_521, %c0_522, %c0_523] : memref<9x8x256xf32, #tpu.memory_space<vmem>>, vector<1x8x256xf32>
    %553 = vector.shape_cast %552 : vector<1x8x256xf32> to vector<8x256xf32>
    %554 = arith.mulf %551, %553 : vector<8x256xf32>
    %c6_524 = arith.constant 6 : index
    %c0_525 = arith.constant 0 : index
    %c0_526 = arith.constant 0 : index
    %555 = vector.load %arg9[%c6_524, %c0_525, %c0_526] : memref<9x8x8xf32, #tpu.memory_space<vmem>>, vector<1x8x8xf32>
    %556 = vector.shape_cast %555 : vector<1x8x8xf32> to vector<8x8xf32>
    %cst_527 = arith.constant dense<0.000000e+00> : vector<8x256xf32>
    %557 = tpu.matmul %556, %554, %cst_527 {dimension_numbers = #tpu.dot_dimension_numbers<[1], [0], [0], [1], [0, 0, 1, 1], [], []>} : vector<8x8xf32>, vector<8x256xf32>, vector<8x256xf32> -> vector<8x256xf32>
    %558 = arith.addf %550, %557 : vector<8x256xf32>
    %c240_i32_528 = arith.constant 240 : i32
    %559 = tpu.dynamic_rotate %506 by %c240_i32_528 dim 1 : vector<8x256xf32>, i32 -> vector<8x256xf32>
    %c7_529 = arith.constant 7 : index
    %c0_530 = arith.constant 0 : index
    %c0_531 = arith.constant 0 : index
    %560 = vector.load %arg2[%c7_529, %c0_530, %c0_531] : memref<9x8x256xf32, #tpu.memory_space<vmem>>, vector<1x8x256xf32>
    %561 = vector.shape_cast %560 : vector<1x8x256xf32> to vector<8x256xf32>
    %562 = arith.mulf %559, %561 : vector<8x256xf32>
    %c7_532 = arith.constant 7 : index
    %c0_533 = arith.constant 0 : index
    %c0_534 = arith.constant 0 : index
    %563 = vector.load %arg9[%c7_532, %c0_533, %c0_534] : memref<9x8x8xf32, #tpu.memory_space<vmem>>, vector<1x8x8xf32>
    %564 = vector.shape_cast %563 : vector<1x8x8xf32> to vector<8x8xf32>
    %cst_535 = arith.constant dense<0.000000e+00> : vector<8x256xf32>
    %565 = tpu.matmul %564, %562, %cst_535 {dimension_numbers = #tpu.dot_dimension_numbers<[1], [0], [0], [1], [0, 0, 1, 1], [], []>} : vector<8x8xf32>, vector<8x256xf32>, vector<8x256xf32> -> vector<8x256xf32>
    %566 = arith.addf %558, %565 : vector<8x256xf32>
    %c239_i32_536 = arith.constant 239 : i32
    %567 = tpu.dynamic_rotate %506 by %c239_i32_536 dim 1 : vector<8x256xf32>, i32 -> vector<8x256xf32>
    %c8_537 = arith.constant 8 : index
    %c0_538 = arith.constant 0 : index
    %c0_539 = arith.constant 0 : index
    %568 = vector.load %arg2[%c8_537, %c0_538, %c0_539] : memref<9x8x256xf32, #tpu.memory_space<vmem>>, vector<1x8x256xf32>
    %569 = vector.shape_cast %568 : vector<1x8x256xf32> to vector<8x256xf32>
    %570 = arith.mulf %567, %569 : vector<8x256xf32>
    %c8_540 = arith.constant 8 : index
    %c0_541 = arith.constant 0 : index
    %c0_542 = arith.constant 0 : index
    %571 = vector.load %arg9[%c8_540, %c0_541, %c0_542] : memref<9x8x8xf32, #tpu.memory_space<vmem>>, vector<1x8x8xf32>
    %572 = vector.shape_cast %571 : vector<1x8x8xf32> to vector<8x8xf32>
    %cst_543 = arith.constant dense<0.000000e+00> : vector<8x256xf32>
    %573 = tpu.matmul %572, %570, %cst_543 {dimension_numbers = #tpu.dot_dimension_numbers<[1], [0], [0], [1], [0, 0, 1, 1], [], []>} : vector<8x8xf32>, vector<8x256xf32>, vector<8x256xf32> -> vector<8x256xf32>
    %574 = arith.addf %566, %573 : vector<8x256xf32>
    %575 = arith.negf %574 : vector<8x256xf32>
    %576 = math.exp %575 : vector<8x256xf32>
    %cst_544 = arith.constant 1.000000e+00 : f32
    %577 = vector.broadcast %cst_544 : f32 to vector<8x256xf32>
    %578 = arith.addf %577, %576 : vector<8x256xf32>
    %579 = arith.divf %577, %578 : vector<8x256xf32>
    %580 = arith.subf %1, %579 : vector<8x256xf32>
    %c0_545 = arith.constant 0 : index
    %c0_546 = arith.constant 0 : index
    %c0_547 = arith.constant 0 : index
    %581 = vector.load %arg11[%c0_545, %c0_546, %c0_547] : memref<1x8x256xf32, #tpu.memory_space<vmem>>, vector<1x8x256xf32>
    %582 = vector.shape_cast %581 : vector<1x8x256xf32> to vector<8x256xf32>
    %583 = vector.shape_cast %580 : vector<8x256xf32> to vector<1x8x256xf32>
    tpu.vector_store %arg11[%c0_545, %c0_546, %c0_547], %583 {strides = array<i32>} : memref<1x8x256xf32, #tpu.memory_space<vmem>>, vector<1x8x256xf32>,
    return
  }
  func.func @transform_0(%arg0: i32) -> (i32, i32, i32) {
    %c0_i32 = arith.constant 0 : i32
    %c0_i32_0 = arith.constant 0 : i32
    %c0_i32_1 = arith.constant 0 : i32
    return %arg0, %c0_i32, %c0_i32_0 : i32, i32, i32
  }
  func.func @transform_1(%arg0: i32) -> (i32, i32, i32) {
    %c0_i32 = arith.constant 0 : i32
    %c0_i32_0 = arith.constant 0 : i32
    %c0_i32_1 = arith.constant 0 : i32
    %c0_i32_2 = arith.constant 0 : i32
    return %c0_i32, %c0_i32_0, %c0_i32_1 : i32, i32, i32
  }
  func.func @transform_2(%arg0: i32) -> (i32, i32, i32) {
    %c0_i32 = arith.constant 0 : i32
    %c0_i32_0 = arith.constant 0 : i32
    %c0_i32_1 = arith.constant 0 : i32
    %c0_i32_2 = arith.constant 0 : i32
    return %c0_i32, %c0_i32_0, %c0_i32_1 : i32, i32, i32
  }
  func.func @transform_3(%arg0: i32) -> (i32, i32) {
    %c0_i32 = arith.constant 0 : i32
    %c0_i32_0 = arith.constant 0 : i32
    %c0_i32_1 = arith.constant 0 : i32
    return %c0_i32, %c0_i32_0 : i32, i32
  }
  func.func @transform_4(%arg0: i32) -> (i32, i32, i32) {
    %c0_i32 = arith.constant 0 : i32
    %c0_i32_0 = arith.constant 0 : i32
    %c0_i32_1 = arith.constant 0 : i32
    %c0_i32_2 = arith.constant 0 : i32
    return %c0_i32, %c0_i32_0, %c0_i32_1 : i32, i32, i32
  }
  func.func @transform_5(%arg0: i32) -> (i32, i32) {
    %c0_i32 = arith.constant 0 : i32
    %c0_i32_0 = arith.constant 0 : i32
    %c0_i32_1 = arith.constant 0 : i32
    return %c0_i32, %c0_i32_0 : i32, i32
  }
  func.func @transform_6(%arg0: i32) -> (i32, i32, i32) {
    %c0_i32 = arith.constant 0 : i32
    %c0_i32_0 = arith.constant 0 : i32
    %c0_i32_1 = arith.constant 0 : i32
    %c0_i32_2 = arith.constant 0 : i32
    return %c0_i32, %c0_i32_0, %c0_i32_1 : i32, i32, i32
  }
  func.func @transform_7(%arg0: i32) -> (i32, i32) {
    %c0_i32 = arith.constant 0 : i32
    %c0_i32_0 = arith.constant 0 : i32
    %c0_i32_1 = arith.constant 0 : i32
    return %c0_i32, %c0_i32_0 : i32, i32
  }
  func.func @transform_8(%arg0: i32) -> (i32, i32, i32) {
    %c0_i32 = arith.constant 0 : i32
    %c0_i32_0 = arith.constant 0 : i32
    %c0_i32_1 = arith.constant 0 : i32
    %c0_i32_2 = arith.constant 0 : i32
    return %c0_i32, %c0_i32_0, %c0_i32_1 : i32, i32, i32
  }
  func.func @transform_9(%arg0: i32) -> (i32, i32) {
    %c0_i32 = arith.constant 0 : i32
    %c0_i32_0 = arith.constant 0 : i32
    %c0_i32_1 = arith.constant 0 : i32
    return %c0_i32, %c0_i32_0 : i32, i32
  }
  func.func @transform_10(%arg0: i32) -> (i32, i32, i32) {
    %c0_i32 = arith.constant 0 : i32
    %c0_i32_0 = arith.constant 0 : i32
    %c0_i32_1 = arith.constant 0 : i32
    return %arg0, %c0_i32, %c0_i32_0 : i32, i32, i32
  }
}

</mosaic_0001>

<bundles_post_ra>
// kernel: tpu_custom_call.1
= control target key start
LH: loop header
LB: loop body
LE: loop exit
PB: predicated region body
PF: predicated region fallthrough
CT: control target
= control target key end

     0   :  { %s5480_s0 = inlined_call_operand.vmem [shape: f32[1,8,256], index: 0, kind: input, shape index: {}]   ;;  %s5481_s1 = inlined_call_operand.vmem [shape: f32[9,8,256], index: 1, kind: input, shape index: {}]   ;;  %s5482_s2 = inlined_call_operand.vmem [shape: f32[9,8,8], index: 2, kind: input, shape index: {}]   ;;  %s5483_s3 = inlined_call_operand.vmem [shape: f32[8,1], index: 3, kind: input, shape index: {}]   ;;  %s5484_s4 = inlined_call_operand.vmem [shape: f32[9,8,8], index: 4, kind: input, shape index: {}]   ;;  %s5485_s5 = inlined_call_operand.vmem [shape: f32[8,1], index: 5, kind: input, shape index: {}]   ;;  %s5486_s6 = inlined_call_operand.vmem [shape: f32[9,8,8], index: 6, kind: input, shape index: {}]   ;;  %s5487_s7 = inlined_call_operand.vmem [shape: f32[8,1], index: 7, kind: input, shape index: {}]   ;;  %s5488_s8 = inlined_call_operand.vmem [shape: f32[9,8,8], index: 8, kind: input, shape index: {}]   ;;  %s5489_s9 = inlined_call_operand.vmem [shape: f32[8,1], index: 9, kind: input, shape index: {}]   ;;  %s5490_s10 = inlined_call_operand.hbm [shape: f32[1,8,256], index: 10, kind: output, shape index: {}]  }
   0x1   :  { %v4228_v0 = vld [vmem:[%s5480_s0] sm:$0xff] }
   0x2   :  { %15 = vsyncpa [#allocation3], 0  ;;  %s4160_s15 = smov 16   ;;  %s4161_s16 = smov 17   ;;  %v4239_v1 = vld [vmem:[%s5480_s0 + $0x8] sm:$0xff]  ;;  %v38_v2 = vld [vmem:[%s5483_s3] sm:$0xff]  ;;  %v66_v5 = vlaneseq }
   0x3   :  { %122 = vrot.lane.b32.xlu1 %v4228_v0, %s4160_s15  ;;  %62 = vrot.lane.b32.xlu0 %v4228_v0, %s4161_s16  ;;  %s4162_s17 = smov 15   ;;  %s4163_s20 = smov 1   ;;  %v4168_v4 = vmov 0   ;;  %v4277_v10 = vld [vmem:[%s5481_s1] sm:$0xff]  ;;  %v4283_v11 = vld [vmem:[%s5481_s1 + $0x8] sm:$0xff]  ;;  %vm76_vm3 = vcmask 64512  }
   0x4   :  { %181 = vrot.lane.b32.xlu2 %v4228_v0, %s4162_s17  ;;  %s4164_s21 = smov 127   ;;  %s4165_s22 = smov 113   ;;  %4088 = vset.pattern.permute.xlu1 %v4168_v4  ;;  %v4270_v8 = vand.u32 127, %v66_v5  ;;  %v4288_v12 = vld [vmem:[%s5481_s1 + $0x10] sm:$0xff]  ;;  %v4293_v13 = vld [vmem:[%s5481_s1 + $0x18] sm:$0xff]  ;;  %v4310_v22 = vld [vmem:[%s5481_s1 + $0x20] sm:$0xff] }
   0x5   :  { %s4166_s23 = smov 112   ;;  %s4167_s24 = smov 111   ;;  %4089 = vset.pattern.permute.xlu0 %v4168_v4  ;;  %v4315_v23 = vld [vmem:[%s5481_s1 + $0x28] sm:$0xff]  ;;  %v75_v28 = vld [vmem:[%s5482_s2] sm:$0xff]  ;;  %v4337_v33 = vld [vmem:[%s5481_s1 + $0x30] sm:$0xff] }
   0x6   :  { %vm185_vm0 = vcmp.lt.s32.totalorder %v4270_v8, 15  ;;  %vm68_vm1 = vcmp.lt.s32.totalorder %v4270_v8, 17  ;;  %vm126_vm2 = vcmp.lt.s32.totalorder %v4270_v8, 16  ;;  %v3890_v29 = vld [vmem:[%s5482_s2 + $0x8] sm:$0xff]  ;;  %vm244_vm4 = vcmp.lt.s32.totalorder %v4270_v8, 1  ;;  %v4342_v34 = vld [vmem:[%s5481_s1 + $0x38] sm:$0xff] }
   0x7   :  { %v3895_v41 = vld [vmem:[%s5482_s2 + $0x10] sm:$0xff]  ;;  %v3900_v42 = vld [vmem:[%s5482_s2 + $0x18] sm:$0xff]  ;;  %vm409_vm5 = vcmp.lt.s32.totalorder %v4270_v8, 113  ;;  %v4364_v44 = vld [vmem:[%s5481_s1 + $0x60] sm:$0xff]  ;;  %vm350_vm6 = vcmp.lt.s32.totalorder %v4270_v8, 127  ;;  %vm468_vm7 = vcmp.lt.s32.totalorder %v4270_v8, 112 }
   0x8   :  { %v4372_v45 = vld [vmem:[%s5481_s1 + $0x68] sm:$0xff]  ;;  %v4377_v46 = vld [vmem:[%s5481_s1 + $0x50] sm:$0xff]  ;;  %v4382_v47 = vld [vmem:[%s5481_s1 + $0x58] sm:$0xff]  ;;  %vm527_vm8 = vcmp.lt.s32.totalorder %v4270_v8, 111  ;;  %s3877_s28 = sshll.u32 %s5490_s10, 4  ;;  %s3878_s28 = int_to_ptr.hbm [resolvable:$true] %s3877_s28 }
   0x9   :  { %v3903_v58 = vld [vmem:[%s5482_s2 + $0x20] sm:$0xff]  ;;  %v3908_v59 = vld [vmem:[%s5482_s2 + $0x28] sm:$0xff]  ;;  %v4410_v60 = vld [vmem:[%s5481_s1 + $0x70] sm:$0xff] }
   0xa   :  { %v4415_v61 = vld [vmem:[%s5481_s1 + $0x78] sm:$0xff]  ;;  %v3913_v4 = vld [vmem:[%s5482_s2 + $0x30] sm:$0xff] }
   0xb   :  { %124 = vrot.lane.b32.xlu1 %v4239_v1, %s4160_s15  ;;  %64 = vrot.lane.b32.xlu0 %v4239_v1, %s4161_s16  ;;  %v3918_v5 = vld [vmem:[%s5482_s2 + $0x38] sm:$0xff] }
   0xc   :  { %183 = vrot.lane.b32.xlu2 %v4239_v1, %s4162_s17 }
  0x13   :  { %242 = vrot.lane.b32.xlu1 %v4239_v1, %s4163_s20  ;;  %240 = vrot.lane.b32.xlu0 %v4228_v0, %s4163_s20 }
  0x14   :  { %346 = vrot.lane.b32.xlu2 %v4228_v0, %s4164_s21 }
  0x1b   :  { %405 = vrot.lane.b32.xlu1 %v4228_v0, %s4165_s22  ;;  %348 = vrot.lane.b32.xlu0 %v4239_v1, %s4164_s21 }
  0x1c   :  { %407 = vrot.lane.b32.xlu2 %v4239_v1, %s4165_s22 }
  0x23   :  { %466 = vrot.lane.b32.xlu1 %v4239_v1, %s4166_s23  ;;  %464 = vrot.lane.b32.xlu0 %v4228_v0, %s4166_s23 }
  0x24   :  { %523 = vrot.lane.b32.xlu2 %v4228_v0, %s4167_s24 }
  0x2b   :  { %525 = vrot.lane.b32.xlu0 %v4239_v1, %s4167_s24  ;;  %41 = vperm.xlu1 %4088, %v38_v2  }
  0x5e   :  { %v182_v3 = vpop.permute.xlu2 %181 }
  0x66   :  { %v184_v9 = vpop.permute.xlu2 %183 }
  0x67   :  { %v186_v14 = vsel %vm185_vm0, %v182_v3, %v184_v9  ;;  %v187_v15 = vsel %vm185_vm0, %v184_v9, %v182_v3  ;;  %v4442_v9 = vld [vmem:[%s5481_s1 + $0x88] sm:$0xff] }
  0x68   :  { %v191_v30 = vmul.f32 %v4310_v22, %v187_v15  ;;  %v192_v31 = vmul.f32 %v4315_v23, %v186_v14 }
  0x6e   :  { %v347_v32 = vpop.permute.xlu2 %346 }
  0x75   :  { %v123_v6 = vpop.permute.xlu1 %122  ;;  %v63_v7 = vpop.permute.xlu0 %62 }
  0x76   :  { %v408_v43 = vpop.permute.xlu2 %407 }
  0x7d   :  { %v125_v16 = vpop.permute.xlu1 %124  ;;  %v65_v17 = vpop.permute.xlu0 %64 }
  0x7e   :  { %v70_v18 = vsel %vm68_vm1, %v65_v17, %v63_v7  ;;  %v69_v19 = vsel %vm68_vm1, %v63_v7, %v65_v17  ;;  %v128_v20 = vsel %vm126_vm2, %v125_v16, %v123_v6  ;;  %v127_v21 = vsel %vm126_vm2, %v123_v6, %v125_v16  ;;  %v524_v6 = vpop.permute.xlu2 %523  ;;  %v4437_v7 = vld [vmem:[%s5481_s1 + $0x80] sm:$0xff] }
  0x7f   :  { %v73_v24 = vmul.f32 %v4277_v10, %v70_v18  ;;  %v74_v25 = vmul.f32 %v4283_v11, %v69_v19  ;;  %v132_v26 = vmul.f32 %v4288_v12, %v128_v20  ;;  %v133_v27 = vmul.f32 %v4293_v13, %v127_v21  ;;  %v3923_v19 = vld [vmem:[%s5482_s2 + $0x40] sm:$0xff] }
  0x81   :  { %95 = vmatpush.msra.mxu0 %v73_v24  ;;  %115 = vmatpush.msra.mxu1 %v74_v25 }
  0x82   :  { %154 = vmatpush.msra.mxu2 %v132_v26  ;;  %174 = vmatpush.msra.mxu3 %v133_v27 }
  0x83   :  { %3886 = vmatmul.msk.f32.vlgmr.msra.gmra.mxu0 %vm76_vm3, %v75_v28  ;;  %3887 = vmatmul.msk.f32.vlgmr.msra.gmra.mxu1 %vm76_vm3, %v75_v28 }
  0x84   :  { %3891 = vmatmul.msk.f32.vlgmr.msra.gmra.mxu2 %vm76_vm3, %v3890_v29  ;;  %3892 = vmatmul.msk.f32.vlgmr.msra.gmra.mxu3 %vm76_vm3, %v3890_v29 }
  0x85   :  { %213 = vmatpush.msrb.mxu0 %v191_v30  ;;  %233 = vmatpush.msrb.mxu1 %v192_v31  ;;  %v243_v35 = vpop.permute.xlu1 %242  ;;  %v241_v36 = vpop.permute.xlu0 %240 }
  0x86   :  { %v245_v37 = vsel %vm244_vm4, %v241_v36, %v243_v35  ;;  %v246_v38 = vsel %vm244_vm4, %v243_v35, %v241_v36 }
  0x87   :  { %319 = vmatpush.msra.mxu0 %v4228_v0  ;;  %339 = vmatpush.msra.mxu1 %v4239_v1  ;;  %v250_v39 = vmul.f32 %v4337_v33, %v246_v38  ;;  %v251_v40 = vmul.f32 %v4342_v34, %v245_v37 }
  0x89   :  { %272 = vmatpush.msrb.mxu2 %v250_v39  ;;  %292 = vmatpush.msrb.mxu3 %v251_v40 }
  0x8b   :  { %3896 = vmatmul.msk.f32.vlgmr.msrb.gmra.mxu0 %vm76_vm3, %v3895_v41  ;;  %3897 = vmatmul.msk.f32.vlgmr.msrb.gmra.mxu1 %vm76_vm3, %v3895_v41 }
  0x8c   :  { %3901 = vmatmul.msk.f32.vlgmr.msrb.gmra.mxu2 %vm76_vm3, %v3900_v42  ;;  %3902 = vmatmul.msk.f32.vlgmr.msrb.gmra.mxu3 %vm76_vm3, %v3900_v42 }
  0x8d   :  { %v406_v48 = vpop.permute.xlu1 %405  ;;  %v349_v49 = vpop.permute.xlu0 %348 }
  0x8e   :  { %v410_v50 = vsel %vm409_vm5, %v406_v48, %v408_v43  ;;  %v411_v51 = vsel %vm409_vm5, %v408_v43, %v406_v48  ;;  %v351_v52 = vsel %vm350_vm6, %v347_v32, %v349_v49  ;;  %v352_v53 = vsel %vm350_vm6, %v349_v49, %v347_v32 }
  0x8f   :  { %v415_v54 = vmul.f32 %v4364_v44, %v410_v50  ;;  %v416_v55 = vmul.f32 %v4372_v45, %v411_v51  ;;  %v356_v56 = vmul.f32 %v4377_v46, %v351_v52  ;;  %v357_v57 = vmul.f32 %v4382_v47, %v352_v53 }
  0x91   :  { %378 = vmatpush.msra.mxu2 %v356_v56  ;;  %398 = vmatpush.msra.mxu3 %v357_v57 }
  0x92   :  { %437 = vmatpush.msrb.mxu0 %v415_v54  ;;  %457 = vmatpush.msrb.mxu1 %v416_v55 }
  0x93   :  { %3904 = vmatmul.msk.f32.vlgmr.msra.gmra.mxu0 %vm76_vm3, %v3903_v58  ;;  %3905 = vmatmul.msk.f32.vlgmr.msra.gmra.mxu1 %vm76_vm3, %v3903_v58 }
  0x94   :  { %3909 = vmatmul.msk.f32.vlgmr.msra.gmra.mxu2 %vm76_vm3, %v3908_v59  ;;  %3910 = vmatmul.msk.f32.vlgmr.msra.gmra.mxu3 %vm76_vm3, %v3908_v59 }
  0x95   :  { %v467_v62 = vpop.permute.xlu1 %466  ;;  %v465_v63 = vpop.permute.xlu0 %464 }
  0x96   :  { %v469_v0 = vsel %vm468_vm7, %v465_v63, %v467_v62  ;;  %v470_v1 = vsel %vm468_vm7, %v467_v62, %v465_v63 }
  0x97   :  { %v474_v2 = vmul.f32 %v4410_v60, %v469_v0  ;;  %v475_v3 = vmul.f32 %v4415_v61, %v470_v1 }
  0x99   :  { %496 = vmatpush.msrb.mxu2 %v474_v2  ;;  %516 = vmatpush.msrb.mxu3 %v475_v3 }
  0x9b   :  { %3914 = vmatmul.msk.f32.vlgmr.msrb.gmra.mxu0 %vm76_vm3, %v3913_v4  ;;  %3915 = vmatmul.msk.f32.vlgmr.msrb.gmra.mxu1 %vm76_vm3, %v3913_v4 }
  0x9c   :  { %3919 = vmatmul.msk.f32.vlgmr.msrb.gmra.mxu2 %vm76_vm3, %v3918_v5  ;;  %3920 = vmatmul.msk.f32.vlgmr.msrb.gmra.mxu3 %vm76_vm3, %v3918_v5 }
  0x9d   :  { %v526_v14 = vpop.permute.xlu0 %525  ;;  %v42_v28 = vpop.permute.xlu1 %41 }
  0x9e   :  { %v528_v15 = vsel %vm527_vm8, %v524_v6, %v526_v14  ;;  %v529_v16 = vsel %vm527_vm8, %v526_v14, %v524_v6  ;;  %v44_v14 = vld [vmem:[%s5485_s5] sm:$0xff] }
  0x9f   :  { %v533_v17 = vmul.f32 %v4437_v7, %v528_v15  ;;  %v534_v18 = vmul.f32 %v4442_v9, %v529_v16 }
  0xa1   :  { %555 = vmatpush.msra.mxu0 %v533_v17  ;;  %575 = vmatpush.msra.mxu1 %v534_v18 }
  0xa3   :  { %3924 = vmatmul.msk.f32.vlgmr.msra.gmra.mxu0 %vm76_vm3, %v3923_v19  ;;  %3925 = vmatmul.msk.f32.vlgmr.msra.gmra.mxu1 %vm76_vm3, %v3923_v19 }
 0x100   :  { %v97_v20 = vpop.f32.mrf.mxu0  ;;  %v117_v21 = vpop.f32.mrf.mxu1 }
 0x101   :  { %v120_v29 = vadd.f32 %v97_v20, %v42_v28  ;;  %v121_v30 = vadd.f32 %v117_v21, %v42_v28  ;;  %v4509_v28 = vld [vmem:[%s5484_s4] sm:$0xff] }
 0x107   :  { %v156_v24 = vpop.f32.mrf.mxu2  ;;  %v176_v25 = vpop.f32.mrf.mxu3 }
 0x108   :  { %v215_v26 = vpop.f32.mrf.mxu0  ;;  %v235_v27 = vpop.f32.mrf.mxu1  ;;  %v179_v31 = vadd.f32 %v156_v24, %v120_v29  ;;  %v180_v32 = vadd.f32 %v176_v25, %v121_v30 }
 0x10a   :  { %v238_v39 = vadd.f32 %v215_v26, %v179_v31  ;;  %v239_v40 = vadd.f32 %v235_v27, %v180_v32 }
 0x10f   :  { %v274_v35 = vpop.f32.mrf.mxu2  ;;  %v294_v36 = vpop.f32.mrf.mxu3 }
 0x110   :  { %v321_v37 = vpop.f32.mrf.mxu0  ;;  %v341_v38 = vpop.f32.mrf.mxu1  ;;  %v297_v41 = vadd.f32 %v274_v35, %v238_v39  ;;  %v298_v42 = vadd.f32 %v294_v36, %v239_v40 }
 0x112   :  { %v344_v49 = vadd.f32 %v321_v37, %v297_v41  ;;  %v345_v50 = vadd.f32 %v341_v38, %v298_v42  ;;  %v4526_v37 = vld [vmem:[%s5484_s4 + $0x8] sm:$0xff]  ;;  %v4531_v38 = vld [vmem:[%s5484_s4 + $0x10] sm:$0xff] }
 0x117   :  { %v380_v43 = vpop.f32.mrf.mxu2  ;;  %v400_v48 = vpop.f32.mrf.mxu3 }
 0x118   :  { %v439_v51 = vpop.f32.mrf.mxu0  ;;  %v459_v52 = vpop.f32.mrf.mxu1  ;;  %v403_v53 = vadd.f32 %v380_v43, %v344_v49  ;;  %v404_v54 = vadd.f32 %v400_v48, %v345_v50 }
 0x11a   :  { %v462_v55 = vadd.f32 %v439_v51, %v403_v53  ;;  %v463_v56 = vadd.f32 %v459_v52, %v404_v54  ;;  %v4556_v54 = vld [vmem:[%s5484_s4 + $0x18] sm:$0xff] }
 0x11f   :  { %v498_v57 = vpop.f32.mrf.mxu2  ;;  %v518_v58 = vpop.f32.mrf.mxu3 }
 0x120   :  { %v521_v59 = vadd.f32 %v498_v57, %v462_v55  ;;  %v522_v62 = vadd.f32 %v518_v58, %v463_v56  ;;  %v557_v63 = vpop.f32.mrf.mxu0  ;;  %v577_v0 = vpop.f32.mrf.mxu1  ;;  %v4561_v55 = vld [vmem:[%s5484_s4 + $0x20] sm:$0xff] }
 0x122   :  { %v580_v1 = vadd.f32 %v557_v63, %v521_v59  ;;  %v581_v2 = vadd.f32 %v577_v0, %v522_v62 }
 0x124   :  { %v4455_v3 = vmax.f32 %v580_v1, 0.0  ;;  %v4457_v4 = vmax.f32 %v581_v2, 0.0  ;;  %v4580_v1 = vld [vmem:[%s5484_s4 + $0x28] sm:$0xff]  ;;  %v4585_v2 = vld [vmem:[%s5484_s4 + $0x30] sm:$0xff] }
 0x126   :  { %586 = vrot.lane.b32.xlu0 %v4457_v4, %s4161_s16  ;;  %693 = vrot.lane.b32.xlu1 %v4455_v3, %s4162_s17 }
 0x127   :  { %584 = vrot.lane.b32.xlu2 %v4455_v3, %s4161_s16 }
 0x12e   :  { %638 = vrot.lane.b32.xlu0 %v4455_v3, %s4160_s15  ;;  %640 = vrot.lane.b32.xlu1 %v4457_v4, %s4160_s15 }
 0x12f   :  { %695 = vrot.lane.b32.xlu2 %v4457_v4, %s4162_s17 }
 0x136   :  { %750 = vrot.lane.b32.xlu0 %v4457_v4, %s4163_s20  ;;  %905 = vrot.lane.b32.xlu1 %v4455_v3, %s4165_s22 }
 0x137   :  { %748 = vrot.lane.b32.xlu2 %v4455_v3, %s4163_s20 }
 0x13e   :  { %850 = vrot.lane.b32.xlu0 %v4455_v3, %s4164_s21  ;;  %852 = vrot.lane.b32.xlu1 %v4457_v4, %s4164_s21 }
 0x13f   :  { %907 = vrot.lane.b32.xlu2 %v4457_v4, %s4165_s22 }
 0x146   :  { %1017 = vrot.lane.b32.xlu0 %v4457_v4, %s4167_s24  ;;  %960 = vrot.lane.b32.xlu1 %v4455_v3, %s4166_s23 }
 0x147   :  { %1015 = vrot.lane.b32.xlu2 %v4455_v3, %s4167_s24 }
 0x14e   :  { %47 = vperm.xlu0 %4089, %v44_v14  }
 0x14f   :  { %962 = vrot.lane.b32.xlu2 %v4457_v4, %s4166_s23 }
 0x181   :  { %v585_v5 = vpop.permute.xlu2 %584 }
 0x189   :  { %v696_v6 = vpop.permute.xlu2 %695 }
 0x191   :  { %v749_v17 = vpop.permute.xlu2 %748 }
 0x198   :  { %v587_v15 = vpop.permute.xlu0 %586  ;;  %v694_v16 = vpop.permute.xlu1 %693 }
 0x199   :  { %v588_v18 = vsel %vm68_vm1, %v585_v5, %v587_v15  ;;  %v589_v19 = vsel %vm68_vm1, %v587_v15, %v585_v5  ;;  %v697_v20 = vsel %vm185_vm0, %v694_v16, %v696_v6  ;;  %v698_v21 = vsel %vm185_vm0, %v696_v6, %v694_v16  ;;  %v908_v39 = vpop.permute.xlu2 %907 }
 0x19a   :  { %v590_v24 = vmul.f32 %v589_v19, %v4277_v10  ;;  %v591_v25 = vmul.f32 %v588_v18, %v4283_v11  ;;  %v699_v26 = vmul.f32 %v4310_v22, %v698_v21  ;;  %v700_v27 = vmul.f32 %v4315_v23, %v697_v20 }
 0x19c   :  { %611 = vmatpush.msra.mxu2 %v590_v24  ;;  %631 = vmatpush.msra.mxu3 %v591_v25  ;;  %v4610_v25 = vld [vmem:[%s5484_s4 + $0x38] sm:$0xff] }
 0x19d   :  { %3926 = vmatmul.msk.f32.vlgmr.msra.gmra.mxu2 %vm76_vm3, %v4509_v28  ;;  %3927 = vmatmul.msk.f32.vlgmr.msra.gmra.mxu3 %vm76_vm3, %v4509_v28 }
 0x19e   :  { %721 = vmatpush.msrb.mxu2 %v699_v26  ;;  %741 = vmatpush.msrb.mxu3 %v700_v27  ;;  %v4615_v26 = vld [vmem:[%s5484_s4 + $0x40] sm:$0xff] }
 0x1a0   :  { %823 = vmatpush.msra.mxu2 %v4455_v3  ;;  %843 = vmatpush.msra.mxu3 %v4457_v4  ;;  %v639_v29 = vpop.permute.xlu0 %638  ;;  %v641_v30 = vpop.permute.xlu1 %640 }
 0x1a1   :  { %v642_v31 = vsel %vm126_vm2, %v639_v29, %v641_v30  ;;  %v643_v32 = vsel %vm126_vm2, %v641_v30, %v639_v29  ;;  %v1016_v56 = vpop.permute.xlu2 %1015 }
 0x1a2   :  { %v644_v35 = vmul.f32 %v4288_v12, %v643_v32  ;;  %v645_v36 = vmul.f32 %v4293_v13, %v642_v31 }
 0x1a4   :  { %666 = vmatpush.msrb.mxu0 %v644_v35  ;;  %686 = vmatpush.msrb.mxu1 %v645_v36 }
 0x1a5   :  { %3929 = vmatmul.msk.f32.vlgmr.msrb.gmra.mxu0 %vm76_vm3, %v4526_v37  ;;  %3932 = vmatmul.msk.f32.vlgmr.msrb.gmra.mxu2 %vm76_vm3, %v4531_v38 }
 0x1a6   :  { %3933 = vmatmul.msk.f32.vlgmr.msrb.gmra.mxu3 %vm76_vm3, %v4531_v38  ;;  %3930 = vmatmul.msk.f32.vlgmr.msrb.gmra.mxu1 %vm76_vm3, %v4526_v37 }
 0x1a8   :  { %v751_v40 = vpop.permute.xlu0 %750  ;;  %v906_v41 = vpop.permute.xlu1 %905 }
 0x1a9   :  { %v752_v42 = vsel %vm244_vm4, %v749_v17, %v751_v40  ;;  %v753_v43 = vsel %vm244_vm4, %v751_v40, %v749_v17  ;;  %v909_v48 = vsel %vm409_vm5, %v906_v41, %v908_v39  ;;  %v910_v49 = vsel %vm409_vm5, %v908_v39, %v906_v41  ;;  %v963_v5 = vpop.permute.xlu2 %962 }
 0x1aa   :  { %v754_v50 = vmul.f32 %v4337_v33, %v753_v43  ;;  %v755_v51 = vmul.f32 %v4342_v34, %v752_v42  ;;  %v911_v52 = vmul.f32 %v4364_v44, %v909_v48  ;;  %v912_v53 = vmul.f32 %v4372_v45, %v910_v49 }
 0x1ac   :  { %776 = vmatpush.msra.mxu0 %v754_v50  ;;  %796 = vmatpush.msra.mxu1 %v755_v51 }
 0x1ad   :  { %933 = vmatpush.msrb.mxu2 %v911_v52  ;;  %953 = vmatpush.msrb.mxu3 %v912_v53 }
 0x1ae   :  { %3935 = vmatmul.msk.f32.vlgmr.msra.gmra.mxu0 %vm76_vm3, %v4556_v54  ;;  %3938 = vmatmul.msk.f32.vlgmr.msra.gmra.mxu2 %vm76_vm3, %v4561_v55 }
 0x1af   :  { %3939 = vmatmul.msk.f32.vlgmr.msra.gmra.mxu3 %vm76_vm3, %v4561_v55  ;;  %3936 = vmatmul.msk.f32.vlgmr.msra.gmra.mxu1 %vm76_vm3, %v4556_v54 }
 0x1b0   :  { %v851_v57 = vpop.permute.xlu0 %850  ;;  %v853_v58 = vpop.permute.xlu1 %852 }
 0x1b1   :  { %v854_v59 = vsel %vm350_vm6, %v851_v57, %v853_v58  ;;  %v855_v62 = vsel %vm350_vm6, %v853_v58, %v851_v57 }
 0x1b2   :  { %v856_v63 = vmul.f32 %v4377_v46, %v854_v59  ;;  %v857_v0 = vmul.f32 %v4382_v47, %v855_v62 }
 0x1b4   :  { %878 = vmatpush.msrb.mxu0 %v856_v63  ;;  %898 = vmatpush.msrb.mxu1 %v857_v0 }
 0x1b6   :  { %3941 = vmatmul.msk.f32.vlgmr.msrb.gmra.mxu0 %vm76_vm3, %v4580_v1  ;;  %3944 = vmatmul.msk.f32.vlgmr.msrb.gmra.mxu2 %vm76_vm3, %v4585_v2 }
 0x1b7   :  { %3945 = vmatmul.msk.f32.vlgmr.msrb.gmra.mxu3 %vm76_vm3, %v4585_v2  ;;  %3942 = vmatmul.msk.f32.vlgmr.msrb.gmra.mxu1 %vm76_vm3, %v4580_v1 }
 0x1b8   :  { %v1018_v6 = vpop.permute.xlu0 %1017  ;;  %v961_v14 = vpop.permute.xlu1 %960 }
 0x1b9   :  { %v1019_v15 = vsel %vm527_vm8, %v1016_v56, %v1018_v6  ;;  %v1020_v16 = vsel %vm527_vm8, %v1018_v6, %v1016_v56  ;;  %v964_v17 = vsel %vm468_vm7, %v961_v14, %v963_v5  ;;  %v965_v18 = vsel %vm468_vm7, %v963_v5, %v961_v14 }
 0x1ba   :  { %v1021_v19 = vmul.f32 %v4437_v7, %v1019_v15  ;;  %v1022_v20 = vmul.f32 %v4442_v9, %v1020_v16  ;;  %v966_v21 = vmul.f32 %v4410_v60, %v964_v17  ;;  %v967_v24 = vmul.f32 %v4415_v61, %v965_v18 }
 0x1bc   :  { %988 = vmatpush.msra.mxu0 %v966_v21  ;;  %1008 = vmatpush.msra.mxu1 %v967_v24 }
 0x1bd   :  { %1043 = vmatpush.msra.mxu2 %v1021_v19  ;;  %1063 = vmatpush.msra.mxu3 %v1022_v20 }
 0x1be   :  { %3947 = vmatmul.msk.f32.vlgmr.msra.gmra.mxu0 %vm76_vm3, %v4610_v25  ;;  %3950 = vmatmul.msk.f32.vlgmr.msra.gmra.mxu2 %vm76_vm3, %v4615_v26 }
 0x1bf   :  { %3951 = vmatmul.msk.f32.vlgmr.msra.gmra.mxu3 %vm76_vm3, %v4615_v26  ;;  %3948 = vmatmul.msk.f32.vlgmr.msra.gmra.mxu1 %vm76_vm3, %v4610_v25 }
 0x1c0   :  { %v4625_v30 = vpop.permute.xlu0 %47 }
 0x220   :  { %v613_v27 = vpop.f32.mrf.mxu2  ;;  %v633_v29 = vpop.f32.mrf.mxu3 }
 0x221   :  { %v637_v32 = vadd.f32 %v633_v29, %v4625_v30  ;;  %v636_v41 = vadd.f32 %v613_v27, %v4625_v30 }
 0x222   :  { %v668_v31 = vpop.f32.mrf.mxu0 }
 0x223   :  { %v688_v35 = vpop.f32.mrf.mxu1  ;;  %v691_v49 = vadd.f32 %v668_v31, %v636_v41 }
 0x224   :  { %v692_v36 = vadd.f32 %v688_v35, %v637_v32  ;;  %v50_v32 = vld [vmem:[%s5487_s7] sm:$0xff] }
 0x228   :  { %v723_v39 = vpop.f32.mrf.mxu2 }
 0x229   :  { %v743_v40 = vpop.f32.mrf.mxu3  ;;  %v746_v51 = vadd.f32 %v723_v39, %v691_v49  ;;  %v4677_v49 = vld [vmem:[%s5486_s6] sm:$0xff] }
 0x22a   :  { %v747_v42 = vadd.f32 %v743_v40, %v692_v36 }
 0x22b   :  { %v778_v43 = vpop.f32.mrf.mxu0 }
 0x22c   :  { %v798_v48 = vpop.f32.mrf.mxu1  ;;  %v801_v58 = vadd.f32 %v778_v43, %v746_v51 }
 0x22d   :  { %v802_v50 = vadd.f32 %v798_v48, %v747_v42 }
 0x231   :  { %v825_v52 = vpop.f32.mrf.mxu2 }
 0x232   :  { %v845_v53 = vpop.f32.mrf.mxu3  ;;  %v848_v62 = vadd.f32 %v825_v52, %v801_v58 }
 0x233   :  { %v849_v56 = vadd.f32 %v845_v53, %v802_v50  ;;  %v880_v57 = vpop.f32.mrf.mxu0 }
 0x234   :  { %v900_v59 = vpop.f32.mrf.mxu1  ;;  %v903_v5 = vadd.f32 %v880_v57, %v848_v62 }
 0x235   :  { %v904_v63 = vadd.f32 %v900_v59, %v849_v56 }
 0x239   :  { %v935_v0 = vpop.f32.mrf.mxu2 }
 0x23a   :  { %v955_v6 = vpop.f32.mrf.mxu3  ;;  %v958_v15 = vadd.f32 %v935_v0, %v903_v5  ;;  %v4698_v5 = vld [vmem:[%s5486_s6 + $0x8] sm:$0xff] }
 0x23b   :  { %v959_v14 = vadd.f32 %v955_v6, %v904_v63  ;;  %v990_v17 = vpop.f32.mrf.mxu0 }
 0x23c   :  { %v1010_v16 = vpop.f32.mrf.mxu1  ;;  %v1013_v19 = vadd.f32 %v990_v17, %v958_v15 }
 0x23d   :  { %v1014_v18 = vadd.f32 %v1010_v16, %v959_v14 }
 0x241   :  { %v1045_v20 = vpop.f32.mrf.mxu2 }
 0x242   :  { %v1068_v21 = vadd.f32 %v1045_v20, %v1013_v19  ;;  %v1065_v24 = vpop.f32.mrf.mxu3  ;;  %v4713_v20 = vld [vmem:[%s5486_s6 + $0x10] sm:$0xff] }
 0x243   :  { %v1069_v27 = vadd.f32 %v1065_v24, %v1014_v18 }
 0x244   :  { %v4629_v29 = vmax.f32 %v1068_v21, 0.0  ;;  %v4718_v21 = vld [vmem:[%s5486_s6 + $0x18] sm:$0xff] }
 0x245   :  { %v4631_v31 = vmax.f32 %v1069_v27, 0.0 }
 0x246   :  { %1181 = vrot.lane.b32.xlu0 %v4629_v29, %s4162_s17  ;;  %1072 = vrot.lane.b32.xlu1 %v4629_v29, %s4161_s16 }
 0x247   :  { %1074 = vrot.lane.b32.xlu2 %v4631_v31, %s4161_s16 }
 0x24e   :  { %1238 = vrot.lane.b32.xlu0 %v4631_v31, %s4163_s20  ;;  %1126 = vrot.lane.b32.xlu1 %v4629_v29, %s4160_s15 }
 0x24f   :  { %1128 = vrot.lane.b32.xlu2 %v4631_v31, %s4160_s15 }
 0x256   :  { %1393 = vrot.lane.b32.xlu0 %v4629_v29, %s4165_s22  ;;  %1183 = vrot.lane.b32.xlu1 %v4631_v31, %s4162_s17 }
 0x257   :  { %1236 = vrot.lane.b32.xlu2 %v4629_v29, %s4163_s20 }
 0x25e   :  { %1450 = vrot.lane.b32.xlu0 %v4631_v31, %s4166_s23  ;;  %1338 = vrot.lane.b32.xlu1 %v4629_v29, %s4164_s21 }
 0x25f   :  { %1340 = vrot.lane.b32.xlu2 %v4631_v31, %s4164_s21 }
 0x266   :  { %53 = vperm.xlu0 %4089, %v50_v32   ;;  %1395 = vrot.lane.b32.xlu1 %v4631_v31, %s4165_s22 }
 0x267   :  { %1448 = vrot.lane.b32.xlu2 %v4629_v29, %s4166_s23 }
 0x26e   :  { %1503 = vrot.lane.b32.xlu1 %v4629_v29, %s4167_s24 }
 0x26f   :  { %1505 = vrot.lane.b32.xlu2 %v4631_v31, %s4167_s24 }
 0x2a1   :  { %v1075_v35 = vpop.permute.xlu2 %1074 }
 0x2a9   :  { %v1129_v36 = vpop.permute.xlu2 %1128 }
 0x2b1   :  { %v1237_v50 = vpop.permute.xlu2 %1236 }
 0x2b8   :  { %v1182_v39 = vpop.permute.xlu0 %1181  ;;  %v1073_v40 = vpop.permute.xlu1 %1072 }
 0x2b9   :  { %v1076_v41 = vsel %vm68_vm1, %v1073_v40, %v1075_v35  ;;  %v1077_v42 = vsel %vm68_vm1, %v1075_v35, %v1073_v40  ;;  %v1341_v6 = vpop.permute.xlu2 %1340 }
 0x2ba   :  { %v1078_v43 = vmul.f32 %v1077_v42, %v4277_v10  ;;  %v1079_v48 = vmul.f32 %v1076_v41, %v4283_v11 }
 0x2bc   :  { %1099 = vmatpush.msrb.mxu0 %v1078_v43  ;;  %1119 = vmatpush.msrb.mxu1 %v1079_v48  ;;  %v4750_v48 = vld [vmem:[%s5486_s6 + $0x28] sm:$0xff] }
 0x2bd   :  { %3952 = vmatmul.msk.f32.vlgmr.msrb.gmra.mxu0 %vm76_vm3, %v4677_v49  ;;  %3953 = vmatmul.msk.f32.vlgmr.msrb.gmra.mxu1 %vm76_vm3, %v4677_v49 }
 0x2c0   :  { %v1239_v51 = vpop.permute.xlu0 %1238  ;;  %v1127_v52 = vpop.permute.xlu1 %1126 }
 0x2c1   :  { %v1240_v53 = vsel %vm244_vm4, %v1237_v50, %v1239_v51  ;;  %v1241_v56 = vsel %vm244_vm4, %v1239_v51, %v1237_v50  ;;  %v1130_v57 = vsel %vm126_vm2, %v1127_v52, %v1129_v36  ;;  %v1131_v58 = vsel %vm126_vm2, %v1129_v36, %v1127_v52  ;;  %v1449_v24 = vpop.permute.xlu2 %1448 }
 0x2c2   :  { %v1242_v59 = vmul.f32 %v4337_v33, %v1241_v56  ;;  %v1243_v62 = vmul.f32 %v4342_v34, %v1240_v53  ;;  %v1132_v63 = vmul.f32 %v4288_v12, %v1131_v58  ;;  %v1133_v0 = vmul.f32 %v4293_v13, %v1130_v57  ;;  %v4769_v57 = vld [vmem:[%s5486_s6 + $0x30] sm:$0xff]  ;;  %v4774_v58 = vld [vmem:[%s5486_s6 + $0x38] sm:$0xff] }
 0x2c3   :  { %5497 = vst [vmem:[#allocation5_spill] sm:$0xff] %v4774_v58 }
 0x2c4   :  { %1154 = vmatpush.msrb.mxu2 %v1132_v63  ;;  %1174 = vmatpush.msrb.mxu3 %v1133_v0 }
 0x2c5   :  { %3955 = vmatmul.msk.f32.vlgmr.msrb.gmra.mxu2 %vm76_vm3, %v4698_v5  ;;  %3956 = vmatmul.msk.f32.vlgmr.msrb.gmra.mxu3 %vm76_vm3, %v4698_v5 }
 0x2c6   :  { %1264 = vmatpush.msra.mxu2 %v1242_v59  ;;  %1284 = vmatpush.msra.mxu3 %v1243_v62 }
 0x2c8   :  { %v1394_v14 = vpop.permute.xlu0 %1393  ;;  %v1184_v15 = vpop.permute.xlu1 %1183 }
 0x2c9   :  { %v1185_v16 = vsel %vm185_vm0, %v1182_v39, %v1184_v15  ;;  %v1186_v17 = vsel %vm185_vm0, %v1184_v15, %v1182_v39  ;;  %v1506_v59 = vpop.permute.xlu2 %1505  ;;  %v4793_v15 = vld [vmem:[%s5486_s6 + $0x40] sm:$0xff] }
 0x2ca   :  { %v1187_v18 = vmul.f32 %v4310_v22, %v1186_v17  ;;  %v1188_v19 = vmul.f32 %v4315_v23, %v1185_v16  ;;  %5498 = vst [vmem:[#allocation6_spill] sm:$0xff] %v4793_v15 }
 0x2cc   :  { %1209 = vmatpush.msra.mxu0 %v1187_v18  ;;  %1229 = vmatpush.msra.mxu1 %v1188_v19 }
 0x2cd   :  { %3958 = vmatmul.msk.f32.vlgmr.msra.gmra.mxu0 %vm76_vm3, %v4713_v20  ;;  %3959 = vmatmul.msk.f32.vlgmr.msra.gmra.mxu1 %vm76_vm3, %v4713_v20 }
 0x2ce   :  { %3961 = vmatmul.msk.f32.vlgmr.msra.gmra.mxu2 %vm76_vm3, %v4718_v21  ;;  %3962 = vmatmul.msk.f32.vlgmr.msra.gmra.mxu3 %vm76_vm3, %v4718_v21 }
 0x2cf   :  { %1311 = vmatpush.msrb.mxu0 %v4629_v29  ;;  %1331 = vmatpush.msrb.mxu1 %v4631_v31  ;;  %v4743_v31 = vld [vmem:[%s5486_s6 + $0x20] sm:$0xff] }
 0x2d0   :  { %v1451_v27 = vpop.permute.xlu0 %1450  ;;  %v1339_v32 = vpop.permute.xlu1 %1338 }
 0x2d1   :  { %v1452_v35 = vsel %vm468_vm7, %v1449_v24, %v1451_v27  ;;  %v1453_v36 = vsel %vm468_vm7, %v1451_v27, %v1449_v24  ;;  %v1342_v39 = vsel %vm350_vm6, %v1339_v32, %v1341_v6  ;;  %v1343_v40 = vsel %vm350_vm6, %v1341_v6, %v1339_v32 }
 0x2d2   :  { %v1344_v41 = vmul.f32 %v4377_v46, %v1342_v39  ;;  %v1345_v29 = vmul.f32 %v4382_v47, %v1343_v40  ;;  %v1454_v42 = vmul.f32 %v4410_v60, %v1452_v35  ;;  %v1455_v43 = vmul.f32 %v4415_v61, %v1453_v36 }
 0x2d4   :  { %1366 = vmatpush.msrb.mxu2 %v1344_v41  ;;  %1386 = vmatpush.msrb.mxu3 %v1345_v29 }
 0x2d5   :  { %3964 = vmatmul.msk.f32.vlgmr.msrb.gmra.mxu0 %vm76_vm3, %v4743_v31  ;;  %3965 = vmatmul.msk.f32.vlgmr.msrb.gmra.mxu1 %vm76_vm3, %v4743_v31 }
 0x2d6   :  { %3967 = vmatmul.msk.f32.vlgmr.msrb.gmra.mxu2 %vm76_vm3, %v4750_v48  ;;  %3968 = vmatmul.msk.f32.vlgmr.msrb.gmra.mxu3 %vm76_vm3, %v4750_v48 }
 0x2d7   :  { %1476 = vmatpush.msra.mxu2 %v1454_v42  ;;  %1496 = vmatpush.msra.mxu3 %v1455_v43 }
 0x2d8   :  { %v1396_v50 = vpop.permute.xlu1 %1395  ;;  %v4799_v32 = vpop.permute.xlu0 %53 }
 0x2d9   :  { %v1397_v51 = vsel %vm409_vm5, %v1394_v14, %v1396_v50  ;;  %v1398_v52 = vsel %vm409_vm5, %v1396_v50, %v1394_v14  ;;  %5499 = vst [vmem:[#allocation7_spill] sm:$0xff] %v4799_v32 }
 0x2da   :  { %v1399_v53 = vmul.f32 %v4364_v44, %v1397_v51  ;;  %v1400_v56 = vmul.f32 %v4372_v45, %v1398_v52 }
 0x2dc   :  { %1421 = vmatpush.msra.mxu0 %v1399_v53  ;;  %1441 = vmatpush.msra.mxu1 %v1400_v56 }
 0x2dd   :  { %3970 = vmatmul.msk.f32.vlgmr.msra.gmra.mxu0 %vm76_vm3, %v4769_v57  ;;  %3971 = vmatmul.msk.f32.vlgmr.msra.gmra.mxu1 %vm76_vm3, %v4769_v57 }
 0x2de   :  { %3973 = vmatmul.msk.f32.vlgmr.msra.gmra.mxu2 %vm76_vm3, %v4774_v58  ;;  %3974 = vmatmul.msk.f32.vlgmr.msra.gmra.mxu3 %vm76_vm3, %v4774_v58 }
 0x2e0   :  { %v1504_v62 = vpop.permute.xlu1 %1503 }
 0x2e1   :  { %v1507_v63 = vsel %vm527_vm8, %v1504_v62, %v1506_v59  ;;  %v1508_v0 = vsel %vm527_vm8, %v1506_v59, %v1504_v62 }
 0x2e2   :  { %v1509_v6 = vmul.f32 %v4437_v7, %v1507_v63  ;;  %v1510_v14 = vmul.f32 %v4442_v9, %v1508_v0 }
 0x2e4   :  { %1531 = vmatpush.msrb.mxu0 %v1509_v6  ;;  %1551 = vmatpush.msrb.mxu1 %v1510_v14 }
 0x2e5   :  { %3976 = vmatmul.msk.f32.vlgmr.msrb.gmra.mxu0 %vm76_vm3, %v4793_v15  ;;  %3977 = vmatmul.msk.f32.vlgmr.msrb.gmra.mxu1 %vm76_vm3, %v4793_v15 }
 0x33a   :  { %v1101_v16 = vpop.f32.mrf.mxu0  ;;  %v1121_v17 = vpop.f32.mrf.mxu1 }
 0x33b   :  { %v1124_v35 = vadd.f32 %v1101_v16, %v4799_v32  ;;  %v1125_v36 = vadd.f32 %v1121_v17, %v4799_v32 }
 0x348   :  { %v1156_v18 = vpop.f32.mrf.mxu2  ;;  %v1176_v19 = vpop.f32.mrf.mxu3 }
 0x349   :  { %v1179_v39 = vadd.f32 %v1156_v18, %v1124_v35  ;;  %v1180_v40 = vadd.f32 %v1176_v19, %v1125_v36 }
 0x34a   :  { %v1211_v24 = vpop.f32.mrf.mxu0  ;;  %v1231_v27 = vpop.f32.mrf.mxu1 }
 0x34b   :  { %v1234_v50 = vadd.f32 %v1211_v24, %v1179_v39  ;;  %v1235_v51 = vadd.f32 %v1231_v27, %v1180_v40 }
 0x351   :  { %v1266_v41 = vpop.f32.mrf.mxu2  ;;  %v1286_v29 = vpop.f32.mrf.mxu3 }
 0x352   :  { %v1313_v42 = vpop.f32.mrf.mxu0  ;;  %v1333_v43 = vpop.f32.mrf.mxu1  ;;  %v1289_v52 = vadd.f32 %v1266_v41, %v1234_v50  ;;  %v1290_v53 = vadd.f32 %v1286_v29, %v1235_v51 }
 0x354   :  { %v1336_v62 = vadd.f32 %v1313_v42, %v1289_v52  ;;  %v1337_v63 = vadd.f32 %v1333_v43, %v1290_v53 }
 0x359   :  { %v1368_v56 = vpop.f32.mrf.mxu2  ;;  %v1388_v59 = vpop.f32.mrf.mxu3 }
 0x35a   :  { %v1423_v0 = vpop.f32.mrf.mxu0  ;;  %v1443_v6 = vpop.f32.mrf.mxu1  ;;  %v1391_v14 = vadd.f32 %v1368_v56, %v1336_v62  ;;  %v1392_v16 = vadd.f32 %v1388_v59, %v1337_v63 }
 0x35c   :  { %v1446_v15 = vadd.f32 %v1423_v0, %v1391_v14  ;;  %v1447_v17 = vadd.f32 %v1443_v6, %v1392_v16 }
 0x361   :  { %v1478_v18 = vpop.f32.mrf.mxu2  ;;  %v1498_v19 = vpop.f32.mrf.mxu3 }
 0x362   :  { %v1501_v35 = vadd.f32 %v1478_v18, %v1446_v15  ;;  %v1502_v36 = vadd.f32 %v1498_v19, %v1447_v17  ;;  %v1533_v32 = vpop.f32.mrf.mxu0  ;;  %v1553_v58 = vpop.f32.mrf.mxu1 }
 0x364   :  { %v1556_v24 = vadd.f32 %v1533_v32, %v1501_v35  ;;  %v1557_v27 = vadd.f32 %v1553_v58, %v1502_v36 }
 0x366   :  { %v1558_v39 = vmax.f32 %v1556_v24, 0.0  ;;  %v1559_v40 = vmax.f32 %v1557_v27, 0.0 }
 0x368   :  { %v4804_v41 = vadd.f32 %v1558_v39, %v4455_v3  ;;  %v4807_v29 = vadd.f32 %v1559_v40, %v4457_v4 }
 0x36a   :  { %1564 = vrot.lane.b32.xlu2 %v4807_v29, %s4161_s16  ;;  %1662 = vrot.lane.b32.xlu0 %v4804_v41, %s4162_s17 }
 0x36b   :  { %1562 = vrot.lane.b32.xlu1 %v4804_v41, %s4161_s16 }
 0x372   :  { %1612 = vrot.lane.b32.xlu2 %v4804_v41, %s4160_s15  ;;  %1614 = vrot.lane.b32.xlu0 %v4807_v29, %s4160_s15 }
 0x373   :  { %1664 = vrot.lane.b32.xlu1 %v4807_v29, %s4162_s17 }
 0x37a   :  { %1714 = vrot.lane.b32.xlu2 %v4807_v29, %s4163_s20  ;;  %1854 = vrot.lane.b32.xlu0 %v4804_v41, %s4165_s22 }
 0x37b   :  { %1712 = vrot.lane.b32.xlu1 %v4804_v41, %s4163_s20 }
 0x382   :  { %1804 = vrot.lane.b32.xlu2 %v4804_v41, %s4164_s21  ;;  %1806 = vrot.lane.b32.xlu0 %v4807_v29, %s4164_s21 }
 0x383   :  { %1856 = vrot.lane.b32.xlu1 %v4807_v29, %s4165_s22 }
 0x38a   :  { %1956 = vrot.lane.b32.xlu2 %v4807_v29, %s4167_s24  ;;  %1904 = vrot.lane.b32.xlu0 %v4804_v41, %s4166_s23 }
 0x38b   :  { %1954 = vrot.lane.b32.xlu1 %v4804_v41, %s4167_s24 }
 0x393   :  { %1906 = vrot.lane.b32.xlu1 %v4807_v29, %s4166_s23 }
 0x3c4   :  { %v1565_v3 = vpop.permute.xlu2 %1564 }
 0x3cc   :  { %v1613_v42 = vpop.permute.xlu2 %1612 }
 0x3d4   :  { %v1715_v0 = vpop.permute.xlu2 %1714 }
 0x3dc   :  { %v1663_v4 = vpop.permute.xlu0 %1662 }
 0x3dd   :  { %v1563_v58 = vpop.permute.xlu1 %1562 }
 0x3de   :  { %v1566_v15 = vsel %vm68_vm1, %v1563_v58, %v1565_v3  ;;  %v1567_v32 = vsel %vm68_vm1, %v1565_v3, %v1563_v58 }
 0x3df   :  { %v1568_v43 = vmul.f32 %v1567_v32, %v4277_v10  ;;  %v1569_v50 = vmul.f32 %v1566_v15, %v4283_v11 }
 0x3e1   :  { %1585 = vmatpush.msrb.mxu2 %v1568_v43  ;;  %1605 = vmatpush.msrb.mxu3 %v1569_v50 }
 0x3e2   :  { %3978 = vmatmul.msk.f32.vlgmr.msrb.gmra.mxu2 %vm76_vm3, %v4509_v28  ;;  %3979 = vmatmul.msk.f32.vlgmr.msrb.gmra.mxu3 %vm76_vm3, %v4509_v28 }
 0x3e4   :  { %v1615_v51 = vpop.permute.xlu0 %1614 }
 0x3e5   :  { %v1616_v52 = vsel %vm126_vm2, %v1613_v42, %v1615_v51  ;;  %v1617_v53 = vsel %vm126_vm2, %v1615_v51, %v1613_v42  ;;  %v1665_v56 = vpop.permute.xlu1 %1664 }
 0x3e6   :  { %v1618_v10 = vmul.f32 %v4288_v12, %v1617_v53  ;;  %v1619_v11 = vmul.f32 %v4293_v13, %v1616_v52  ;;  %v1666_v59 = vsel %vm185_vm0, %v1663_v4, %v1665_v56  ;;  %v1667_v62 = vsel %vm185_vm0, %v1665_v56, %v1663_v4 }
 0x3e7   :  { %v1668_v28 = vmul.f32 %v4310_v22, %v1667_v62  ;;  %v1669_v63 = vmul.f32 %v4315_v23, %v1666_v59 }
 0x3e8   :  { %1635 = vmatpush.msra.mxu0 %v1618_v10  ;;  %1655 = vmatpush.msra.mxu1 %v1619_v11 }
 0x3e9   :  { %1685 = vmatpush.msra.mxu2 %v1668_v28  ;;  %1705 = vmatpush.msra.mxu3 %v1669_v63 }
 0x3ea   :  { %3980 = vmatmul.msk.f32.vlgmr.msra.gmra.mxu0 %vm76_vm3, %v4526_v37  ;;  %3981 = vmatmul.msk.f32.vlgmr.msra.gmra.mxu1 %vm76_vm3, %v4526_v37 }
 0x3eb   :  { %3982 = vmatmul.msk.f32.vlgmr.msra.gmra.mxu2 %vm76_vm3, %v4531_v38  ;;  %3983 = vmatmul.msk.f32.vlgmr.msra.gmra.mxu3 %vm76_vm3, %v4531_v38  ;;  %v1805_v38 = vpop.permute.xlu2 %1804 }
 0x3ec   :  { %1777 = vmatpush.msrb.mxu2 %v4804_v41  ;;  %1797 = vmatpush.msrb.mxu3 %v4807_v29  ;;  %v1855_v12 = vpop.permute.xlu0 %1854 }
 0x3ed   :  { %v1713_v13 = vpop.permute.xlu1 %1712 }
 0x3ee   :  { %v1716_v22 = vsel %vm244_vm4, %v1713_v13, %v1715_v0  ;;  %v1717_v23 = vsel %vm244_vm4, %v1715_v0, %v1713_v13 }
 0x3ef   :  { %v1718_v37 = vmul.f32 %v4337_v33, %v1717_v23  ;;  %v1719_v6 = vmul.f32 %v4342_v34, %v1716_v22 }
 0x3f1   :  { %1735 = vmatpush.msrb.mxu0 %v1718_v37  ;;  %1755 = vmatpush.msrb.mxu1 %v1719_v6 }
 0x3f2   :  { %3984 = vmatmul.msk.f32.vlgmr.msrb.gmra.mxu0 %vm76_vm3, %v4556_v54  ;;  %3985 = vmatmul.msk.f32.vlgmr.msrb.gmra.mxu1 %vm76_vm3, %v4556_v54 }
 0x3f3   :  { %3986 = vmatmul.msk.f32.vlgmr.msrb.gmra.mxu2 %vm76_vm3, %v4561_v55  ;;  %3987 = vmatmul.msk.f32.vlgmr.msrb.gmra.mxu3 %vm76_vm3, %v4561_v55 }
 0x3f4   :  { %v1807_v14 = vpop.permute.xlu0 %1806 }
 0x3f5   :  { %v1808_v33 = vsel %vm350_vm6, %v1805_v38, %v1807_v14  ;;  %v1809_v34 = vsel %vm350_vm6, %v1807_v14, %v1805_v38  ;;  %v1857_v16 = vpop.permute.xlu1 %1856 }
 0x3f6   :  { %v1810_v17 = vmul.f32 %v4377_v46, %v1808_v33  ;;  %v1811_v18 = vmul.f32 %v4382_v47, %v1809_v34  ;;  %v1858_v54 = vsel %vm409_vm5, %v1855_v12, %v1857_v16  ;;  %v1859_v19 = vsel %vm409_vm5, %v1857_v16, %v1855_v12  ;;  %v1957_v46 = vpop.permute.xlu2 %1956 }
 0x3f7   :  { %v1860_v55 = vmul.f32 %v4364_v44, %v1858_v54  ;;  %v1861_v35 = vmul.f32 %v4372_v45, %v1859_v19 }
 0x3f8   :  { %1827 = vmatpush.msra.mxu0 %v1810_v17  ;;  %1847 = vmatpush.msra.mxu1 %v1811_v18 }
 0x3f9   :  { %1877 = vmatpush.msra.mxu2 %v1860_v55  ;;  %1897 = vmatpush.msra.mxu3 %v1861_v35 }
 0x3fa   :  { %3988 = vmatmul.msk.f32.vlgmr.msra.gmra.mxu0 %vm76_vm3, %v4580_v1  ;;  %3989 = vmatmul.msk.f32.vlgmr.msra.gmra.mxu1 %vm76_vm3, %v4580_v1 }
 0x3fb   :  { %3990 = vmatmul.msk.f32.vlgmr.msra.gmra.mxu2 %vm76_vm3, %v4585_v2  ;;  %3991 = vmatmul.msk.f32.vlgmr.msra.gmra.mxu3 %vm76_vm3, %v4585_v2 }
 0x3fc   :  { %v1905_v1 = vpop.permute.xlu0 %1904 }
 0x3fd   :  { %v1955_v44 = vpop.permute.xlu1 %1954 }
 0x3fe   :  { %v1958_v45 = vsel %vm527_vm8, %v1955_v44, %v1957_v46  ;;  %v1959_v47 = vsel %vm527_vm8, %v1957_v46, %v1955_v44 }
 0x3ff   :  { %v1960_v36 = vmul.f32 %v4437_v7, %v1958_v45  ;;  %v1961_v24 = vmul.f32 %v4442_v9, %v1959_v47 }
 0x401   :  { %1977 = vmatpush.msrb.mxu2 %v1960_v36  ;;  %1997 = vmatpush.msrb.mxu3 %v1961_v24 }
 0x403   :  { %3994 = vmatmul.msk.f32.vlgmr.msrb.gmra.mxu2 %vm76_vm3, %v4615_v26  ;;  %3995 = vmatmul.msk.f32.vlgmr.msrb.gmra.mxu3 %vm76_vm3, %v4615_v26 }
 0x405   :  { %v1907_v2 = vpop.permute.xlu1 %1906 }
 0x406   :  { %v1908_v27 = vsel %vm468_vm7, %v1905_v1, %v1907_v2  ;;  %v1909_v39 = vsel %vm468_vm7, %v1907_v2, %v1905_v1  ;;  %v4956_v1 = vld [vmem:[%s5481_s1] sm:$0xff] }
 0x407   :  { %v1910_v7 = vmul.f32 %v4410_v60, %v1908_v27  ;;  %v1911_v9 = vmul.f32 %v4415_v61, %v1909_v39  ;;  %v4962_v27 = vld [vmem:[%s5481_s1 + $0x8] sm:$0xff] }
 0x409   :  { %1927 = vmatpush.msrb.mxu0 %v1910_v7  ;;  %1947 = vmatpush.msrb.mxu1 %v1911_v9  ;;  %v4968_v7 = vld [vmem:[%s5481_s1 + $0x10] sm:$0xff] }
 0x40a   :  { %3992 = vmatmul.msk.f32.vlgmr.msrb.gmra.mxu0 %vm76_vm3, %v4610_v25  ;;  %3993 = vmatmul.msk.f32.vlgmr.msrb.gmra.mxu1 %vm76_vm3, %v4610_v25 }
 0x465   :  { %v1587_v26 = vpop.f32.mrf.mxu2  ;;  %v1607_v40 = vpop.f32.mrf.mxu3 }
 0x466   :  { %v1610_v32 = vadd.f32 %v1587_v26, %v4625_v30  ;;  %v1611_v60 = vadd.f32 %v1607_v40, %v4625_v30  ;;  %v4974_v26 = vld [vmem:[%s5481_s1 + $0x18] sm:$0xff] }
 0x467   :  { %v1637_v3 = vpop.f32.mrf.mxu0  ;;  %v1657_v4 = vpop.f32.mrf.mxu1 }
 0x468   :  { %v1660_v51 = vadd.f32 %v1637_v3, %v1610_v32  ;;  %v1661_v52 = vadd.f32 %v1657_v4, %v1611_v60  ;;  %v4992_v32 = vld [vmem:[%s5481_s1 + $0x20] sm:$0xff]  ;;  %v4998_v60 = vld [vmem:[%s5481_s1 + $0x28] sm:$0xff] }
 0x46e   :  { %v1687_v58 = vpop.f32.mrf.mxu2  ;;  %v1707_v15 = vpop.f32.mrf.mxu3 }
 0x46f   :  { %v1737_v42 = vpop.f32.mrf.mxu0  ;;  %v1757_v61 = vpop.f32.mrf.mxu1  ;;  %v1710_v53 = vadd.f32 %v1687_v58, %v1660_v51  ;;  %v1711_v56 = vadd.f32 %v1707_v15, %v1661_v52 }
 0x471   :  { %v1760_v10 = vadd.f32 %v1737_v42, %v1710_v53  ;;  %v1761_v25 = vadd.f32 %v1757_v61, %v1711_v56  ;;  %v5016_v56 = vld [vmem:[%s5481_s1 + $0x30] sm:$0xff] }
 0x476   :  { %v1779_v43 = vpop.f32.mrf.mxu2  ;;  %v1799_v50 = vpop.f32.mrf.mxu3 }
 0x477   :  { %v1829_v62 = vpop.f32.mrf.mxu0  ;;  %v1849_v28 = vpop.f32.mrf.mxu1  ;;  %v1802_v63 = vadd.f32 %v1779_v43, %v1760_v10  ;;  %v1803_v0 = vadd.f32 %v1799_v50, %v1761_v25  ;;  %v5022_v10 = vld [vmem:[%s5481_s1 + $0x38] sm:$0xff] }
 0x479   :  { %v1852_v12 = vadd.f32 %v1829_v62, %v1802_v63  ;;  %v1853_v13 = vadd.f32 %v1849_v28, %v1803_v0  ;;  %v5034_v62 = vld [vmem:[%s5481_s1 + $0x58] sm:$0xff] }
 0x47e   :  { %v1879_v11 = vpop.f32.mrf.mxu2  ;;  %v1899_v59 = vpop.f32.mrf.mxu3 }
 0x47f   :  { %v1902_v22 = vadd.f32 %v1879_v11, %v1852_v12  ;;  %v1903_v23 = vadd.f32 %v1899_v59, %v1853_v13  ;;  %v5028_v11 = vld [vmem:[%s5481_s1 + $0x50] sm:$0xff] }
 0x486   :  { %v1979_v37 = vpop.f32.mrf.mxu2  ;;  %v1999_v6 = vpop.f32.mrf.mxu3 }
 0x487   :  { %v1929_v38 = vpop.f32.mrf.mxu0  ;;  %v1949_v14 = vpop.f32.mrf.mxu1 }
 0x488   :  { %v1952_v33 = vadd.f32 %v1929_v38, %v1902_v22  ;;  %v1953_v34 = vadd.f32 %v1949_v14, %v1903_v23 }
 0x48a   :  { %v2002_v16 = vadd.f32 %v1979_v37, %v1952_v33  ;;  %v2003_v17 = vadd.f32 %v1999_v6, %v1953_v34  ;;  %v5058_v37 = vld [vmem:[%s5481_s1 + $0x68] sm:$0xff] }
 0x48c   :  { %v2004_v18 = vmax.f32 %v2002_v16, 0.0  ;;  %v2005_v54 = vmax.f32 %v2003_v17, 0.0  ;;  %v5080_v17 = vld [vmem:[%s5481_s1 + $0x70] sm:$0xff] }
 0x48e   :  { %2008 = vrot.lane.b32.xlu0 %v2005_v54, %s4161_s16  ;;  %2056 = vrot.lane.b32.xlu1 %v2004_v18, %s4160_s15 }
 0x48f   :  { %2006 = vrot.lane.b32.xlu2 %v2004_v18, %s4161_s16 }
 0x496   :  { %2106 = vrot.lane.b32.xlu0 %v2004_v18, %s4162_s17  ;;  %2108 = vrot.lane.b32.xlu1 %v2005_v54, %s4162_s17 }
 0x497   :  { %2058 = vrot.lane.b32.xlu2 %v2005_v54, %s4160_s15 }
 0x49e   :  { %2158 = vrot.lane.b32.xlu0 %v2005_v54, %s4163_s20  ;;  %2248 = vrot.lane.b32.xlu1 %v2004_v18, %s4164_s21 }
 0x49f   :  { %2156 = vrot.lane.b32.xlu2 %v2004_v18, %s4163_s20 }
 0x4a6   :  { %2298 = vrot.lane.b32.xlu0 %v2004_v18, %s4165_s22  ;;  %2300 = vrot.lane.b32.xlu1 %v2005_v54, %s4165_s22 }
 0x4a7   :  { %2250 = vrot.lane.b32.xlu2 %v2005_v54, %s4164_s21 }
 0x4ae   :  { %2350 = vrot.lane.b32.xlu0 %v2005_v54, %s4166_s23  ;;  %2398 = vrot.lane.b32.xlu1 %v2004_v18, %s4167_s24 }
 0x4af   :  { %2348 = vrot.lane.b32.xlu2 %v2004_v18, %s4166_s23 }
 0x4b7   :  { %2400 = vrot.lane.b32.xlu2 %v2005_v54, %s4167_s24 }
 0x4e9   :  { %v2007_v19 = vpop.permute.xlu2 %2006 }
 0x4f1   :  { %v2059_v55 = vpop.permute.xlu2 %2058 }
 0x4f9   :  { %v2157_v44 = vpop.permute.xlu2 %2156 }
 0x500   :  { %v2009_v35 = vpop.permute.xlu0 %2008  ;;  %v2057_v46 = vpop.permute.xlu1 %2056 }
 0x501   :  { %v2010_v45 = vsel %vm68_vm1, %v2007_v19, %v2009_v35  ;;  %v2011_v47 = vsel %vm68_vm1, %v2009_v35, %v2007_v19  ;;  %v2060_v36 = vsel %vm126_vm2, %v2057_v46, %v2059_v55  ;;  %v2061_v24 = vsel %vm126_vm2, %v2059_v55, %v2057_v46  ;;  %v2251_v42 = vpop.permute.xlu2 %2250  ;;  %v5092_v19 = vld [vmem:[%s5481_s1 + $0x80] sm:$0xff]  ;;  %v5098_v35 = vld [vmem:[%s5481_s1 + $0x88] sm:$0xff] }
 0x502   :  { %v2012_v2 = vmul.f32 %v4956_v1, %v2011_v47  ;;  %v2013_v39 = vmul.f32 %v4962_v27, %v2010_v45  ;;  %v2062_v9 = vmul.f32 %v4968_v7, %v2061_v24  ;;  %v2063_v40 = vmul.f32 %v4974_v26, %v2060_v36  ;;  %v5501_v45 = vld [vmem:[#allocation6_spill] sm:$0xff] }
 0x504   :  { %2029 = vmatpush.msra.mxu0 %v2012_v2  ;;  %2049 = vmatpush.msra.mxu1 %v2013_v39 }
 0x505   :  { %2079 = vmatpush.msra.mxu2 %v2062_v9  ;;  %2099 = vmatpush.msra.mxu3 %v2063_v40 }
 0x506   :  { %3996 = vmatmul.msk.f32.vlgmr.msra.gmra.mxu0 %vm76_vm3, %v4677_v49  ;;  %3997 = vmatmul.msk.f32.vlgmr.msra.gmra.mxu1 %vm76_vm3, %v4677_v49 }
 0x507   :  { %3998 = vmatmul.msk.f32.vlgmr.msra.gmra.mxu2 %vm76_vm3, %v4698_v5  ;;  %3999 = vmatmul.msk.f32.vlgmr.msra.gmra.mxu3 %vm76_vm3, %v4698_v5 }
 0x508   :  { %v2107_v3 = vpop.permute.xlu0 %2106  ;;  %v2109_v4 = vpop.permute.xlu1 %2108 }
 0x509   :  { %v2110_v58 = vsel %vm185_vm0, %v2107_v3, %v2109_v4  ;;  %v2111_v15 = vsel %vm185_vm0, %v2109_v4, %v2107_v3  ;;  %v2349_v63 = vpop.permute.xlu2 %2348  ;;  %v5502_v4 = vld [vmem:[#allocation7_spill] sm:$0xff] }
 0x50a   :  { %v2112_v49 = vmul.f32 %v4992_v32, %v2111_v15  ;;  %v2113_v5 = vmul.f32 %v4998_v60, %v2110_v58 }
 0x50c   :  { %2129 = vmatpush.msrb.mxu0 %v2112_v49  ;;  %2149 = vmatpush.msrb.mxu1 %v2113_v5 }
 0x50e   :  { %2221 = vmatpush.msra.mxu0 %v2004_v18  ;;  %2241 = vmatpush.msra.mxu1 %v2005_v54  ;;  %v5086_v18 = vld [vmem:[%s5481_s1 + $0x78] sm:$0xff] }
 0x50f   :  { %4000 = vmatmul.msk.f32.vlgmr.msrb.gmra.mxu0 %vm76_vm3, %v4713_v20  ;;  %4001 = vmatmul.msk.f32.vlgmr.msrb.gmra.mxu1 %vm76_vm3, %v4713_v20 }
 0x510   :  { %v2159_v61 = vpop.permute.xlu0 %2158  ;;  %v2249_v43 = vpop.permute.xlu1 %2248 }
 0x511   :  { %v2160_v50 = vsel %vm244_vm4, %v2157_v44, %v2159_v61  ;;  %v2161_v51 = vsel %vm244_vm4, %v2159_v61, %v2157_v44  ;;  %v2252_v52 = vsel %vm350_vm6, %v2249_v43, %v2251_v42  ;;  %v2253_v53 = vsel %vm350_vm6, %v2251_v42, %v2249_v43  ;;  %v2401_v6 = vpop.permute.xlu2 %2400  ;;  %v5500_v44 = vld [vmem:[#allocation5_spill] sm:$0xff] }
 0x512   :  { %v2162_v20 = vmul.f32 %v5016_v56, %v2161_v51  ;;  %v2163_v25 = vmul.f32 %v5022_v10, %v2160_v50  ;;  %v2254_v59 = vmul.f32 %v5028_v11, %v2252_v52  ;;  %v2255_v28 = vmul.f32 %v5034_v62, %v2253_v53 }
 0x514   :  { %2179 = vmatpush.msrb.mxu2 %v2162_v20  ;;  %2199 = vmatpush.msrb.mxu3 %v2163_v25 }
 0x515   :  { %4002 = vmatmul.msk.f32.vlgmr.msrb.gmra.mxu2 %vm76_vm3, %v4718_v21  ;;  %4003 = vmatmul.msk.f32.vlgmr.msrb.gmra.mxu3 %vm76_vm3, %v4718_v21  ;;  %v5052_v21 = vld [vmem:[%s5481_s1 + $0x60] sm:$0xff] }
 0x516   :  { %2271 = vmatpush.msra.mxu2 %v2254_v59  ;;  %2291 = vmatpush.msra.mxu3 %v2255_v28 }
 0x517   :  { %4004 = vmatmul.msk.f32.vlgmr.msra.gmra.mxu0 %vm76_vm3, %v4743_v31  ;;  %4005 = vmatmul.msk.f32.vlgmr.msra.gmra.mxu1 %vm76_vm3, %v4743_v31 }
 0x518   :  { %v2299_v0 = vpop.permute.xlu0 %2298  ;;  %v2301_v12 = vpop.permute.xlu1 %2300 }
 0x519   :  { %v2302_v13 = vsel %vm409_vm5, %v2299_v0, %v2301_v12  ;;  %v2303_v22 = vsel %vm409_vm5, %v2301_v12, %v2299_v0 }
 0x51a   :  { %v2304_v23 = vmul.f32 %v5052_v21, %v2302_v13  ;;  %v2305_v31 = vmul.f32 %v5058_v37, %v2303_v22 }
 0x51c   :  { %2321 = vmatpush.msrb.mxu0 %v2304_v23  ;;  %2341 = vmatpush.msrb.mxu1 %v2305_v31 }
 0x51d   :  { %4006 = vmatmul.msk.f32.vlgmr.msra.gmra.mxu2 %vm76_vm3, %v4750_v48  ;;  %4007 = vmatmul.msk.f32.vlgmr.msra.gmra.mxu3 %vm76_vm3, %v4750_v48 }
 0x51f   :  { %4008 = vmatmul.msk.f32.vlgmr.msrb.gmra.mxu0 %vm76_vm3, %v4769_v57  ;;  %4009 = vmatmul.msk.f32.vlgmr.msrb.gmra.mxu1 %vm76_vm3, %v4769_v57 }
 0x520   :  { %v2351_v38 = vpop.permute.xlu0 %2350  ;;  %v2399_v14 = vpop.permute.xlu1 %2398 }
 0x521   :  { %v2352_v33 = vsel %vm468_vm7, %v2349_v63, %v2351_v38  ;;  %v2353_v34 = vsel %vm468_vm7, %v2351_v38, %v2349_v63  ;;  %v2402_v16 = vsel %vm527_vm8, %v2399_v14, %v2401_v6  ;;  %v2403_v48 = vsel %vm527_vm8, %v2401_v6, %v2399_v14 }
 0x522   :  { %v2354_v57 = vmul.f32 %v5080_v17, %v2352_v33  ;;  %v2355_v54 = vmul.f32 %v5086_v18, %v2353_v34  ;;  %v2404_v55 = vmul.f32 %v5092_v19, %v2402_v16  ;;  %v2405_v46 = vmul.f32 %v5098_v35, %v2403_v48 }
 0x524   :  { %2371 = vmatpush.msrb.mxu2 %v2354_v57  ;;  %2391 = vmatpush.msrb.mxu3 %v2355_v54 }
 0x525   :  { %2421 = vmatpush.msra.mxu0 %v2404_v55  ;;  %2441 = vmatpush.msra.mxu1 %v2405_v46 }
 0x526   :  { %4010 = vmatmul.msk.f32.vlgmr.msrb.gmra.mxu2 %vm76_vm3, %v5500_v44  ;;  %4011 = vmatmul.msk.f32.vlgmr.msrb.gmra.mxu3 %vm76_vm3, %v5500_v44 }
 0x527   :  { %4012 = vmatmul.msk.f32.vlgmr.msra.gmra.mxu0 %vm76_vm3, %v5501_v45  ;;  %4013 = vmatmul.msk.f32.vlgmr.msra.gmra.mxu1 %vm76_vm3, %v5501_v45 }
 0x583   :  { %v2031_v47 = vpop.f32.mrf.mxu0  ;;  %v2051_v36 = vpop.f32.mrf.mxu1 }
 0x584   :  { %v2054_v58 = vadd.f32 %v2031_v47, %v5502_v4  ;;  %v2055_v15 = vadd.f32 %v2051_v36, %v5502_v4 }
 0x58a   :  { %v2081_v39 = vpop.f32.mrf.mxu2  ;;  %v2101_v9 = vpop.f32.mrf.mxu3 }
 0x58b   :  { %v2104_v49 = vadd.f32 %v2081_v39, %v2054_v58  ;;  %v2105_v5 = vadd.f32 %v2101_v9, %v2055_v15 }
 0x58c   :  { %v2131_v24 = vpop.f32.mrf.mxu0  ;;  %v2151_v2 = vpop.f32.mrf.mxu1 }
 0x58d   :  { %v2154_v43 = vadd.f32 %v2131_v24, %v2104_v49  ;;  %v2155_v50 = vadd.f32 %v2151_v2, %v2105_v5  ;;  %v4114_v2 = vld [vmem:[%s5484_s4] sm:$0xff] }
 0x594   :  { %v2223_v40 = vpop.f32.mrf.mxu0  ;;  %v2243_v3 = vpop.f32.mrf.mxu1 }
 0x598   :  { %v2181_v42 = vpop.f32.mrf.mxu2  ;;  %v2201_v61 = vpop.f32.mrf.mxu3 }
 0x599   :  { %v2204_v51 = vadd.f32 %v2181_v42, %v2154_v43  ;;  %v2205_v52 = vadd.f32 %v2201_v61, %v2155_v50  ;;  %v4115_v50 = vld [vmem:[%s5484_s4 + $0x8] sm:$0xff] }
 0x59b   :  { %v2246_v28 = vadd.f32 %v2223_v40, %v2204_v51  ;;  %v2247_v63 = vadd.f32 %v2243_v3, %v2205_v52  ;;  %v4116_v51 = vld [vmem:[%s5484_s4 + $0x10] sm:$0xff] }
 0x59c   :  { %v2323_v53 = vpop.f32.mrf.mxu0  ;;  %v2343_v20 = vpop.f32.mrf.mxu1 }
 0x5a0   :  { %v2273_v25 = vpop.f32.mrf.mxu2  ;;  %v2293_v59 = vpop.f32.mrf.mxu3 }
 0x5a1   :  { %v2296_v0 = vadd.f32 %v2273_v25, %v2246_v28  ;;  %v2297_v12 = vadd.f32 %v2293_v59, %v2247_v63  ;;  %v4117_v63 = vld [vmem:[%s5484_s4 + $0x18] sm:$0xff] }
 0x5a3   :  { %v2346_v13 = vadd.f32 %v2323_v53, %v2296_v0  ;;  %v2347_v22 = vadd.f32 %v2343_v20, %v2297_v12  ;;  %v4118_v0 = vld [vmem:[%s5484_s4 + $0x20] sm:$0xff] }
 0x5a4   :  { %v2423_v23 = vpop.f32.mrf.mxu0  ;;  %v2443_v31 = vpop.f32.mrf.mxu1 }
 0x5a9   :  { %v2373_v6 = vpop.f32.mrf.mxu2  ;;  %v2393_v38 = vpop.f32.mrf.mxu3 }
 0x5aa   :  { %v2396_v14 = vadd.f32 %v2373_v6, %v2346_v13  ;;  %v2397_v33 = vadd.f32 %v2393_v38, %v2347_v22 }
 0x5ac   :  { %v2446_v34 = vadd.f32 %v2423_v23, %v2396_v14  ;;  %v2447_v16 = vadd.f32 %v2443_v31, %v2397_v33 }
 0x5ae   :  { %v2448_v48 = vmax.f32 %v2446_v34, 0.0  ;;  %v2449_v57 = vmax.f32 %v2447_v16, 0.0 }
 0x5b0   :  { %v5112_v54 = vadd.f32 %v2448_v48, %v4804_v41  ;;  %v5115_v55 = vadd.f32 %v2449_v57, %v4807_v29  ;;  %v4119_v48 = vld [vmem:[%s5484_s4 + $0x28] sm:$0xff]  ;;  %v4120_v57 = vld [vmem:[%s5484_s4 + $0x30] sm:$0xff] }
 0x5b2   :  { %2454 = vrot.lane.b32.xlu1 %v5115_v55, %s4161_s16  ;;  %2552 = vrot.lane.b32.xlu2 %v5112_v54, %s4162_s17 }
 0x5b3   :  { %2452 = vrot.lane.b32.xlu0 %v5112_v54, %s4161_s16 }
 0x5ba   :  { %2502 = vrot.lane.b32.xlu1 %v5112_v54, %s4160_s15  ;;  %2504 = vrot.lane.b32.xlu2 %v5115_v55, %s4160_s15 }
 0x5bb   :  { %2554 = vrot.lane.b32.xlu0 %v5115_v55, %s4162_s17 }
 0x5c2   :  { %2604 = vrot.lane.b32.xlu1 %v5115_v55, %s4163_s20  ;;  %2744 = vrot.lane.b32.xlu2 %v5112_v54, %s4165_s22 }
 0x5c3   :  { %2602 = vrot.lane.b32.xlu0 %v5112_v54, %s4163_s20 }
 0x5ca   :  { %2694 = vrot.lane.b32.xlu1 %v5112_v54, %s4164_s21  ;;  %2696 = vrot.lane.b32.xlu2 %v5115_v55, %s4164_s21 }
 0x5cb   :  { %2746 = vrot.lane.b32.xlu0 %v5115_v55, %s4165_s22 }
 0x5d2   :  { %2846 = vrot.lane.b32.xlu1 %v5115_v55, %s4167_s24  ;;  %2794 = vrot.lane.b32.xlu2 %v5112_v54, %s4166_s23 }
 0x5d3   :  { %2844 = vrot.lane.b32.xlu0 %v5112_v54, %s4167_s24 }
 0x5db   :  { %2796 = vrot.lane.b32.xlu0 %v5115_v55, %s4166_s23 }
 0x60c   :  { %v2553_v41 = vpop.permute.xlu2 %2552 }
 0x614   :  { %v2505_v24 = vpop.permute.xlu2 %2504 }
 0x61c   :  { %v2745_v43 = vpop.permute.xlu2 %2744 }
 0x624   :  { %v2455_v29 = vpop.permute.xlu1 %2454  ;;  %v2697_v12 = vpop.permute.xlu2 %2696 }
 0x625   :  { %v2453_v46 = vpop.permute.xlu0 %2452 }
 0x626   :  { %v2456_v44 = vsel %vm68_vm1, %v2453_v46, %v2455_v29  ;;  %v2457_v45 = vsel %vm68_vm1, %v2455_v29, %v2453_v46 }
 0x627   :  { %v2458_v47 = vmul.f32 %v4956_v1, %v2457_v45  ;;  %v2459_v36 = vmul.f32 %v4962_v27, %v2456_v44 }
 0x629   :  { %2475 = vmatpush.msra.mxu2 %v2458_v47  ;;  %2495 = vmatpush.msra.mxu3 %v2459_v36  ;;  %v4121_v36 = vld [vmem:[%s5484_s4 + $0x40] sm:$0xff] }
 0x62a   :  { %4014 = vmatmul.msk.f32.vlgmr.msra.gmra.mxu2 %vm76_vm3, %v4114_v2  ;;  %4015 = vmatmul.msk.f32.vlgmr.msra.gmra.mxu3 %vm76_vm3, %v4114_v2 }
 0x62c   :  { %v2503_v39 = vpop.permute.xlu1 %2502 }
 0x62d   :  { %v2506_v9 = vsel %vm126_vm2, %v2503_v39, %v2505_v24  ;;  %v2507_v40 = vsel %vm126_vm2, %v2505_v24, %v2503_v39  ;;  %v2555_v3 = vpop.permute.xlu0 %2554  ;;  %v2795_v24 = vpop.permute.xlu2 %2794 }
 0x62e   :  { %v2508_v58 = vmul.f32 %v4968_v7, %v2507_v40  ;;  %v2509_v15 = vmul.f32 %v4974_v26, %v2506_v9  ;;  %v2556_v49 = vsel %vm185_vm0, %v2553_v41, %v2555_v3  ;;  %v2557_v5 = vsel %vm185_vm0, %v2555_v3, %v2553_v41 }
 0x62f   :  { %v2558_v42 = vmul.f32 %v4992_v32, %v2557_v5  ;;  %v2559_v61 = vmul.f32 %v4998_v60, %v2556_v49 }
 0x630   :  { %2525 = vmatpush.msrb.mxu0 %v2508_v58  ;;  %2545 = vmatpush.msrb.mxu1 %v2509_v15  ;;  %v4122_v58 = vld [vmem:[%s5484_s4 + $0x38] sm:$0xff] }
 0x631   :  { %2575 = vmatpush.msrb.mxu2 %v2558_v42  ;;  %2595 = vmatpush.msrb.mxu3 %v2559_v61 }
 0x632   :  { %4016 = vmatmul.msk.f32.vlgmr.msrb.gmra.mxu0 %vm76_vm3, %v4115_v50  ;;  %4017 = vmatmul.msk.f32.vlgmr.msrb.gmra.mxu1 %vm76_vm3, %v4115_v50 }
 0x633   :  { %4018 = vmatmul.msk.f32.vlgmr.msrb.gmra.mxu2 %vm76_vm3, %v4116_v51  ;;  %4019 = vmatmul.msk.f32.vlgmr.msrb.gmra.mxu3 %vm76_vm3, %v4116_v51 }
 0x634   :  { %2667 = vmatpush.msra.mxu2 %v5112_v54  ;;  %2687 = vmatpush.msra.mxu3 %v5115_v55  ;;  %v2605_v52 = vpop.permute.xlu1 %2604 }
 0x635   :  { %v2603_v53 = vpop.permute.xlu0 %2602 }
 0x636   :  { %v2606_v20 = vsel %vm244_vm4, %v2603_v53, %v2605_v52  ;;  %v2607_v25 = vsel %vm244_vm4, %v2605_v52, %v2603_v53 }
 0x637   :  { %v2608_v59 = vmul.f32 %v5016_v56, %v2607_v25  ;;  %v2609_v28 = vmul.f32 %v5022_v10, %v2606_v20 }
 0x639   :  { %2625 = vmatpush.msra.mxu0 %v2608_v59  ;;  %2645 = vmatpush.msra.mxu1 %v2609_v28 }
 0x63a   :  { %4020 = vmatmul.msk.f32.vlgmr.msra.gmra.mxu0 %vm76_vm3, %v4117_v63  ;;  %4021 = vmatmul.msk.f32.vlgmr.msra.gmra.mxu1 %vm76_vm3, %v4117_v63 }
 0x63b   :  { %4022 = vmatmul.msk.f32.vlgmr.msra.gmra.mxu2 %vm76_vm3, %v4118_v0  ;;  %4023 = vmatmul.msk.f32.vlgmr.msra.gmra.mxu3 %vm76_vm3, %v4118_v0 }
 0x63c   :  { %v2695_v13 = vpop.permute.xlu1 %2694 }
 0x63d   :  { %v2698_v22 = vsel %vm350_vm6, %v2695_v13, %v2697_v12  ;;  %v2699_v23 = vsel %vm350_vm6, %v2697_v12, %v2695_v13  ;;  %v2747_v31 = vpop.permute.xlu0 %2746 }
 0x63e   :  { %v2700_v6 = vmul.f32 %v5028_v11, %v2698_v22  ;;  %v2701_v38 = vmul.f32 %v5034_v62, %v2699_v23  ;;  %v2748_v14 = vsel %vm409_vm5, %v2745_v43, %v2747_v31  ;;  %v2749_v33 = vsel %vm409_vm5, %v2747_v31, %v2745_v43 }
 0x63f   :  { %v2750_v34 = vmul.f32 %v5052_v21, %v2748_v14  ;;  %v2751_v16 = vmul.f32 %v5058_v37, %v2749_v33 }
 0x640   :  { %2717 = vmatpush.msrb.mxu0 %v2700_v6  ;;  %2737 = vmatpush.msrb.mxu1 %v2701_v38 }
 0x641   :  { %2767 = vmatpush.msrb.mxu2 %v2750_v34  ;;  %2787 = vmatpush.msrb.mxu3 %v2751_v16 }
 0x642   :  { %4024 = vmatmul.msk.f32.vlgmr.msrb.gmra.mxu0 %vm76_vm3, %v4119_v48  ;;  %4025 = vmatmul.msk.f32.vlgmr.msrb.gmra.mxu1 %vm76_vm3, %v4119_v48 }
 0x643   :  { %4026 = vmatmul.msk.f32.vlgmr.msrb.gmra.mxu2 %vm76_vm3, %v4120_v57  ;;  %4027 = vmatmul.msk.f32.vlgmr.msrb.gmra.mxu3 %vm76_vm3, %v4120_v57 }
 0x644   :  { %v2847_v41 = vpop.permute.xlu1 %2846 }
 0x645   :  { %v2845_v29 = vpop.permute.xlu0 %2844 }
 0x646   :  { %v2848_v46 = vsel %vm527_vm8, %v2845_v29, %v2847_v41  ;;  %v2849_v44 = vsel %vm527_vm8, %v2847_v41, %v2845_v29 }
 0x647   :  { %v2850_v45 = vmul.f32 %v5092_v19, %v2848_v46  ;;  %v2851_v47 = vmul.f32 %v5098_v35, %v2849_v44 }
 0x649   :  { %2867 = vmatpush.msra.mxu2 %v2850_v45  ;;  %2887 = vmatpush.msra.mxu3 %v2851_v47 }
 0x64b   :  { %4030 = vmatmul.msk.f32.vlgmr.msra.gmra.mxu2 %vm76_vm3, %v4121_v36  ;;  %4031 = vmatmul.msk.f32.vlgmr.msra.gmra.mxu3 %vm76_vm3, %v4121_v36 }
 0x64d   :  { %v2797_v2 = vpop.permute.xlu0 %2796 }
 0x64e   :  { %v2798_v39 = vsel %vm468_vm7, %v2795_v24, %v2797_v2  ;;  %v2799_v9 = vsel %vm468_vm7, %v2797_v2, %v2795_v24 }
 0x64f   :  { %v2800_v40 = vmul.f32 %v5080_v17, %v2798_v39  ;;  %v2801_v3 = vmul.f32 %v5086_v18, %v2799_v9 }
 0x651   :  { %2817 = vmatpush.msra.mxu0 %v2800_v40  ;;  %2837 = vmatpush.msra.mxu1 %v2801_v3 }
 0x652   :  { %4028 = vmatmul.msk.f32.vlgmr.msra.gmra.mxu0 %vm76_vm3, %v4122_v58  ;;  %4029 = vmatmul.msk.f32.vlgmr.msra.gmra.mxu1 %vm76_vm3, %v4122_v58 }
 0x6ad   :  { %v2477_v15 = vpop.f32.mrf.mxu2  ;;  %v2497_v49 = vpop.f32.mrf.mxu3 }
 0x6ae   :  { %v2500_v50 = vadd.f32 %v2477_v15, %v4625_v30  ;;  %v2501_v51 = vadd.f32 %v2497_v49, %v4625_v30 }
 0x6af   :  { %v2527_v5 = vpop.f32.mrf.mxu0  ;;  %v2547_v42 = vpop.f32.mrf.mxu1 }
 0x6b0   :  { %v2550_v59 = vadd.f32 %v2527_v5, %v2500_v50  ;;  %v2551_v28 = vadd.f32 %v2547_v42, %v2501_v51  ;;  %v4123_v5 = vld [vmem:[%s5486_s6] sm:$0xff] }
 0x6b6   :  { %v2577_v61 = vpop.f32.mrf.mxu2  ;;  %v2597_v43 = vpop.f32.mrf.mxu3 }
 0x6b7   :  { %v2627_v52 = vpop.f32.mrf.mxu0  ;;  %v2647_v53 = vpop.f32.mrf.mxu1  ;;  %v2600_v63 = vadd.f32 %v2577_v61, %v2550_v59  ;;  %v2601_v0 = vadd.f32 %v2597_v43, %v2551_v28 }
 0x6b9   :  { %v2650_v12 = vadd.f32 %v2627_v52, %v2600_v63  ;;  %v2651_v13 = vadd.f32 %v2647_v53, %v2601_v0  ;;  %v4124_v63 = vld [vmem:[%s5486_s6 + $0x8] sm:$0xff] }
 0x6be   :  { %v2669_v20 = vpop.f32.mrf.mxu2  ;;  %v2689_v25 = vpop.f32.mrf.mxu3 }
 0x6bf   :  { %v2719_v31 = vpop.f32.mrf.mxu0  ;;  %v2739_v6 = vpop.f32.mrf.mxu1  ;;  %v2692_v38 = vadd.f32 %v2669_v20, %v2650_v12  ;;  %v2693_v14 = vadd.f32 %v2689_v25, %v2651_v13  ;;  %v4125_v12 = vld [vmem:[%s5486_s6 + $0x10] sm:$0xff] }
 0x6c1   :  { %v2742_v33 = vadd.f32 %v2719_v31, %v2692_v38  ;;  %v2743_v34 = vadd.f32 %v2739_v6, %v2693_v14  ;;  %v4126_v38 = vld [vmem:[%s5486_s6 + $0x18] sm:$0xff] }
 0x6c6   :  { %v2769_v22 = vpop.f32.mrf.mxu2  ;;  %v2789_v23 = vpop.f32.mrf.mxu3 }
 0x6c7   :  { %v2792_v16 = vadd.f32 %v2769_v22, %v2742_v33  ;;  %v2793_v30 = vadd.f32 %v2789_v23, %v2743_v34  ;;  %v4127_v34 = vld [vmem:[%s5486_s6 + $0x20] sm:$0xff] }
 0x6ce   :  { %v2869_v48 = vpop.f32.mrf.mxu2  ;;  %v2889_v57 = vpop.f32.mrf.mxu3 }
 0x6cf   :  { %v2819_v41 = vpop.f32.mrf.mxu0  ;;  %v2839_v29 = vpop.f32.mrf.mxu1 }
 0x6d0   :  { %v2842_v46 = vadd.f32 %v2819_v41, %v2792_v16  ;;  %v2843_v44 = vadd.f32 %v2839_v29, %v2793_v30 }
 0x6d2   :  { %v2892_v45 = vadd.f32 %v2869_v48, %v2842_v46  ;;  %v2893_v47 = vadd.f32 %v2889_v57, %v2843_v44 }
 0x6d4   :  { %v2894_v36 = vmax.f32 %v2892_v45, 0.0  ;;  %v2895_v24 = vmax.f32 %v2893_v47, 0.0  ;;  %v4128_v47 = vld [vmem:[%s5486_s6 + $0x28] sm:$0xff] }
 0x6d6   :  { %2898 = vrot.lane.b32.xlu2 %v2895_v24, %s4161_s16  ;;  %2946 = vrot.lane.b32.xlu0 %v2894_v36, %s4160_s15 }
 0x6d7   :  { %2896 = vrot.lane.b32.xlu1 %v2894_v36, %s4161_s16 }
 0x6de   :  { %2996 = vrot.lane.b32.xlu2 %v2894_v36, %s4162_s17  ;;  %2998 = vrot.lane.b32.xlu0 %v2895_v24, %s4162_s17 }
 0x6df   :  { %2948 = vrot.lane.b32.xlu1 %v2895_v24, %s4160_s15 }
 0x6e6   :  { %3048 = vrot.lane.b32.xlu2 %v2895_v24, %s4163_s20  ;;  %3138 = vrot.lane.b32.xlu0 %v2894_v36, %s4164_s21 }
 0x6e7   :  { %3046 = vrot.lane.b32.xlu1 %v2894_v36, %s4163_s20 }
 0x6ee   :  { %3188 = vrot.lane.b32.xlu2 %v2894_v36, %s4165_s22  ;;  %3190 = vrot.lane.b32.xlu0 %v2895_v24, %s4165_s22 }
 0x6ef   :  { %3140 = vrot.lane.b32.xlu1 %v2895_v24, %s4164_s21 }
 0x6f6   :  { %3240 = vrot.lane.b32.xlu2 %v2895_v24, %s4166_s23  ;;  %3288 = vrot.lane.b32.xlu0 %v2894_v36, %s4167_s24 }
 0x6f7   :  { %3238 = vrot.lane.b32.xlu1 %v2894_v36, %s4166_s23 }
 0x6ff   :  { %3290 = vrot.lane.b32.xlu1 %v2895_v24, %s4167_s24 }
 0x730   :  { %v2899_v2 = vpop.permute.xlu2 %2898 }
 0x738   :  { %v2997_v58 = vpop.permute.xlu2 %2996 }
 0x740   :  { %v3049_v28 = vpop.permute.xlu2 %3048 }
 0x748   :  { %v2947_v39 = vpop.permute.xlu0 %2946  ;;  %v3189_v14 = vpop.permute.xlu2 %3188 }
 0x749   :  { %v2897_v9 = vpop.permute.xlu1 %2896 }
 0x74a   :  { %v2900_v40 = vsel %vm68_vm1, %v2897_v9, %v2899_v2  ;;  %v2901_v3 = vsel %vm68_vm1, %v2899_v2, %v2897_v9 }
 0x74b   :  { %v2902_v15 = vmul.f32 %v4956_v1, %v2901_v3  ;;  %v2903_v49 = vmul.f32 %v4962_v27, %v2900_v40 }
 0x74d   :  { %2919 = vmatpush.msrb.mxu0 %v2902_v15  ;;  %2939 = vmatpush.msrb.mxu1 %v2903_v49 }
 0x74e   :  { %4032 = vmatmul.msk.f32.vlgmr.msrb.gmra.mxu0 %vm76_vm3, %v4123_v5  ;;  %4033 = vmatmul.msk.f32.vlgmr.msrb.gmra.mxu1 %vm76_vm3, %v4123_v5 }
 0x750   :  { %v2999_v42 = vpop.permute.xlu0 %2998 }
 0x751   :  { %v3000_v61 = vsel %vm185_vm0, %v2997_v58, %v2999_v42  ;;  %v3001_v43 = vsel %vm185_vm0, %v2999_v42, %v2997_v58  ;;  %v2949_v50 = vpop.permute.xlu1 %2948  ;;  %v4130_v58 = vld [vmem:[%s5486_s6 + $0x38] sm:$0xff] }
 0x752   :  { %v3002_v51 = vmul.f32 %v4992_v32, %v3001_v43  ;;  %v3003_v52 = vmul.f32 %v4998_v60, %v3000_v61  ;;  %v2950_v53 = vsel %vm126_vm2, %v2947_v39, %v2949_v50  ;;  %v2951_v20 = vsel %vm126_vm2, %v2949_v50, %v2947_v39  ;;  %v4131_v50 = vld [vmem:[%s5486_s6 + $0x40] sm:$0xff] }
 0x753   :  { %v2952_v25 = vmul.f32 %v4968_v7, %v2951_v20  ;;  %v2953_v59 = vmul.f32 %v4974_v26, %v2950_v53 }
 0x754   :  { %3019 = vmatpush.msra.mxu0 %v3002_v51  ;;  %3039 = vmatpush.msra.mxu1 %v3003_v52 }
 0x755   :  { %2969 = vmatpush.msrb.mxu2 %v2952_v25  ;;  %2989 = vmatpush.msrb.mxu3 %v2953_v59 }
 0x756   :  { %4034 = vmatmul.msk.f32.vlgmr.msrb.gmra.mxu2 %vm76_vm3, %v4124_v63  ;;  %4035 = vmatmul.msk.f32.vlgmr.msrb.gmra.mxu3 %vm76_vm3, %v4124_v63 }
 0x757   :  { %3111 = vmatpush.msrb.mxu0 %v2894_v36  ;;  %3131 = vmatpush.msrb.mxu1 %v2895_v24  ;;  %v4129_v36 = vld [vmem:[%s5486_s6 + $0x30] sm:$0xff]  ;;  %v3241_v24 = vpop.permute.xlu2 %3240 }
 0x758   :  { %v3139_v0 = vpop.permute.xlu0 %3138  ;;  %4036 = vmatmul.msk.f32.vlgmr.msra.gmra.mxu0 %vm76_vm3, %v4125_v12  ;;  %4037 = vmatmul.msk.f32.vlgmr.msra.gmra.mxu1 %vm76_vm3, %v4125_v12 }
 0x759   :  { %v3047_v13 = vpop.permute.xlu1 %3046 }
 0x75a   :  { %v3050_v22 = vsel %vm244_vm4, %v3047_v13, %v3049_v28  ;;  %v3051_v23 = vsel %vm244_vm4, %v3049_v28, %v3047_v13 }
 0x75b   :  { %v3052_v31 = vmul.f32 %v5016_v56, %v3051_v23  ;;  %v3053_v6 = vmul.f32 %v5022_v10, %v3050_v22 }
 0x75d   :  { %3069 = vmatpush.msra.mxu2 %v3052_v31  ;;  %3089 = vmatpush.msra.mxu3 %v3053_v6 }
 0x75e   :  { %4038 = vmatmul.msk.f32.vlgmr.msra.gmra.mxu2 %vm76_vm3, %v4126_v38  ;;  %4039 = vmatmul.msk.f32.vlgmr.msra.gmra.mxu3 %vm76_vm3, %v4126_v38 }
 0x760   :  { %v3191_v33 = vpop.permute.xlu0 %3190  ;;  %4040 = vmatmul.msk.f32.vlgmr.msrb.gmra.mxu0 %vm76_vm3, %v4127_v34  ;;  %4041 = vmatmul.msk.f32.vlgmr.msrb.gmra.mxu1 %vm76_vm3, %v4127_v34 }
 0x761   :  { %v3192_v16 = vsel %vm409_vm5, %v3189_v14, %v3191_v33  ;;  %v3193_v30 = vsel %vm409_vm5, %v3191_v33, %v3189_v14  ;;  %v3141_v48 = vpop.permute.xlu1 %3140 }
 0x762   :  { %v3194_v57 = vmul.f32 %v5052_v21, %v3192_v16  ;;  %v3195_v41 = vmul.f32 %v5058_v37, %v3193_v30  ;;  %v3142_v29 = vsel %vm350_vm6, %v3139_v0, %v3141_v48  ;;  %v3143_v46 = vsel %vm350_vm6, %v3141_v48, %v3139_v0 }
 0x763   :  { %v3144_v44 = vmul.f32 %v5028_v11, %v3142_v29  ;;  %v3145_v45 = vmul.f32 %v5034_v62, %v3143_v46 }
 0x764   :  { %3211 = vmatpush.msra.mxu0 %v3194_v57  ;;  %3231 = vmatpush.msra.mxu1 %v3195_v41 }
 0x765   :  { %3161 = vmatpush.msrb.mxu2 %v3144_v44  ;;  %3181 = vmatpush.msrb.mxu3 %v3145_v45 }
 0x766   :  { %4042 = vmatmul.msk.f32.vlgmr.msrb.gmra.mxu2 %vm76_vm3, %v4128_v47  ;;  %4043 = vmatmul.msk.f32.vlgmr.msrb.gmra.mxu3 %vm76_vm3, %v4128_v47 }
 0x768   :  { %4044 = vmatmul.msk.f32.vlgmr.msra.gmra.mxu0 %vm76_vm3, %v4129_v36  ;;  %4045 = vmatmul.msk.f32.vlgmr.msra.gmra.mxu1 %vm76_vm3, %v4129_v36  ;;  %v3289_v15 = vpop.permute.xlu0 %3288 }
 0x769   :  { %v3239_v2 = vpop.permute.xlu1 %3238 }
 0x76a   :  { %v3242_v39 = vsel %vm468_vm7, %v3239_v2, %v3241_v24  ;;  %v3243_v9 = vsel %vm468_vm7, %v3241_v24, %v3239_v2 }
 0x76b   :  { %v3244_v40 = vmul.f32 %v5080_v17, %v3242_v39  ;;  %v3245_v3 = vmul.f32 %v5086_v18, %v3243_v9 }
 0x76d   :  { %3261 = vmatpush.msra.mxu2 %v3244_v40  ;;  %3281 = vmatpush.msra.mxu3 %v3245_v3 }
 0x76e   :  { %4046 = vmatmul.msk.f32.vlgmr.msra.gmra.mxu2 %vm76_vm3, %v4130_v58  ;;  %4047 = vmatmul.msk.f32.vlgmr.msra.gmra.mxu3 %vm76_vm3, %v4130_v58 }
 0x771   :  { %v3291_v49 = vpop.permute.xlu1 %3290 }
 0x772   :  { %v3292_v5 = vsel %vm527_vm8, %v3289_v15, %v3291_v49  ;;  %v3293_v42 = vsel %vm527_vm8, %v3291_v49, %v3289_v15 }
 0x773   :  { %v3294_v61 = vmul.f32 %v5092_v19, %v3292_v5  ;;  %v3295_v43 = vmul.f32 %v5098_v35, %v3293_v42 }
 0x775   :  { %3311 = vmatpush.msrb.mxu0 %v3294_v61  ;;  %3331 = vmatpush.msrb.mxu1 %v3295_v43 }
 0x776   :  { %4048 = vmatmul.msk.f32.vlgmr.msrb.gmra.mxu0 %vm76_vm3, %v4131_v50  ;;  %4049 = vmatmul.msk.f32.vlgmr.msrb.gmra.mxu1 %vm76_vm3, %v4131_v50 }
 0x7cb   :  { %v2921_v51 = vpop.f32.mrf.mxu0  ;;  %v2941_v52 = vpop.f32.mrf.mxu1 }
 0x7cc   :  { %v2944_v28 = vadd.f32 %v2921_v51, %v5502_v4  ;;  %v2945_v63 = vadd.f32 %v2941_v52, %v5502_v4 }
 0x7d5   :  { %v3021_v53 = vpop.f32.mrf.mxu0  ;;  %v3041_v20 = vpop.f32.mrf.mxu1 }
 0x7d9   :  { %v2971_v25 = vpop.f32.mrf.mxu2  ;;  %v2991_v59 = vpop.f32.mrf.mxu3 }
 0x7da   :  { %v2994_v13 = vadd.f32 %v2971_v25, %v2944_v28  ;;  %v2995_v22 = vadd.f32 %v2991_v59, %v2945_v63  ;;  %v3350_v63 = vld [vmem:[%s5488_s8] sm:$0xff] }
 0x7dc   :  { %v3044_v6 = vadd.f32 %v3021_v53, %v2994_v13  ;;  %v3045_v38 = vadd.f32 %v3041_v20, %v2995_v22  ;;  %v4052_v13 = vld [vmem:[%s5488_s8 + $0x8] sm:$0xff] }
 0x7dd   :  { %v3113_v0 = vpop.f32.mrf.mxu0  ;;  %v3133_v12 = vpop.f32.mrf.mxu1 }
 0x7e1   :  { %v3071_v23 = vpop.f32.mrf.mxu2  ;;  %v3091_v31 = vpop.f32.mrf.mxu3 }
 0x7e2   :  { %v3094_v14 = vadd.f32 %v3071_v23, %v3044_v6  ;;  %v3095_v33 = vadd.f32 %v3091_v31, %v3045_v38  ;;  %v4055_v23 = vld [vmem:[%s5488_s8 + $0x10] sm:$0xff] }
 0x7e4   :  { %v3136_v57 = vadd.f32 %v3113_v0, %v3094_v14  ;;  %v3137_v41 = vadd.f32 %v3133_v12, %v3095_v33 }
 0x7e5   :  { %v3213_v34 = vpop.f32.mrf.mxu0  ;;  %v3233_v16 = vpop.f32.mrf.mxu1 }
 0x7e9   :  { %v3163_v30 = vpop.f32.mrf.mxu2  ;;  %v3183_v48 = vpop.f32.mrf.mxu3 }
 0x7ea   :  { %v3186_v29 = vadd.f32 %v3163_v30, %v3136_v57  ;;  %v3187_v46 = vadd.f32 %v3183_v48, %v3137_v41  ;;  %v4058_v48 = vld [vmem:[%s5488_s8 + $0x18] sm:$0xff]  ;;  %v4061_v57 = vld [vmem:[%s5488_s8 + $0x20] sm:$0xff] }
 0x7ec   :  { %v3236_v44 = vadd.f32 %v3213_v34, %v3186_v29  ;;  %v3237_v4 = vadd.f32 %v3233_v16, %v3187_v46 }
 0x7f1   :  { %v3263_v45 = vpop.f32.mrf.mxu2  ;;  %v3283_v47 = vpop.f32.mrf.mxu3 }
 0x7f2   :  { %v3286_v36 = vadd.f32 %v3263_v45, %v3236_v44  ;;  %v3287_v24 = vadd.f32 %v3283_v47, %v3237_v4  ;;  %v4064_v44 = vld [vmem:[%s5488_s8 + $0x28] sm:$0xff]  ;;  %v4067_v4 = vld [vmem:[%s5488_s8 + $0x30] sm:$0xff] }
 0x7f3   :  { %v3313_v2 = vpop.f32.mrf.mxu0  ;;  %v3333_v39 = vpop.f32.mrf.mxu1 }
 0x7f4   :  { %v3336_v9 = vadd.f32 %v3313_v2, %v3286_v36  ;;  %v3337_v40 = vadd.f32 %v3333_v39, %v3287_v24 }
 0x7f6   :  { %v3338_v3 = vmax.f32 %v3336_v9, 0.0  ;;  %v3339_v58 = vmax.f32 %v3337_v40, 0.0 }
 0x7f8   :  { %v3340_v15 = vadd.f32 %v3338_v3, %v5112_v54  ;;  %v3341_v49 = vadd.f32 %v3339_v58, %v5115_v55  ;;  %v56_v54 = vld [vmem:[%s5489_s9] sm:$0xff]  ;;  %v4070_v58 = vld [vmem:[%s5488_s8 + $0x38] sm:$0xff] }
 0x7fa   :  { %3344 = vrot.lane.b32.xlu0 %v3341_v49, %s4161_s16  ;;  %3451 = vrot.lane.b32.xlu1 %v3340_v15, %s4162_s17 }
 0x7fb   :  { %3342 = vrot.lane.b32.xlu2 %v3340_v15, %s4161_s16 }
 0x802   :  { %3396 = vrot.lane.b32.xlu0 %v3340_v15, %s4160_s15  ;;  %3398 = vrot.lane.b32.xlu1 %v3341_v49, %s4160_s15 }
 0x803   :  { %3453 = vrot.lane.b32.xlu2 %v3341_v49, %s4162_s17 }
 0x80a   :  { %3508 = vrot.lane.b32.xlu0 %v3341_v49, %s4163_s20  ;;  %3663 = vrot.lane.b32.xlu1 %v3340_v15, %s4165_s22 }
 0x80b   :  { %3506 = vrot.lane.b32.xlu2 %v3340_v15, %s4163_s20 }
 0x812   :  { %3608 = vrot.lane.b32.xlu0 %v3340_v15, %s4164_s21  ;;  %3610 = vrot.lane.b32.xlu1 %v3341_v49, %s4164_s21 }
 0x813   :  { %3665 = vrot.lane.b32.xlu2 %v3341_v49, %s4165_s22 }
 0x81a   :  { %3775 = vrot.lane.b32.xlu0 %v3341_v49, %s4167_s24  ;;  %3718 = vrot.lane.b32.xlu1 %v3340_v15, %s4166_s23 }
 0x81b   :  { %3773 = vrot.lane.b32.xlu2 %v3340_v15, %s4167_s24 }
 0x822   :  { %59 = vperm.xlu0 %4089, %v56_v54  }
 0x823   :  { %3720 = vrot.lane.b32.xlu2 %v3341_v49, %s4166_s23 }
 0x855   :  { %v3343_v55 = vpop.permute.xlu2 %3342 }
 0x85d   :  { %v3454_v5 = vpop.permute.xlu2 %3453 }
 0x865   :  { %v3507_v43 = vpop.permute.xlu2 %3506 }
 0x86c   :  { %v3345_v42 = vpop.permute.xlu0 %3344  ;;  %v3452_v61 = vpop.permute.xlu1 %3451 }
 0x86d   :  { %v3346_v50 = vsel %vm68_vm1, %v3343_v55, %v3345_v42  ;;  %v3347_v51 = vsel %vm68_vm1, %v3345_v42, %v3343_v55  ;;  %v3455_v52 = vsel %vm185_vm0, %v3452_v61, %v3454_v5  ;;  %v3456_v53 = vsel %vm185_vm0, %v3454_v5, %v3452_v61  ;;  %v3666_v22 = vpop.permute.xlu2 %3665 }
 0x86e   :  { %v3348_v20 = vmul.f32 %v4956_v1, %v3347_v51  ;;  %v3349_v25 = vmul.f32 %v4962_v27, %v3346_v50  ;;  %v3457_v59 = vmul.f32 %v4992_v32, %v3456_v53  ;;  %v3458_v28 = vmul.f32 %v4998_v60, %v3455_v52 }
 0x870   :  { %3369 = vmatpush.msrb.mxu2 %v3348_v20  ;;  %3389 = vmatpush.msrb.mxu3 %v3349_v25 }
 0x871   :  { %4050 = vmatmul.msk.f32.vlgmr.msrb.gmra.mxu2 %vm76_vm3, %v3350_v63  ;;  %4051 = vmatmul.msk.f32.vlgmr.msrb.gmra.mxu3 %vm76_vm3, %v3350_v63 }
 0x872   :  { %3479 = vmatpush.msra.mxu2 %v3457_v59  ;;  %3499 = vmatpush.msra.mxu3 %v3458_v28 }
 0x874   :  { %3581 = vmatpush.msrb.mxu2 %v3340_v15  ;;  %3601 = vmatpush.msrb.mxu3 %v3341_v49  ;;  %v3397_v1 = vpop.permute.xlu0 %3396  ;;  %v3399_v27 = vpop.permute.xlu1 %3398  ;;  %v4073_v15 = vld [vmem:[%s5488_s8 + $0x40] sm:$0xff]  ;;  %s4169_s8 = smov [#allocation2]  }
 0x875   :  { %v3400_v32 = vsel %vm126_vm2, %v3397_v1, %v3399_v27  ;;  %v3401_v60 = vsel %vm126_vm2, %v3399_v27, %v3397_v1  ;;  %v3774_v41 = vpop.permute.xlu2 %3773  ;;  %s3875_s5 = sshll.u32 %s4169_s8, 4  ;;  %s3876_s5 = int_to_ptr.vmem [resolvable:$true] %s3875_s5 }
 0x876   :  { %v3402_v0 = vmul.f32 %v4968_v7, %v3401_v60  ;;  %v3403_v12 = vmul.f32 %v4974_v26, %v3400_v32 }
 0x878   :  { %3424 = vmatpush.msra.mxu0 %v3402_v0  ;;  %3444 = vmatpush.msra.mxu1 %v3403_v12 }
 0x879   :  { %4053 = vmatmul.msk.f32.vlgmr.msra.gmra.mxu0 %vm76_vm3, %v4052_v13  ;;  %4054 = vmatmul.msk.f32.vlgmr.msra.gmra.mxu1 %vm76_vm3, %v4052_v13 }
 0x87a   :  { %4056 = vmatmul.msk.f32.vlgmr.msra.gmra.mxu2 %vm76_vm3, %v4055_v23  ;;  %4057 = vmatmul.msk.f32.vlgmr.msra.gmra.mxu3 %vm76_vm3, %v4055_v23 }
 0x87c   :  { %v3509_v7 = vpop.permute.xlu0 %3508  ;;  %v3664_v26 = vpop.permute.xlu1 %3663 }
 0x87d   :  { %v3510_v31 = vsel %vm244_vm4, %v3507_v43, %v3509_v7  ;;  %v3511_v6 = vsel %vm244_vm4, %v3509_v7, %v3507_v43  ;;  %v3667_v38 = vsel %vm409_vm5, %v3664_v26, %v3666_v22  ;;  %v3668_v14 = vsel %vm409_vm5, %v3666_v22, %v3664_v26  ;;  %v3721_v45 = vpop.permute.xlu2 %3720 }
 0x87e   :  { %v3512_v33 = vmul.f32 %v5016_v56, %v3511_v6  ;;  %v3513_v34 = vmul.f32 %v5022_v10, %v3510_v31  ;;  %v3669_v16 = vmul.f32 %v5052_v21, %v3667_v38  ;;  %v3670_v30 = vmul.f32 %v5058_v37, %v3668_v14 }
 0x880   :  { %3534 = vmatpush.msrb.mxu0 %v3512_v33  ;;  %3554 = vmatpush.msrb.mxu1 %v3513_v34 }
 0x881   :  { %3691 = vmatpush.msra.mxu2 %v3669_v16  ;;  %3711 = vmatpush.msra.mxu3 %v3670_v30 }
 0x882   :  { %4059 = vmatmul.msk.f32.vlgmr.msrb.gmra.mxu0 %vm76_vm3, %v4058_v48  ;;  %4060 = vmatmul.msk.f32.vlgmr.msrb.gmra.mxu1 %vm76_vm3, %v4058_v48 }
 0x883   :  { %4062 = vmatmul.msk.f32.vlgmr.msrb.gmra.mxu2 %vm76_vm3, %v4061_v57  ;;  %4063 = vmatmul.msk.f32.vlgmr.msrb.gmra.mxu3 %vm76_vm3, %v4061_v57 }
 0x884   :  { %v3609_v56 = vpop.permute.xlu0 %3608  ;;  %v3611_v10 = vpop.permute.xlu1 %3610 }
 0x885   :  { %v3612_v21 = vsel %vm350_vm6, %v3609_v56, %v3611_v10  ;;  %v3613_v37 = vsel %vm350_vm6, %v3611_v10, %v3609_v56 }
 0x886   :  { %v3614_v29 = vmul.f32 %v5028_v11, %v3612_v21  ;;  %v3615_v46 = vmul.f32 %v5034_v62, %v3613_v37 }
 0x888   :  { %3636 = vmatpush.msra.mxu0 %v3614_v29  ;;  %3656 = vmatpush.msra.mxu1 %v3615_v46 }
 0x88a   :  { %4065 = vmatmul.msk.f32.vlgmr.msra.gmra.mxu0 %vm76_vm3, %v4064_v44  ;;  %4066 = vmatmul.msk.f32.vlgmr.msra.gmra.mxu1 %vm76_vm3, %v4064_v44 }
 0x88b   :  { %4068 = vmatmul.msk.f32.vlgmr.msra.gmra.mxu2 %vm76_vm3, %v4067_v4  ;;  %4069 = vmatmul.msk.f32.vlgmr.msra.gmra.mxu3 %vm76_vm3, %v4067_v4 }
 0x88c   :  { %v3776_v11 = vpop.permute.xlu0 %3775  ;;  %v3719_v62 = vpop.permute.xlu1 %3718 }
 0x88d   :  { %v3777_v47 = vsel %vm527_vm8, %v3774_v41, %v3776_v11  ;;  %v3778_v36 = vsel %vm527_vm8, %v3776_v11, %v3774_v41  ;;  %v3722_v24 = vsel %vm468_vm7, %v3719_v62, %v3721_v45  ;;  %v3723_v2 = vsel %vm468_vm7, %v3721_v45, %v3719_v62 }
 0x88e   :  { %v3779_v39 = vmul.f32 %v5092_v19, %v3777_v47  ;;  %v3780_v9 = vmul.f32 %v5098_v35, %v3778_v36  ;;  %v3724_v40 = vmul.f32 %v5080_v17, %v3722_v24  ;;  %v3725_v3 = vmul.f32 %v5086_v18, %v3723_v2 }
 0x890   :  { %3746 = vmatpush.msrb.mxu0 %v3724_v40  ;;  %3766 = vmatpush.msrb.mxu1 %v3725_v3 }
 0x891   :  { %3801 = vmatpush.msrb.mxu2 %v3779_v39  ;;  %3821 = vmatpush.msrb.mxu3 %v3780_v9 }
 0x892   :  { %4071 = vmatmul.msk.f32.vlgmr.msrb.gmra.mxu0 %vm76_vm3, %v4070_v58  ;;  %4072 = vmatmul.msk.f32.vlgmr.msrb.gmra.mxu1 %vm76_vm3, %v4070_v58 }
 0x893   :  { %4074 = vmatmul.msk.f32.vlgmr.msrb.gmra.mxu2 %vm76_vm3, %v4073_v15  ;;  %4075 = vmatmul.msk.f32.vlgmr.msrb.gmra.mxu3 %vm76_vm3, %v4073_v15  ;;  %v4132_v15 = vld [vmem:[%s5480_s0] sm:$0xff] }
 0x894   :  { %v60_v54 = vpop.permute.xlu0 %59 }
 0x8f4   :  { %v3371_v8 = vpop.f32.mrf.mxu2  ;;  %v3391_v17 = vpop.f32.mrf.mxu3 }
 0x8f5   :  { %v3394_v55 = vadd.f32 %v3371_v8, %v60_v54  ;;  %v3395_v5 = vadd.f32 %v3391_v17, %v60_v54  ;;  %v4133_v17 = vld [vmem:[%s5480_s0 + $0x8] sm:$0xff] }
 0x8f6   :  { %v3426_v18 = vpop.f32.mrf.mxu0  ;;  %v3446_v19 = vpop.f32.mrf.mxu1 }
 0x8f7   :  { %v3449_v43 = vadd.f32 %v3426_v18, %v3394_v55  ;;  %v3450_v50 = vadd.f32 %v3446_v19, %v3395_v5 }
 0x8fd   :  { %v3481_v35 = vpop.f32.mrf.mxu2  ;;  %v3501_v49 = vpop.f32.mrf.mxu3 }
 0x8fe   :  { %v3504_v51 = vadd.f32 %v3481_v35, %v3449_v43  ;;  %v3505_v52 = vadd.f32 %v3501_v49, %v3450_v50 }
 0x8ff   :  { %v3536_v42 = vpop.f32.mrf.mxu0  ;;  %v3556_v61 = vpop.f32.mrf.mxu1 }
 0x900   :  { %v3559_v28 = vadd.f32 %v3536_v42, %v3504_v51  ;;  %v3560_v63 = vadd.f32 %v3556_v61, %v3505_v52 }
 0x906   :  { %v3583_v53 = vpop.f32.mrf.mxu2  ;;  %v3603_v20 = vpop.f32.mrf.mxu3 }
 0x907   :  { %v3638_v25 = vpop.f32.mrf.mxu0  ;;  %v3658_v59 = vpop.f32.mrf.mxu1  ;;  %v3606_v1 = vadd.f32 %v3583_v53, %v3559_v28  ;;  %v3607_v27 = vadd.f32 %v3603_v20, %v3560_v63 }
 0x909   :  { %v3661_v0 = vadd.f32 %v3638_v25, %v3606_v1  ;;  %v3662_v12 = vadd.f32 %v3658_v59, %v3607_v27 }
 0x90e   :  { %v3693_v32 = vpop.f32.mrf.mxu2  ;;  %v3713_v60 = vpop.f32.mrf.mxu3 }
 0x90f   :  { %v3716_v13 = vadd.f32 %v3693_v32, %v3661_v0  ;;  %v3717_v22 = vadd.f32 %v3713_v60, %v3662_v12  ;;  %v3748_v23 = vpop.f32.mrf.mxu0  ;;  %v3768_v7 = vpop.f32.mrf.mxu1 }
 0x911   :  { %v3771_v26 = vadd.f32 %v3748_v23, %v3716_v13  ;;  %v3772_v31 = vadd.f32 %v3768_v7, %v3717_v22 }
 0x916   :  { %v3803_v6 = vpop.f32.mrf.mxu2  ;;  %v3823_v38 = vpop.f32.mrf.mxu3 }
 0x917   :  { %v3826_v14 = vadd.f32 %v3803_v6, %v3771_v26  ;;  %v3827_v33 = vadd.f32 %v3823_v38, %v3772_v31 }
 0x919   :  { %v4076_v34 = vmul.f32 -1.442695, %v3826_v14  ;;  %v4077_v16 = vmul.f32 -1.442695, %v3827_v33 }
 0x91b   :  { %4090 = vpow2.f32 %v4076_v34 }
 0x91c   :  { %4092 = vpow2.f32 %v4077_v16 }
 0x921   :  { %v4091_v30 = vpop.eup %4090 }
 0x922   :  { %v4093_v48 = vpop.eup %4092  ;;  %v3834_v57 = vadd.f32 1.0, %v4091_v30 }
 0x923   :  { %v3835_v41 = vadd.f32 1.0, %v4093_v48 }
 0x924   :  { %4094 = vrcp.f32 %v3834_v57  ;;  %v3847_v44 = vand.u32 2147483648, %v3834_v57  ;;  %v3845_v45 = vand.u32 2147483647, %v3834_v57  ;;  %vm3841_vm11 = vweird.f32 %v3834_v57 }
 0x925   :  { %4096 = vrcp.f32 %v3835_v41  ;;  %v3862_v11 = vand.u32 2147483648, %v3835_v41  ;;  %v3860_v47 = vand.u32 2147483647, %v3835_v41  ;;  %vm3856_vm13 = vweird.f32 %v3835_v41 }
 0x926   :  { %v3848_v24 = vor.u32 1.1754944e-38, %v3847_v44  ;;  %vm3846_vm14 = vcmp.eq.f32.partialorder %v3845_v45, 8.507059e+37 }
 0x927   :  { %v3863_v9 = vor.u32 1.1754944e-38, %v3862_v11  ;;  %vm3861_vm0 = vcmp.eq.f32.partialorder %v3860_v47, 8.507059e+37 }
 0x92a   :  { %v4095_v56 = vpop.eup %4094 }
 0x92b   :  { %v4097_v10 = vpop.eup %4096  ;;  %v3837_v21 = vmul.f32 %v4095_v56, %v3834_v57  ;;  %vm3842_vm9 = vweird.f32 %v4095_v56 }
 0x92c   :  { %v3852_v37 = vmul.f32 %v4097_v10, %v3835_v41  ;;  %vm3857_vm10 = vweird.f32 %v4097_v10  ;;  %vm3843_vm12 = vmor %vm3841_vm11, %vm3842_vm9 }
 0x92d   :  { %v3838_v29 = vsub.f32 1.0, %v3837_v21  ;;  %vm3858_vm15 = vmor %vm3856_vm13, %vm3857_vm10 }
 0x92e   :  { %v3853_v46 = vsub.f32 1.0, %v3852_v37 }
 0x92f   :  { %v3839_v4 = vmul.f32 %v4095_v56, %v3838_v29 }
 0x930   :  { %v3854_v62 = vmul.f32 %v4097_v10, %v3853_v46 }
 0x931   :  { %v3840_v36 = vadd.f32 %v4095_v56, %v3839_v4 }
 0x932   :  { %v3855_v2 = vadd.f32 %v4097_v10, %v3854_v62 }
 0x933   :  { %v3844_v39 = vsel %vm3843_vm12, %v4095_v56, %v3840_v36 }
 0x934   :  { %v3849_v40 = vsel %vm3846_vm14, %v3848_v24, %v3844_v39  ;;  %v3859_v3 = vsel %vm3858_vm15, %v4097_v10, %v3855_v2 }
 0x935   :  { %v3864_v58 = vsel %vm3861_vm0, %v3863_v9, %v3859_v3  ;;  %v3866_v8 = vsub.f32 %v4132_v15, %v3849_v40 }
 0x936   :  { %v3867_v18 = vsub.f32 %v4133_v17, %v3864_v58 }
 0x937   :  { %3868 = vst [vmem:[#allocation2] sm:$0xff] %v3866_v8 }
 0x938   :  { %3869 = vst [vmem:[#allocation2 + $0x8] sm:$0xff] %v3867_v18 }
 0x939   :  { %3880 = dma.vmem_to_hbm [thread:$0]  %s3876_s5, 256, %s3878_s28, [#allocation3]  }
 0x93a   :  { %4158 = dma.done.wait [#allocation3], 256  }
 0x93b   :  { %4159 = vsyncadd [#allocation3], 4294967040 }
 0x93c   :  { %3885 = vsyncpa [#allocation3], 1 }

</bundles_post_ra>
